<compile_context>
chip_gen: v7x
topology: tpu7x:2x2x1
jax: 0.10.0
libtpu: 0.0.40
codegen_flags: <defaults>
</compile_context>

<pallas_src>
import functools
import math

import numpy as np
import jax
import jax.numpy as jnp
from jax import lax
from jax.experimental import pallas as pl
from jax.experimental.pallas import tpu as pltpu

_SQRT2_INV = 1.0 / math.sqrt(2.0)


# --------------------------------------------------------------------------
# Wavelet filter construction (trace-time constants).
# --------------------------------------------------------------------------
def haar_db1_matrices():
    """Replicates create_wavelet_filter('db1', ...) and flattens the 2x2 taps.

    Returns dm, rm of shape (4, 4) where
      dm[s, 2a+b] = dec_filters[s, a, b]   (analysis)
      rm[s, 2p+q] = rec_filters[s, p, q]   (synthesis)
    """
    dec_lo = jnp.array([_SQRT2_INV, _SQRT2_INV], jnp.float32)    # dec_lo[::-1]
    dec_hi = jnp.array([_SQRT2_INV, -_SQRT2_INV], jnp.float32)   # dec_hi[::-1]
    rec_lo = jnp.array([_SQRT2_INV, _SQRT2_INV], jnp.float32)    # rec_lo[::-1].flip
    rec_hi = jnp.array([_SQRT2_INV, -_SQRT2_INV], jnp.float32)   # rec_hi[::-1].flip

    def outer4(lo, hi):
        f = jnp.stack(
            [lo[None, :] * lo[:, None],
             lo[None, :] * hi[:, None],
             hi[None, :] * lo[:, None],
             hi[None, :] * hi[:, None]], axis=0)                 # (4, 2, 2)
        return f.reshape(4, 4)

    return outer4(dec_lo, dec_hi), outer4(rec_lo, rec_hi)


def _haar_A():
    """2x2 separable factor of M = rm^T @ dm  (so M = A kron A), as Python floats.

    z[2i+p, 2j+q] = sum_{a,b} A[p,a] * A[q,b] * x[2i+a, 2j+b] is exactly the
    fused WT -> IWT of the spec (a floating-point reassociation of the two-stage
    form).  For db1, A is diagonal (off-diagonals are exactly 0 in f32).
    """
    c = np.float32(1.0 / math.sqrt(2.0))
    d = np.array([[c, c], [c, -c]], np.float32)   # rows: dec_lo[::-1], dec_hi[::-1]
    r = np.array([[c, c], [c, -c]], np.float32)   # rows: rec filters (as in torch code)
    a = (r.T @ d).astype(np.float32)
    return float(a[0, 0]), float(a[0, 1]), float(a[1, 0]), float(a[1, 1])


# --------------------------------------------------------------------------
# Fused kernel: (WT -> IWT) block combine + depthwise 5x5 conv + bias, per
# (batch, channel-tile, H-tile) grid point.  Layout is NCHW: inside a tile the
# last dim W(+4) is on lanes, H rows on sublanes, channels on the outer dim.
# --------------------------------------------------------------------------
def _wtconv_kernel(w_ref, b_ref, xm_ref, xh_ref, out_ref, xbuf,
                   *, A, TC, TH, W, Wp):
    HB = TH + 8                          # working rows: TH main + 8 halo rows
    a00, a01, a10, a11 = A
    ci = pl.program_id(1)                # channel-tile index (for SMEM weight lookup)

    # Hoisted parity coefficient planes for the separable 2x2-block combine.
    row_even = (lax.broadcasted_iota(jnp.int32, (HB, Wp), 0) & 1) == 0
    col_even = (lax.broadcasted_iota(jnp.int32, (HB, Wp), 1) & 1) == 0
    cs_h = jnp.where(row_even, a00, a11)
    cs_w = jnp.where(col_even, a00, a11)
    haar_diag = (a01 == 0.0) and (a10 == 0.0)
    if haar_diag:
        cs_hw = cs_h * cs_w              # db1: the wavelet stage is a pure scale
    else:
        cp_h = jnp.where(row_even, a01, a10)
        cp_w = jnp.where(col_even, a01, a10)

    def body(c, carry):
        # Stage this channel's (TH + 8, W + 4) slab in VMEM (aligned stores).
        xbuf[0:TH, :] = xm_ref[c]
        xbuf[TH:HB, :] = xh_ref[c]
        x = xbuf[...]                                            # (HB, Wp)

        # ---- fused WT -> IWT: per-2x2-block combine with A (x) A ----------
        if haar_diag:
            z = cs_hw * x
        else:
            # partner of row r is r+1 (even r) / r-1 (odd r); circular wrap of
            # jnp.roll is never selected because HB and Wp are even.
            ph = jnp.where(row_even, jnp.roll(x, -1, axis=0), jnp.roll(x, 1, axis=0))
            t = cs_h * x + cp_h * ph
            pw = jnp.where(col_even, jnp.roll(t, -1, axis=1), jnp.roll(t, 1, axis=1))
            z = cs_w * t + cp_w * pw

        # ---- depthwise 5x5 conv, stride 1 (padding already in the tile) ----
        # Build the 5 W-shifted views once and reuse them across all ky taps,
        # so the 25-tap FMA loop only uses cheap row offsets.
        zs = [z[:, kx:kx + W] for kx in range(5)]                # 5 x (HB, W)

        cc = ci * TC + c                                         # global channel
        acc = zs[0][0:TH, :] * w_ref[cc * 25] + b_ref[cc]        # bias + first tap
        for ky in range(5):
            for kx in range(5):
                if ky == 0 and kx == 0:
                    continue
                acc = acc + zs[kx][ky:ky + TH, :] * w_ref[cc * 25 + ky * 5 + kx]
        out_ref[c] = acc
        return carry

    lax.fori_loop(0, TC, body, 0, unroll=TC <= 8)


# --------------------------------------------------------------------------
# Tile selection: keep the double-buffered working set around a few MiB so it
# pipelines on v7x (64 MiB VMEM) as well as v5e/v6e, while giving enough grid
# points for 2-TC sharding.
# --------------------------------------------------------------------------
def _pick_tiles(C, H, W):
    Wp = W + 4
    budget = 4 * 1024 * 1024

    def working(tc, th):
        # double-buffered: main block + halo block + output block (f32)
        return 4 * 2 * (tc * th * Wp + tc * 8 * Wp + tc * th * W)

    tc_cands = sorted([d for d in range(1, C + 1) if C % d == 0 and d <= 64],
                      reverse=True)
    th_cands = sorted([t for t in range(8, H + 1, 8) if H % t == 0], reverse=True)
    for tc in tc_cands:
        for th in th_cands:
            if working(tc, th) <= budget:
                return tc, th
    return tc_cands[-1], th_cands[-1]


# --------------------------------------------------------------------------
# Wrapper (NCHW in / NCHW out, matching the PyTorch module).
# --------------------------------------------------------------------------
def wtconv2d_forward(x_nchw, dw_weight, dw_bias):
    """x: (B, C, H, W) f32; dw_weight: (C, 5, 5); dw_bias: (C,)."""
    B, C, H, W = x_nchw.shape
    if H % 8 != 0 or W % 2 != 0:
        # TODO(synk): support H not divisible by 8 / odd spatial dims (needs
        # edge-masked tiles instead of the aligned halo BlockSpec used here).
        raise ValueError("wtconv2d_forward requires H % 8 == 0 and even W")

    Wp = W + 4
    TC, TH = _pick_tiles(C, H, W)
    HB = TH + 8

    # Single zero-pad in HBM: 2 left/right, 2 top, 2+4 bottom.  It provides the
    # base_conv's padding=2 ring AND the halo rows for every H tile (the last 4
    # bottom rows only exist so the 8-row halo block stays in bounds; they are
    # never used in arithmetic).  Because the pads are even (block-aligned), the
    # 2x2-block wavelet combine of the padded tensor equals the zero-padded
    # combine of the original, which is exactly what the conv needs.
    xp = jnp.pad(x_nchw.astype(jnp.float32), ((0, 0), (0, 0), (2, 6), (2, 2)))

    w_flat = dw_weight.astype(jnp.float32).reshape(C * 25)       # [c*25 + ky*5 + kx]
    b_flat = dw_bias.astype(jnp.float32).reshape(C)

    grid = (B, C // TC, H // TH)
    kernel = functools.partial(_wtconv_kernel, A=_haar_A(),
                               TC=TC, TH=TH, W=W, Wp=Wp)

    out = pl.pallas_call(
        kernel,
        out_shape=jax.ShapeDtypeStruct((B, C, H, W), jnp.float32),
        grid=grid,
        in_specs=[
            pl.BlockSpec(memory_space=pltpu.MemorySpace.SMEM),   # flat 5x5 weights
            pl.BlockSpec(memory_space=pltpu.MemorySpace.SMEM),   # bias
            # main rows of this H tile
            pl.BlockSpec((None, TC, TH, Wp),
                         lambda b, ci, hi: (b, ci, hi, 0)),
            # 8-row bottom halo (second view of the same padded input)
            pl.BlockSpec((None, TC, 8, Wp),
                         lambda b, ci, hi: (b, ci, (hi + 1) * (TH // 8), 0)),
        ],
        out_specs=pl.BlockSpec((None, TC, TH, W),
                               lambda b, ci, hi: (b, ci, hi, 0)),
        scratch_shapes=[pltpu.VMEM((HB, Wp), jnp.float32)],
        compiler_params=pltpu.CompilerParams(
            dimension_semantics=("parallel", "parallel", "parallel"),
            vmem_limit_bytes=32 * 1024 * 1024),
    )(w_flat, b_flat, xp, xp)
    return out


# --------------------------------------------------------------------------
# Pure-JAX reference (mirrors the PyTorch ops directly) for verification.
# --------------------------------------------------------------------------
def reference_forward(x, dw_weight, dw_bias):
    B, C, H, W = x.shape
    Hh, Wh = H // 2, W // 2
    dm, rm = haar_db1_matrices()
    D = dm.reshape(4, 2, 2)
    R = rm.reshape(4, 2, 2)

    # wavelet transform: depthwise conv2d, stride 2, pad 0
    y = jnp.zeros((B, C, 4, Hh, Wh), jnp.float32)
    for s in range(4):
        acc = jnp.zeros((B, C, Hh, Wh), jnp.float32)
        for a in range(2):
            for bb in range(2):
                acc = acc + D[s, a, bb] * x[:, :, a::2, bb::2]
        y = y.at[:, :, s].set(acc)

    # inverse wavelet transform: depthwise conv_transpose2d, stride 2, pad 0
    z = jnp.zeros((B, C, H, W), jnp.float32)
    for p in range(2):
        for q in range(2):
            acc = jnp.zeros((B, C, Hh, Wh), jnp.float32)
            for s in range(4):
                acc = acc + R[s, p, q] * y[:, :, s]
            z = z.at[:, :, p::2, q::2].set(acc)

    # depthwise 5x5 conv, padding 2, bias
    zp = jnp.pad(z, ((0, 0), (0, 0), (2, 2), (2, 2)))
    out = jnp.broadcast_to(dw_bias[None, :, None, None], (B, C, H, W))
    for ky in range(5):
        for kx in range(5):
            out = out + zp[:, :, ky:ky + H, kx:kx + W] * \
                dw_weight[:, ky, kx][None, :, None, None]
    return out


if __name__ == "__main__":
    B, C, H, W = 2, 4, 16, 16
    key = jax.random.PRNGKey(0)
    k1, k2, k3 = jax.random.split(key, 3)

    x = jax.random.normal(k1, (B, C, H, W), jnp.float32)

    # base_conv params: depthwise Conv2d(C, C, 5, groups=C, bias=True)
    fan_in = 1 * 5 * 5
    bound = 1.0 / math.sqrt(fan_in)
    dw_weight = jax.random.uniform(k2, (C, 5, 5), jnp.float32, -bound, bound)
    dw_bias = jax.random.uniform(k3, (C,), jnp.float32, -bound, bound)

    out = jax.jit(wtconv2d_forward)(x, dw_weight, dw_bias)
    out = jax.block_until_ready(out)

    ref = reference_forward(x, dw_weight, dw_bias)
    assert out.shape == (B, C, H, W)
    err = float(jnp.max(jnp.abs(out - ref)))
    assert jnp.allclose(out, ref, atol=1e-4, rtol=1e-4), err

    print("KERNEL_OK")
</pallas_src>

<mosaic_0001>
module attributes {stable_mosaic.version = 11 : i64} {
  func.func @_wtconv_kernel(%arg0: i32, %arg1: i32, %arg2: i32, %arg3: memref<100xf32, #tpu.memory_space<smem>>, %arg4: memref<4xf32, #tpu.memory_space<smem>>, %arg5: memref<1x4x16x20xf32, #tpu.memory_space<vmem>>, %arg6: memref<1x4x8x20xf32, #tpu.memory_space<vmem>>, %arg7: memref<1x4x16x16xf32, #tpu.memory_space<vmem>>, %arg8: memref<24x20xf32, #tpu.memory_space<vmem>>) attributes {dimension_semantics = [#tpu.dimension_semantics<parallel>, #tpu.dimension_semantics<parallel>, #tpu.dimension_semantics<parallel>], iteration_bounds = array<i64: 2, 1, 1>, scalar_prefetch = 0 : i64, scratch_operands = 1 : i64, tpu.core_type = #tpu.core_type<tc>, window_params = [{transform_indices = @transform_0, window_bounds = array<i64: 100>}, {transform_indices = @transform_1, window_bounds = array<i64: 4>}, {transform_indices = @transform_2, window_bounds = array<i64: 1, 4, 16, 20>}, {transform_indices = @transform_3, window_bounds = array<i64: 1, 4, 8, 20>}, {transform_indices = @transform_4, window_bounds = array<i64: 1, 4, 16, 16>}]} {
    %0 = tpu.iota {dimensions = array<i32: 0>} : vector<24x20xi32>
    %c1_i32 = arith.constant 1 : i32
    %1 = vector.broadcast %c1_i32 : i32 to vector<24x20xi32>
    %2 = arith.andi %0, %1 : vector<24x20xi32>
    %c0_i32 = arith.constant 0 : i32
    %3 = vector.broadcast %c0_i32 : i32 to vector<24x20xi32>
    %4 = arith.cmpi eq, %2, %3 : vector<24x20xi32>
    %5 = tpu.iota {dimensions = array<i32: 1>} : vector<24x20xi32>
    %c1_i32_0 = arith.constant 1 : i32
    %6 = vector.broadcast %c1_i32_0 : i32 to vector<24x20xi32>
    %7 = arith.andi %5, %6 : vector<24x20xi32>
    %c0_i32_1 = arith.constant 0 : i32
    %8 = vector.broadcast %c0_i32_1 : i32 to vector<24x20xi32>
    %9 = arith.cmpi eq, %7, %8 : vector<24x20xi32>
    %cst = arith.constant 0.99999994 : f32
    %cst_2 = arith.constant 0.99999994 : f32
    %10 = vector.broadcast %cst : f32 to vector<24x20xf32>
    %11 = vector.broadcast %cst_2 : f32 to vector<24x20xf32>
    %12 = arith.select %4, %10, %11 : vector<24x20xi1>, vector<24x20xf32>
    %cst_3 = arith.constant 0.99999994 : f32
    %cst_4 = arith.constant 0.99999994 : f32
    %13 = vector.broadcast %cst_3 : f32 to vector<24x20xf32>
    %14 = vector.broadcast %cst_4 : f32 to vector<24x20xf32>
    %15 = arith.select %9, %13, %14 : vector<24x20xi1>, vector<24x20xf32>
    %cst_5 = arith.constant -1.26880515E-8 : f32
    %cst_6 = arith.constant -1.26880515E-8 : f32
    %16 = vector.broadcast %cst_5 : f32 to vector<24x20xf32>
    %17 = vector.broadcast %cst_6 : f32 to vector<24x20xf32>
    %18 = arith.select %4, %16, %17 : vector<24x20xi1>, vector<24x20xf32>
    %cst_7 = arith.constant -1.26880515E-8 : f32
    %cst_8 = arith.constant -1.26880515E-8 : f32
    %19 = vector.broadcast %cst_7 : f32 to vector<24x20xf32>
    %20 = vector.broadcast %cst_8 : f32 to vector<24x20xf32>
    %21 = arith.select %9, %19, %20 : vector<24x20xi1>, vector<24x20xf32>
    %c0_i32_9 = arith.constant 0 : i32
    %c0 = arith.constant 0 : index
    %22 = arith.index_cast %c0_i32_9 : i32 to index
    %c0_10 = arith.constant 0 : index
    %c0_11 = arith.constant 0 : index
    %23 = vector.load %arg5[%c0, %22, %c0_10, %c0_11] : memref<1x4x16x20xf32, #tpu.memory_space<vmem>>, vector<1x1x16x20xf32>
    %24 = vector.shape_cast %23 : vector<1x1x16x20xf32> to vector<16x20xf32>
    %c0_12 = arith.constant 0 : index
    %c0_13 = arith.constant 0 : index
    %25 = vector.load %arg8[%c0_12, %c0_13] : memref<24x20xf32, #tpu.memory_space<vmem>>, vector<16x20xf32>
    tpu.vector_store %arg8[%c0_12, %c0_13], %24 {strides = array<i32>} : memref<24x20xf32, #tpu.memory_space<vmem>>, vector<16x20xf32>,
    %c0_14 = arith.constant 0 : index
    %26 = arith.index_cast %c0_i32_9 : i32 to index
    %c0_15 = arith.constant 0 : index
    %c0_16 = arith.constant 0 : index
    %27 = vector.load %arg6[%c0_14, %26, %c0_15, %c0_16] : memref<1x4x8x20xf32, #tpu.memory_space<vmem>>, vector<1x1x8x20xf32>
    %28 = vector.shape_cast %27 : vector<1x1x8x20xf32> to vector<8x20xf32>
    %c16 = arith.constant 16 : index
    %c0_17 = arith.constant 0 : index
    %29 = vector.load %arg8[%c16, %c0_17] : memref<24x20xf32, #tpu.memory_space<vmem>>, vector<8x20xf32>
    tpu.vector_store %arg8[%c16, %c0_17], %28 {strides = array<i32>} : memref<24x20xf32, #tpu.memory_space<vmem>>, vector<8x20xf32>,
    %c0_18 = arith.constant 0 : index
    %c0_19 = arith.constant 0 : index
    %30 = vector.load %arg8[%c0_18, %c0_19] : memref<24x20xf32, #tpu.memory_space<vmem>>, vector<24x20xf32>
    %31 = vector.extract_strided_slice %30 {offsets = [1, 0], sizes = [23, 20], strides = [1, 1]} : vector<24x20xf32> to vector<23x20xf32>
    %32 = vector.extract_strided_slice %30 {offsets = [0, 0], sizes = [1, 20], strides = [1, 1]} : vector<24x20xf32> to vector<1x20xf32>
    %33 = tpu.concatenate %31, %32 in 0 : vector<23x20xf32>, vector<1x20xf32> -> vector<24x20xf32>
    %34 = vector.extract_strided_slice %30 {offsets = [23, 0], sizes = [1, 20], strides = [1, 1]} : vector<24x20xf32> to vector<1x20xf32>
    %35 = vector.extract_strided_slice %30 {offsets = [0, 0], sizes = [23, 20], strides = [1, 1]} : vector<24x20xf32> to vector<23x20xf32>
    %36 = tpu.concatenate %34, %35 in 0 : vector<1x20xf32>, vector<23x20xf32> -> vector<24x20xf32>
    %37 = arith.select %4, %33, %36 : vector<24x20xi1>, vector<24x20xf32>
    %38 = arith.mulf %12, %30 : vector<24x20xf32>
    %39 = arith.mulf %18, %37 : vector<24x20xf32>
    %40 = arith.addf %38, %39 : vector<24x20xf32>
    %41 = vector.extract_strided_slice %40 {offsets = [0, 1], sizes = [24, 19], strides = [1, 1]} : vector<24x20xf32> to vector<24x19xf32>
    %42 = vector.extract_strided_slice %40 {offsets = [0, 0], sizes = [24, 1], strides = [1, 1]} : vector<24x20xf32> to vector<24x1xf32>
    %43 = tpu.concatenate %41, %42 in 1 : vector<24x19xf32>, vector<24x1xf32> -> vector<24x20xf32>
    %44 = vector.extract_strided_slice %40 {offsets = [0, 19], sizes = [24, 1], strides = [1, 1]} : vector<24x20xf32> to vector<24x1xf32>
    %45 = vector.extract_strided_slice %40 {offsets = [0, 0], sizes = [24, 19], strides = [1, 1]} : vector<24x20xf32> to vector<24x19xf32>
    %46 = tpu.concatenate %44, %45 in 1 : vector<24x1xf32>, vector<24x19xf32> -> vector<24x20xf32>
    %47 = arith.select %9, %43, %46 : vector<24x20xi1>, vector<24x20xf32>
    %48 = arith.mulf %15, %40 : vector<24x20xf32>
    %49 = arith.mulf %21, %47 : vector<24x20xf32>
    %50 = arith.addf %48, %49 : vector<24x20xf32>
    %51 = vector.extract_strided_slice %50 {offsets = [0, 0], sizes = [24, 16], strides = [1, 1]} : vector<24x20xf32> to vector<24x16xf32>
    %52 = vector.extract_strided_slice %50 {offsets = [0, 1], sizes = [24, 16], strides = [1, 1]} : vector<24x20xf32> to vector<24x16xf32>
    %53 = vector.extract_strided_slice %50 {offsets = [0, 2], sizes = [24, 16], strides = [1, 1]} : vector<24x20xf32> to vector<24x16xf32>
    %54 = vector.extract_strided_slice %50 {offsets = [0, 3], sizes = [24, 16], strides = [1, 1]} : vector<24x20xf32> to vector<24x16xf32>
    %55 = vector.extract_strided_slice %50 {offsets = [0, 4], sizes = [24, 16], strides = [1, 1]} : vector<24x20xf32> to vector<24x16xf32>
    %c4_i32 = arith.constant 4 : i32
    %56 = arith.muli %arg1, %c4_i32 : i32
    %57 = arith.addi %56, %c0_i32_9 : i32
    %58 = vector.extract_strided_slice %51 {offsets = [0, 0], sizes = [16, 16], strides = [1, 1]} : vector<24x16xf32> to vector<16x16xf32>
    %c25_i32 = arith.constant 25 : i32
    %59 = arith.muli %57, %c25_i32 : i32
    %60 = arith.index_cast %59 : i32 to index
    %61 = memref.load %arg3[%60] : memref<100xf32, #tpu.memory_space<smem>>
    %62 = vector.broadcast %61 : f32 to vector<16x16xf32>
    %63 = arith.mulf %58, %62 : vector<16x16xf32>
    %64 = arith.index_cast %57 : i32 to index
    %65 = memref.load %arg4[%64] : memref<4xf32, #tpu.memory_space<smem>>
    %66 = vector.broadcast %65 : f32 to vector<16x16xf32>
    %67 = arith.addf %63, %66 : vector<16x16xf32>
    %68 = vector.extract_strided_slice %52 {offsets = [0, 0], sizes = [16, 16], strides = [1, 1]} : vector<24x16xf32> to vector<16x16xf32>
    %c25_i32_20 = arith.constant 25 : i32
    %69 = arith.muli %57, %c25_i32_20 : i32
    %c0_i32_21 = arith.constant 0 : i32
    %70 = arith.addi %69, %c0_i32_21 : i32
    %c1_i32_22 = arith.constant 1 : i32
    %71 = arith.addi %70, %c1_i32_22 : i32
    %72 = arith.index_cast %71 : i32 to index
    %73 = memref.load %arg3[%72] : memref<100xf32, #tpu.memory_space<smem>>
    %74 = vector.broadcast %73 : f32 to vector<16x16xf32>
    %75 = arith.mulf %68, %74 : vector<16x16xf32>
    %76 = arith.addf %67, %75 : vector<16x16xf32>
    %77 = vector.extract_strided_slice %53 {offsets = [0, 0], sizes = [16, 16], strides = [1, 1]} : vector<24x16xf32> to vector<16x16xf32>
    %c25_i32_23 = arith.constant 25 : i32
    %78 = arith.muli %57, %c25_i32_23 : i32
    %c0_i32_24 = arith.constant 0 : i32
    %79 = arith.addi %78, %c0_i32_24 : i32
    %c2_i32 = arith.constant 2 : i32
    %80 = arith.addi %79, %c2_i32 : i32
    %81 = arith.index_cast %80 : i32 to index
    %82 = memref.load %arg3[%81] : memref<100xf32, #tpu.memory_space<smem>>
    %83 = vector.broadcast %82 : f32 to vector<16x16xf32>
    %84 = arith.mulf %77, %83 : vector<16x16xf32>
    %85 = arith.addf %76, %84 : vector<16x16xf32>
    %86 = vector.extract_strided_slice %54 {offsets = [0, 0], sizes = [16, 16], strides = [1, 1]} : vector<24x16xf32> to vector<16x16xf32>
    %c25_i32_25 = arith.constant 25 : i32
    %87 = arith.muli %57, %c25_i32_25 : i32
    %c0_i32_26 = arith.constant 0 : i32
    %88 = arith.addi %87, %c0_i32_26 : i32
    %c3_i32 = arith.constant 3 : i32
    %89 = arith.addi %88, %c3_i32 : i32
    %90 = arith.index_cast %89 : i32 to index
    %91 = memref.load %arg3[%90] : memref<100xf32, #tpu.memory_space<smem>>
    %92 = vector.broadcast %91 : f32 to vector<16x16xf32>
    %93 = arith.mulf %86, %92 : vector<16x16xf32>
    %94 = arith.addf %85, %93 : vector<16x16xf32>
    %95 = vector.extract_strided_slice %55 {offsets = [0, 0], sizes = [16, 16], strides = [1, 1]} : vector<24x16xf32> to vector<16x16xf32>
    %c25_i32_27 = arith.constant 25 : i32
    %96 = arith.muli %57, %c25_i32_27 : i32
    %c0_i32_28 = arith.constant 0 : i32
    %97 = arith.addi %96, %c0_i32_28 : i32
    %c4_i32_29 = arith.constant 4 : i32
    %98 = arith.addi %97, %c4_i32_29 : i32
    %99 = arith.index_cast %98 : i32 to index
    %100 = memref.load %arg3[%99] : memref<100xf32, #tpu.memory_space<smem>>
    %101 = vector.broadcast %100 : f32 to vector<16x16xf32>
    %102 = arith.mulf %95, %101 : vector<16x16xf32>
    %103 = arith.addf %94, %102 : vector<16x16xf32>
    %104 = vector.extract_strided_slice %51 {offsets = [1, 0], sizes = [16, 16], strides = [1, 1]} : vector<24x16xf32> to vector<16x16xf32>
    %c25_i32_30 = arith.constant 25 : i32
    %105 = arith.muli %57, %c25_i32_30 : i32
    %c5_i32 = arith.constant 5 : i32
    %106 = arith.addi %105, %c5_i32 : i32
    %c0_i32_31 = arith.constant 0 : i32
    %107 = arith.addi %106, %c0_i32_31 : i32
    %108 = arith.index_cast %107 : i32 to index
    %109 = memref.load %arg3[%108] : memref<100xf32, #tpu.memory_space<smem>>
    %110 = vector.broadcast %109 : f32 to vector<16x16xf32>
    %111 = arith.mulf %104, %110 : vector<16x16xf32>
    %112 = arith.addf %103, %111 : vector<16x16xf32>
    %113 = vector.extract_strided_slice %52 {offsets = [1, 0], sizes = [16, 16], strides = [1, 1]} : vector<24x16xf32> to vector<16x16xf32>
    %c25_i32_32 = arith.constant 25 : i32
    %114 = arith.muli %57, %c25_i32_32 : i32
    %c5_i32_33 = arith.constant 5 : i32
    %115 = arith.addi %114, %c5_i32_33 : i32
    %c1_i32_34 = arith.constant 1 : i32
    %116 = arith.addi %115, %c1_i32_34 : i32
    %117 = arith.index_cast %116 : i32 to index
    %118 = memref.load %arg3[%117] : memref<100xf32, #tpu.memory_space<smem>>
    %119 = vector.broadcast %118 : f32 to vector<16x16xf32>
    %120 = arith.mulf %113, %119 : vector<16x16xf32>
    %121 = arith.addf %112, %120 : vector<16x16xf32>
    %122 = vector.extract_strided_slice %53 {offsets = [1, 0], sizes = [16, 16], strides = [1, 1]} : vector<24x16xf32> to vector<16x16xf32>
    %c25_i32_35 = arith.constant 25 : i32
    %123 = arith.muli %57, %c25_i32_35 : i32
    %c5_i32_36 = arith.constant 5 : i32
    %124 = arith.addi %123, %c5_i32_36 : i32
    %c2_i32_37 = arith.constant 2 : i32
    %125 = arith.addi %124, %c2_i32_37 : i32
    %126 = arith.index_cast %125 : i32 to index
    %127 = memref.load %arg3[%126] : memref<100xf32, #tpu.memory_space<smem>>
    %128 = vector.broadcast %127 : f32 to vector<16x16xf32>
    %129 = arith.mulf %122, %128 : vector<16x16xf32>
    %130 = arith.addf %121, %129 : vector<16x16xf32>
    %131 = vector.extract_strided_slice %54 {offsets = [1, 0], sizes = [16, 16], strides = [1, 1]} : vector<24x16xf32> to vector<16x16xf32>
    %c25_i32_38 = arith.constant 25 : i32
    %132 = arith.muli %57, %c25_i32_38 : i32
    %c5_i32_39 = arith.constant 5 : i32
    %133 = arith.addi %132, %c5_i32_39 : i32
    %c3_i32_40 = arith.constant 3 : i32
    %134 = arith.addi %133, %c3_i32_40 : i32
    %135 = arith.index_cast %134 : i32 to index
    %136 = memref.load %arg3[%135] : memref<100xf32, #tpu.memory_space<smem>>
    %137 = vector.broadcast %136 : f32 to vector<16x16xf32>
    %138 = arith.mulf %131, %137 : vector<16x16xf32>
    %139 = arith.addf %130, %138 : vector<16x16xf32>
    %140 = vector.extract_strided_slice %55 {offsets = [1, 0], sizes = [16, 16], strides = [1, 1]} : vector<24x16xf32> to vector<16x16xf32>
    %c25_i32_41 = arith.constant 25 : i32
    %141 = arith.muli %57, %c25_i32_41 : i32
    %c5_i32_42 = arith.constant 5 : i32
    %142 = arith.addi %141, %c5_i32_42 : i32
    %c4_i32_43 = arith.constant 4 : i32
    %143 = arith.addi %142, %c4_i32_43 : i32
    %144 = arith.index_cast %143 : i32 to index
    %145 = memref.load %arg3[%144] : memref<100xf32, #tpu.memory_space<smem>>
    %146 = vector.broadcast %145 : f32 to vector<16x16xf32>
    %147 = arith.mulf %140, %146 : vector<16x16xf32>
    %148 = arith.addf %139, %147 : vector<16x16xf32>
    %149 = vector.extract_strided_slice %51 {offsets = [2, 0], sizes = [16, 16], strides = [1, 1]} : vector<24x16xf32> to vector<16x16xf32>
    %c25_i32_44 = arith.constant 25 : i32
    %150 = arith.muli %57, %c25_i32_44 : i32
    %c10_i32 = arith.constant 10 : i32
    %151 = arith.addi %150, %c10_i32 : i32
    %c0_i32_45 = arith.constant 0 : i32
    %152 = arith.addi %151, %c0_i32_45 : i32
    %153 = arith.index_cast %152 : i32 to index
    %154 = memref.load %arg3[%153] : memref<100xf32, #tpu.memory_space<smem>>
    %155 = vector.broadcast %154 : f32 to vector<16x16xf32>
    %156 = arith.mulf %149, %155 : vector<16x16xf32>
    %157 = arith.addf %148, %156 : vector<16x16xf32>
    %158 = vector.extract_strided_slice %52 {offsets = [2, 0], sizes = [16, 16], strides = [1, 1]} : vector<24x16xf32> to vector<16x16xf32>
    %c25_i32_46 = arith.constant 25 : i32
    %159 = arith.muli %57, %c25_i32_46 : i32
    %c10_i32_47 = arith.constant 10 : i32
    %160 = arith.addi %159, %c10_i32_47 : i32
    %c1_i32_48 = arith.constant 1 : i32
    %161 = arith.addi %160, %c1_i32_48 : i32
    %162 = arith.index_cast %161 : i32 to index
    %163 = memref.load %arg3[%162] : memref<100xf32, #tpu.memory_space<smem>>
    %164 = vector.broadcast %163 : f32 to vector<16x16xf32>
    %165 = arith.mulf %158, %164 : vector<16x16xf32>
    %166 = arith.addf %157, %165 : vector<16x16xf32>
    %167 = vector.extract_strided_slice %53 {offsets = [2, 0], sizes = [16, 16], strides = [1, 1]} : vector<24x16xf32> to vector<16x16xf32>
    %c25_i32_49 = arith.constant 25 : i32
    %168 = arith.muli %57, %c25_i32_49 : i32
    %c10_i32_50 = arith.constant 10 : i32
    %169 = arith.addi %168, %c10_i32_50 : i32
    %c2_i32_51 = arith.constant 2 : i32
    %170 = arith.addi %169, %c2_i32_51 : i32
    %171 = arith.index_cast %170 : i32 to index
    %172 = memref.load %arg3[%171] : memref<100xf32, #tpu.memory_space<smem>>
    %173 = vector.broadcast %172 : f32 to vector<16x16xf32>
    %174 = arith.mulf %167, %173 : vector<16x16xf32>
    %175 = arith.addf %166, %174 : vector<16x16xf32>
    %176 = vector.extract_strided_slice %54 {offsets = [2, 0], sizes = [16, 16], strides = [1, 1]} : vector<24x16xf32> to vector<16x16xf32>
    %c25_i32_52 = arith.constant 25 : i32
    %177 = arith.muli %57, %c25_i32_52 : i32
    %c10_i32_53 = arith.constant 10 : i32
    %178 = arith.addi %177, %c10_i32_53 : i32
    %c3_i32_54 = arith.constant 3 : i32
    %179 = arith.addi %178, %c3_i32_54 : i32
    %180 = arith.index_cast %179 : i32 to index
    %181 = memref.load %arg3[%180] : memref<100xf32, #tpu.memory_space<smem>>
    %182 = vector.broadcast %181 : f32 to vector<16x16xf32>
    %183 = arith.mulf %176, %182 : vector<16x16xf32>
    %184 = arith.addf %175, %183 : vector<16x16xf32>
    %185 = vector.extract_strided_slice %55 {offsets = [2, 0], sizes = [16, 16], strides = [1, 1]} : vector<24x16xf32> to vector<16x16xf32>
    %c25_i32_55 = arith.constant 25 : i32
    %186 = arith.muli %57, %c25_i32_55 : i32
    %c10_i32_56 = arith.constant 10 : i32
    %187 = arith.addi %186, %c10_i32_56 : i32
    %c4_i32_57 = arith.constant 4 : i32
    %188 = arith.addi %187, %c4_i32_57 : i32
    %189 = arith.index_cast %188 : i32 to index
    %190 = memref.load %arg3[%189] : memref<100xf32, #tpu.memory_space<smem>>
    %191 = vector.broadcast %190 : f32 to vector<16x16xf32>
    %192 = arith.mulf %185, %191 : vector<16x16xf32>
    %193 = arith.addf %184, %192 : vector<16x16xf32>
    %194 = vector.extract_strided_slice %51 {offsets = [3, 0], sizes = [16, 16], strides = [1, 1]} : vector<24x16xf32> to vector<16x16xf32>
    %c25_i32_58 = arith.constant 25 : i32
    %195 = arith.muli %57, %c25_i32_58 : i32
    %c15_i32 = arith.constant 15 : i32
    %196 = arith.addi %195, %c15_i32 : i32
    %c0_i32_59 = arith.constant 0 : i32
    %197 = arith.addi %196, %c0_i32_59 : i32
    %198 = arith.index_cast %197 : i32 to index
    %199 = memref.load %arg3[%198] : memref<100xf32, #tpu.memory_space<smem>>
    %200 = vector.broadcast %199 : f32 to vector<16x16xf32>
    %201 = arith.mulf %194, %200 : vector<16x16xf32>
    %202 = arith.addf %193, %201 : vector<16x16xf32>
    %203 = vector.extract_strided_slice %52 {offsets = [3, 0], sizes = [16, 16], strides = [1, 1]} : vector<24x16xf32> to vector<16x16xf32>
    %c25_i32_60 = arith.constant 25 : i32
    %204 = arith.muli %57, %c25_i32_60 : i32
    %c15_i32_61 = arith.constant 15 : i32
    %205 = arith.addi %204, %c15_i32_61 : i32
    %c1_i32_62 = arith.constant 1 : i32
    %206 = arith.addi %205, %c1_i32_62 : i32
    %207 = arith.index_cast %206 : i32 to index
    %208 = memref.load %arg3[%207] : memref<100xf32, #tpu.memory_space<smem>>
    %209 = vector.broadcast %208 : f32 to vector<16x16xf32>
    %210 = arith.mulf %203, %209 : vector<16x16xf32>
    %211 = arith.addf %202, %210 : vector<16x16xf32>
    %212 = vector.extract_strided_slice %53 {offsets = [3, 0], sizes = [16, 16], strides = [1, 1]} : vector<24x16xf32> to vector<16x16xf32>
    %c25_i32_63 = arith.constant 25 : i32
    %213 = arith.muli %57, %c25_i32_63 : i32
    %c15_i32_64 = arith.constant 15 : i32
    %214 = arith.addi %213, %c15_i32_64 : i32
    %c2_i32_65 = arith.constant 2 : i32
    %215 = arith.addi %214, %c2_i32_65 : i32
    %216 = arith.index_cast %215 : i32 to index
    %217 = memref.load %arg3[%216] : memref<100xf32, #tpu.memory_space<smem>>
    %218 = vector.broadcast %217 : f32 to vector<16x16xf32>
    %219 = arith.mulf %212, %218 : vector<16x16xf32>
    %220 = arith.addf %211, %219 : vector<16x16xf32>
    %221 = vector.extract_strided_slice %54 {offsets = [3, 0], sizes = [16, 16], strides = [1, 1]} : vector<24x16xf32> to vector<16x16xf32>
    %c25_i32_66 = arith.constant 25 : i32
    %222 = arith.muli %57, %c25_i32_66 : i32
    %c15_i32_67 = arith.constant 15 : i32
    %223 = arith.addi %222, %c15_i32_67 : i32
    %c3_i32_68 = arith.constant 3 : i32
    %224 = arith.addi %223, %c3_i32_68 : i32
    %225 = arith.index_cast %224 : i32 to index
    %226 = memref.load %arg3[%225] : memref<100xf32, #tpu.memory_space<smem>>
    %227 = vector.broadcast %226 : f32 to vector<16x16xf32>
    %228 = arith.mulf %221, %227 : vector<16x16xf32>
    %229 = arith.addf %220, %228 : vector<16x16xf32>
    %230 = vector.extract_strided_slice %55 {offsets = [3, 0], sizes = [16, 16], strides = [1, 1]} : vector<24x16xf32> to vector<16x16xf32>
    %c25_i32_69 = arith.constant 25 : i32
    %231 = arith.muli %57, %c25_i32_69 : i32
    %c15_i32_70 = arith.constant 15 : i32
    %232 = arith.addi %231, %c15_i32_70 : i32
    %c4_i32_71 = arith.constant 4 : i32
    %233 = arith.addi %232, %c4_i32_71 : i32
    %234 = arith.index_cast %233 : i32 to index
    %235 = memref.load %arg3[%234] : memref<100xf32, #tpu.memory_space<smem>>
    %236 = vector.broadcast %235 : f32 to vector<16x16xf32>
    %237 = arith.mulf %230, %236 : vector<16x16xf32>
    %238 = arith.addf %229, %237 : vector<16x16xf32>
    %239 = vector.extract_strided_slice %51 {offsets = [4, 0], sizes = [16, 16], strides = [1, 1]} : vector<24x16xf32> to vector<16x16xf32>
    %c25_i32_72 = arith.constant 25 : i32
    %240 = arith.muli %57, %c25_i32_72 : i32
    %c20_i32 = arith.constant 20 : i32
    %241 = arith.addi %240, %c20_i32 : i32
    %c0_i32_73 = arith.constant 0 : i32
    %242 = arith.addi %241, %c0_i32_73 : i32
    %243 = arith.index_cast %242 : i32 to index
    %244 = memref.load %arg3[%243] : memref<100xf32, #tpu.memory_space<smem>>
    %245 = vector.broadcast %244 : f32 to vector<16x16xf32>
    %246 = arith.mulf %239, %245 : vector<16x16xf32>
    %247 = arith.addf %238, %246 : vector<16x16xf32>
    %248 = vector.extract_strided_slice %52 {offsets = [4, 0], sizes = [16, 16], strides = [1, 1]} : vector<24x16xf32> to vector<16x16xf32>
    %c25_i32_74 = arith.constant 25 : i32
    %249 = arith.muli %57, %c25_i32_74 : i32
    %c20_i32_75 = arith.constant 20 : i32
    %250 = arith.addi %249, %c20_i32_75 : i32
    %c1_i32_76 = arith.constant 1 : i32
    %251 = arith.addi %250, %c1_i32_76 : i32
    %252 = arith.index_cast %251 : i32 to index
    %253 = memref.load %arg3[%252] : memref<100xf32, #tpu.memory_space<smem>>
    %254 = vector.broadcast %253 : f32 to vector<16x16xf32>
    %255 = arith.mulf %248, %254 : vector<16x16xf32>
    %256 = arith.addf %247, %255 : vector<16x16xf32>
    %257 = vector.extract_strided_slice %53 {offsets = [4, 0], sizes = [16, 16], strides = [1, 1]} : vector<24x16xf32> to vector<16x16xf32>
    %c25_i32_77 = arith.constant 25 : i32
    %258 = arith.muli %57, %c25_i32_77 : i32
    %c20_i32_78 = arith.constant 20 : i32
    %259 = arith.addi %258, %c20_i32_78 : i32
    %c2_i32_79 = arith.constant 2 : i32
    %260 = arith.addi %259, %c2_i32_79 : i32
    %261 = arith.index_cast %260 : i32 to index
    %262 = memref.load %arg3[%261] : memref<100xf32, #tpu.memory_space<smem>>
    %263 = vector.broadcast %262 : f32 to vector<16x16xf32>
    %264 = arith.mulf %257, %263 : vector<16x16xf32>
    %265 = arith.addf %256, %264 : vector<16x16xf32>
    %266 = vector.extract_strided_slice %54 {offsets = [4, 0], sizes = [16, 16], strides = [1, 1]} : vector<24x16xf32> to vector<16x16xf32>
    %c25_i32_80 = arith.constant 25 : i32
    %267 = arith.muli %57, %c25_i32_80 : i32
    %c20_i32_81 = arith.constant 20 : i32
    %268 = arith.addi %267, %c20_i32_81 : i32
    %c3_i32_82 = arith.constant 3 : i32
    %269 = arith.addi %268, %c3_i32_82 : i32
    %270 = arith.index_cast %269 : i32 to index
    %271 = memref.load %arg3[%270] : memref<100xf32, #tpu.memory_space<smem>>
    %272 = vector.broadcast %271 : f32 to vector<16x16xf32>
    %273 = arith.mulf %266, %272 : vector<16x16xf32>
    %274 = arith.addf %265, %273 : vector<16x16xf32>
    %275 = vector.extract_strided_slice %55 {offsets = [4, 0], sizes = [16, 16], strides = [1, 1]} : vector<24x16xf32> to vector<16x16xf32>
    %c25_i32_83 = arith.constant 25 : i32
    %276 = arith.muli %57, %c25_i32_83 : i32
    %c20_i32_84 = arith.constant 20 : i32
    %277 = arith.addi %276, %c20_i32_84 : i32
    %c4_i32_85 = arith.constant 4 : i32
    %278 = arith.addi %277, %c4_i32_85 : i32
    %279 = arith.index_cast %278 : i32 to index
    %280 = memref.load %arg3[%279] : memref<100xf32, #tpu.memory_space<smem>>
    %281 = vector.broadcast %280 : f32 to vector<16x16xf32>
    %282 = arith.mulf %275, %281 : vector<16x16xf32>
    %283 = arith.addf %274, %282 : vector<16x16xf32>
    %c0_86 = arith.constant 0 : index
    %284 = arith.index_cast %c0_i32_9 : i32 to index
    %c0_87 = arith.constant 0 : index
    %c0_88 = arith.constant 0 : index
    %285 = vector.load %arg7[%c0_86, %284, %c0_87, %c0_88] : memref<1x4x16x16xf32, #tpu.memory_space<vmem>>, vector<1x1x16x16xf32>
    %286 = vector.shape_cast %285 : vector<1x1x16x16xf32> to vector<16x16xf32>
    %287 = vector.shape_cast %283 : vector<16x16xf32> to vector<1x1x16x16xf32>
    tpu.vector_store %arg7[%c0_86, %284, %c0_87, %c0_88], %287 {strides = array<i32>} : memref<1x4x16x16xf32, #tpu.memory_space<vmem>>, vector<1x1x16x16xf32>,
    %c1_i32_89 = arith.constant 1 : i32
    %c0_90 = arith.constant 0 : index
    %288 = arith.index_cast %c1_i32_89 : i32 to index
    %c0_91 = arith.constant 0 : index
    %c0_92 = arith.constant 0 : index
    %289 = vector.load %arg5[%c0_90, %288, %c0_91, %c0_92] : memref<1x4x16x20xf32, #tpu.memory_space<vmem>>, vector<1x1x16x20xf32>
    %290 = vector.shape_cast %289 : vector<1x1x16x20xf32> to vector<16x20xf32>
    %c0_93 = arith.constant 0 : index
    %c0_94 = arith.constant 0 : index
    %291 = vector.load %arg8[%c0_93, %c0_94] : memref<24x20xf32, #tpu.memory_space<vmem>>, vector<16x20xf32>
    tpu.vector_store %arg8[%c0_93, %c0_94], %290 {strides = array<i32>} : memref<24x20xf32, #tpu.memory_space<vmem>>, vector<16x20xf32>,
    %c0_95 = arith.constant 0 : index
    %292 = arith.index_cast %c1_i32_89 : i32 to index
    %c0_96 = arith.constant 0 : index
    %c0_97 = arith.constant 0 : index
    %293 = vector.load %arg6[%c0_95, %292, %c0_96, %c0_97] : memref<1x4x8x20xf32, #tpu.memory_space<vmem>>, vector<1x1x8x20xf32>
    %294 = vector.shape_cast %293 : vector<1x1x8x20xf32> to vector<8x20xf32>
    %c16_98 = arith.constant 16 : index
    %c0_99 = arith.constant 0 : index
    %295 = vector.load %arg8[%c16_98, %c0_99] : memref<24x20xf32, #tpu.memory_space<vmem>>, vector<8x20xf32>
    tpu.vector_store %arg8[%c16_98, %c0_99], %294 {strides = array<i32>} : memref<24x20xf32, #tpu.memory_space<vmem>>, vector<8x20xf32>,
    %c0_100 = arith.constant 0 : index
    %c0_101 = arith.constant 0 : index
    %296 = vector.load %arg8[%c0_100, %c0_101] : memref<24x20xf32, #tpu.memory_space<vmem>>, vector<24x20xf32>
    %297 = vector.extract_strided_slice %296 {offsets = [1, 0], sizes = [23, 20], strides = [1, 1]} : vector<24x20xf32> to vector<23x20xf32>
    %298 = vector.extract_strided_slice %296 {offsets = [0, 0], sizes = [1, 20], strides = [1, 1]} : vector<24x20xf32> to vector<1x20xf32>
    %299 = tpu.concatenate %297, %298 in 0 : vector<23x20xf32>, vector<1x20xf32> -> vector<24x20xf32>
    %300 = vector.extract_strided_slice %296 {offsets = [23, 0], sizes = [1, 20], strides = [1, 1]} : vector<24x20xf32> to vector<1x20xf32>
    %301 = vector.extract_strided_slice %296 {offsets = [0, 0], sizes = [23, 20], strides = [1, 1]} : vector<24x20xf32> to vector<23x20xf32>
    %302 = tpu.concatenate %300, %301 in 0 : vector<1x20xf32>, vector<23x20xf32> -> vector<24x20xf32>
    %303 = arith.select %4, %299, %302 : vector<24x20xi1>, vector<24x20xf32>
    %304 = arith.mulf %12, %296 : vector<24x20xf32>
    %305 = arith.mulf %18, %303 : vector<24x20xf32>
    %306 = arith.addf %304, %305 : vector<24x20xf32>
    %307 = vector.extract_strided_slice %306 {offsets = [0, 1], sizes = [24, 19], strides = [1, 1]} : vector<24x20xf32> to vector<24x19xf32>
    %308 = vector.extract_strided_slice %306 {offsets = [0, 0], sizes = [24, 1], strides = [1, 1]} : vector<24x20xf32> to vector<24x1xf32>
    %309 = tpu.concatenate %307, %308 in 1 : vector<24x19xf32>, vector<24x1xf32> -> vector<24x20xf32>
    %310 = vector.extract_strided_slice %306 {offsets = [0, 19], sizes = [24, 1], strides = [1, 1]} : vector<24x20xf32> to vector<24x1xf32>
    %311 = vector.extract_strided_slice %306 {offsets = [0, 0], sizes = [24, 19], strides = [1, 1]} : vector<24x20xf32> to vector<24x19xf32>
    %312 = tpu.concatenate %310, %311 in 1 : vector<24x1xf32>, vector<24x19xf32> -> vector<24x20xf32>
    %313 = arith.select %9, %309, %312 : vector<24x20xi1>, vector<24x20xf32>
    %314 = arith.mulf %15, %306 : vector<24x20xf32>
    %315 = arith.mulf %21, %313 : vector<24x20xf32>
    %316 = arith.addf %314, %315 : vector<24x20xf32>
    %317 = vector.extract_strided_slice %316 {offsets = [0, 0], sizes = [24, 16], strides = [1, 1]} : vector<24x20xf32> to vector<24x16xf32>
    %318 = vector.extract_strided_slice %316 {offsets = [0, 1], sizes = [24, 16], strides = [1, 1]} : vector<24x20xf32> to vector<24x16xf32>
    %319 = vector.extract_strided_slice %316 {offsets = [0, 2], sizes = [24, 16], strides = [1, 1]} : vector<24x20xf32> to vector<24x16xf32>
    %320 = vector.extract_strided_slice %316 {offsets = [0, 3], sizes = [24, 16], strides = [1, 1]} : vector<24x20xf32> to vector<24x16xf32>
    %321 = vector.extract_strided_slice %316 {offsets = [0, 4], sizes = [24, 16], strides = [1, 1]} : vector<24x20xf32> to vector<24x16xf32>
    %c4_i32_102 = arith.constant 4 : i32
    %322 = arith.muli %arg1, %c4_i32_102 : i32
    %323 = arith.addi %322, %c1_i32_89 : i32
    %324 = vector.extract_strided_slice %317 {offsets = [0, 0], sizes = [16, 16], strides = [1, 1]} : vector<24x16xf32> to vector<16x16xf32>
    %c25_i32_103 = arith.constant 25 : i32
    %325 = arith.muli %323, %c25_i32_103 : i32
    %326 = arith.index_cast %325 : i32 to index
    %327 = memref.load %arg3[%326] : memref<100xf32, #tpu.memory_space<smem>>
    %328 = vector.broadcast %327 : f32 to vector<16x16xf32>
    %329 = arith.mulf %324, %328 : vector<16x16xf32>
    %330 = arith.index_cast %323 : i32 to index
    %331 = memref.load %arg4[%330] : memref<4xf32, #tpu.memory_space<smem>>
    %332 = vector.broadcast %331 : f32 to vector<16x16xf32>
    %333 = arith.addf %329, %332 : vector<16x16xf32>
    %334 = vector.extract_strided_slice %318 {offsets = [0, 0], sizes = [16, 16], strides = [1, 1]} : vector<24x16xf32> to vector<16x16xf32>
    %c25_i32_104 = arith.constant 25 : i32
    %335 = arith.muli %323, %c25_i32_104 : i32
    %c0_i32_105 = arith.constant 0 : i32
    %336 = arith.addi %335, %c0_i32_105 : i32
    %c1_i32_106 = arith.constant 1 : i32
    %337 = arith.addi %336, %c1_i32_106 : i32
    %338 = arith.index_cast %337 : i32 to index
    %339 = memref.load %arg3[%338] : memref<100xf32, #tpu.memory_space<smem>>
    %340 = vector.broadcast %339 : f32 to vector<16x16xf32>
    %341 = arith.mulf %334, %340 : vector<16x16xf32>
    %342 = arith.addf %333, %341 : vector<16x16xf32>
    %343 = vector.extract_strided_slice %319 {offsets = [0, 0], sizes = [16, 16], strides = [1, 1]} : vector<24x16xf32> to vector<16x16xf32>
    %c25_i32_107 = arith.constant 25 : i32
    %344 = arith.muli %323, %c25_i32_107 : i32
    %c0_i32_108 = arith.constant 0 : i32
    %345 = arith.addi %344, %c0_i32_108 : i32
    %c2_i32_109 = arith.constant 2 : i32
    %346 = arith.addi %345, %c2_i32_109 : i32
    %347 = arith.index_cast %346 : i32 to index
    %348 = memref.load %arg3[%347] : memref<100xf32, #tpu.memory_space<smem>>
    %349 = vector.broadcast %348 : f32 to vector<16x16xf32>
    %350 = arith.mulf %343, %349 : vector<16x16xf32>
    %351 = arith.addf %342, %350 : vector<16x16xf32>
    %352 = vector.extract_strided_slice %320 {offsets = [0, 0], sizes = [16, 16], strides = [1, 1]} : vector<24x16xf32> to vector<16x16xf32>
    %c25_i32_110 = arith.constant 25 : i32
    %353 = arith.muli %323, %c25_i32_110 : i32
    %c0_i32_111 = arith.constant 0 : i32
    %354 = arith.addi %353, %c0_i32_111 : i32
    %c3_i32_112 = arith.constant 3 : i32
    %355 = arith.addi %354, %c3_i32_112 : i32
    %356 = arith.index_cast %355 : i32 to index
    %357 = memref.load %arg3[%356] : memref<100xf32, #tpu.memory_space<smem>>
    %358 = vector.broadcast %357 : f32 to vector<16x16xf32>
    %359 = arith.mulf %352, %358 : vector<16x16xf32>
    %360 = arith.addf %351, %359 : vector<16x16xf32>
    %361 = vector.extract_strided_slice %321 {offsets = [0, 0], sizes = [16, 16], strides = [1, 1]} : vector<24x16xf32> to vector<16x16xf32>
    %c25_i32_113 = arith.constant 25 : i32
    %362 = arith.muli %323, %c25_i32_113 : i32
    %c0_i32_114 = arith.constant 0 : i32
    %363 = arith.addi %362, %c0_i32_114 : i32
    %c4_i32_115 = arith.constant 4 : i32
    %364 = arith.addi %363, %c4_i32_115 : i32
    %365 = arith.index_cast %364 : i32 to index
    %366 = memref.load %arg3[%365] : memref<100xf32, #tpu.memory_space<smem>>
    %367 = vector.broadcast %366 : f32 to vector<16x16xf32>
    %368 = arith.mulf %361, %367 : vector<16x16xf32>
    %369 = arith.addf %360, %368 : vector<16x16xf32>
    %370 = vector.extract_strided_slice %317 {offsets = [1, 0], sizes = [16, 16], strides = [1, 1]} : vector<24x16xf32> to vector<16x16xf32>
    %c25_i32_116 = arith.constant 25 : i32
    %371 = arith.muli %323, %c25_i32_116 : i32
    %c5_i32_117 = arith.constant 5 : i32
    %372 = arith.addi %371, %c5_i32_117 : i32
    %c0_i32_118 = arith.constant 0 : i32
    %373 = arith.addi %372, %c0_i32_118 : i32
    %374 = arith.index_cast %373 : i32 to index
    %375 = memref.load %arg3[%374] : memref<100xf32, #tpu.memory_space<smem>>
    %376 = vector.broadcast %375 : f32 to vector<16x16xf32>
    %377 = arith.mulf %370, %376 : vector<16x16xf32>
    %378 = arith.addf %369, %377 : vector<16x16xf32>
    %379 = vector.extract_strided_slice %318 {offsets = [1, 0], sizes = [16, 16], strides = [1, 1]} : vector<24x16xf32> to vector<16x16xf32>
    %c25_i32_119 = arith.constant 25 : i32
    %380 = arith.muli %323, %c25_i32_119 : i32
    %c5_i32_120 = arith.constant 5 : i32
    %381 = arith.addi %380, %c5_i32_120 : i32
    %c1_i32_121 = arith.constant 1 : i32
    %382 = arith.addi %381, %c1_i32_121 : i32
    %383 = arith.index_cast %382 : i32 to index
    %384 = memref.load %arg3[%383] : memref<100xf32, #tpu.memory_space<smem>>
    %385 = vector.broadcast %384 : f32 to vector<16x16xf32>
    %386 = arith.mulf %379, %385 : vector<16x16xf32>
    %387 = arith.addf %378, %386 : vector<16x16xf32>
    %388 = vector.extract_strided_slice %319 {offsets = [1, 0], sizes = [16, 16], strides = [1, 1]} : vector<24x16xf32> to vector<16x16xf32>
    %c25_i32_122 = arith.constant 25 : i32
    %389 = arith.muli %323, %c25_i32_122 : i32
    %c5_i32_123 = arith.constant 5 : i32
    %390 = arith.addi %389, %c5_i32_123 : i32
    %c2_i32_124 = arith.constant 2 : i32
    %391 = arith.addi %390, %c2_i32_124 : i32
    %392 = arith.index_cast %391 : i32 to index
    %393 = memref.load %arg3[%392] : memref<100xf32, #tpu.memory_space<smem>>
    %394 = vector.broadcast %393 : f32 to vector<16x16xf32>
    %395 = arith.mulf %388, %394 : vector<16x16xf32>
    %396 = arith.addf %387, %395 : vector<16x16xf32>
    %397 = vector.extract_strided_slice %320 {offsets = [1, 0], sizes = [16, 16], strides = [1, 1]} : vector<24x16xf32> to vector<16x16xf32>
    %c25_i32_125 = arith.constant 25 : i32
    %398 = arith.muli %323, %c25_i32_125 : i32
    %c5_i32_126 = arith.constant 5 : i32
    %399 = arith.addi %398, %c5_i32_126 : i32
    %c3_i32_127 = arith.constant 3 : i32
    %400 = arith.addi %399, %c3_i32_127 : i32
    %401 = arith.index_cast %400 : i32 to index
    %402 = memref.load %arg3[%401] : memref<100xf32, #tpu.memory_space<smem>>
    %403 = vector.broadcast %402 : f32 to vector<16x16xf32>
    %404 = arith.mulf %397, %403 : vector<16x16xf32>
    %405 = arith.addf %396, %404 : vector<16x16xf32>
    %406 = vector.extract_strided_slice %321 {offsets = [1, 0], sizes = [16, 16], strides = [1, 1]} : vector<24x16xf32> to vector<16x16xf32>
    %c25_i32_128 = arith.constant 25 : i32
    %407 = arith.muli %323, %c25_i32_128 : i32
    %c5_i32_129 = arith.constant 5 : i32
    %408 = arith.addi %407, %c5_i32_129 : i32
    %c4_i32_130 = arith.constant 4 : i32
    %409 = arith.addi %408, %c4_i32_130 : i32
    %410 = arith.index_cast %409 : i32 to index
    %411 = memref.load %arg3[%410] : memref<100xf32, #tpu.memory_space<smem>>
    %412 = vector.broadcast %411 : f32 to vector<16x16xf32>
    %413 = arith.mulf %406, %412 : vector<16x16xf32>
    %414 = arith.addf %405, %413 : vector<16x16xf32>
    %415 = vector.extract_strided_slice %317 {offsets = [2, 0], sizes = [16, 16], strides = [1, 1]} : vector<24x16xf32> to vector<16x16xf32>
    %c25_i32_131 = arith.constant 25 : i32
    %416 = arith.muli %323, %c25_i32_131 : i32
    %c10_i32_132 = arith.constant 10 : i32
    %417 = arith.addi %416, %c10_i32_132 : i32
    %c0_i32_133 = arith.constant 0 : i32
    %418 = arith.addi %417, %c0_i32_133 : i32
    %419 = arith.index_cast %418 : i32 to index
    %420 = memref.load %arg3[%419] : memref<100xf32, #tpu.memory_space<smem>>
    %421 = vector.broadcast %420 : f32 to vector<16x16xf32>
    %422 = arith.mulf %415, %421 : vector<16x16xf32>
    %423 = arith.addf %414, %422 : vector<16x16xf32>
    %424 = vector.extract_strided_slice %318 {offsets = [2, 0], sizes = [16, 16], strides = [1, 1]} : vector<24x16xf32> to vector<16x16xf32>
    %c25_i32_134 = arith.constant 25 : i32
    %425 = arith.muli %323, %c25_i32_134 : i32
    %c10_i32_135 = arith.constant 10 : i32
    %426 = arith.addi %425, %c10_i32_135 : i32
    %c1_i32_136 = arith.constant 1 : i32
    %427 = arith.addi %426, %c1_i32_136 : i32
    %428 = arith.index_cast %427 : i32 to index
    %429 = memref.load %arg3[%428] : memref<100xf32, #tpu.memory_space<smem>>
    %430 = vector.broadcast %429 : f32 to vector<16x16xf32>
    %431 = arith.mulf %424, %430 : vector<16x16xf32>
    %432 = arith.addf %423, %431 : vector<16x16xf32>
    %433 = vector.extract_strided_slice %319 {offsets = [2, 0], sizes = [16, 16], strides = [1, 1]} : vector<24x16xf32> to vector<16x16xf32>
    %c25_i32_137 = arith.constant 25 : i32
    %434 = arith.muli %323, %c25_i32_137 : i32
    %c10_i32_138 = arith.constant 10 : i32
    %435 = arith.addi %434, %c10_i32_138 : i32
    %c2_i32_139 = arith.constant 2 : i32
    %436 = arith.addi %435, %c2_i32_139 : i32
    %437 = arith.index_cast %436 : i32 to index
    %438 = memref.load %arg3[%437] : memref<100xf32, #tpu.memory_space<smem>>
    %439 = vector.broadcast %438 : f32 to vector<16x16xf32>
    %440 = arith.mulf %433, %439 : vector<16x16xf32>
    %441 = arith.addf %432, %440 : vector<16x16xf32>
    %442 = vector.extract_strided_slice %320 {offsets = [2, 0], sizes = [16, 16], strides = [1, 1]} : vector<24x16xf32> to vector<16x16xf32>
    %c25_i32_140 = arith.constant 25 : i32
    %443 = arith.muli %323, %c25_i32_140 : i32
    %c10_i32_141 = arith.constant 10 : i32
    %444 = arith.addi %443, %c10_i32_141 : i32
    %c3_i32_142 = arith.constant 3 : i32
    %445 = arith.addi %444, %c3_i32_142 : i32
    %446 = arith.index_cast %445 : i32 to index
    %447 = memref.load %arg3[%446] : memref<100xf32, #tpu.memory_space<smem>>
    %448 = vector.broadcast %447 : f32 to vector<16x16xf32>
    %449 = arith.mulf %442, %448 : vector<16x16xf32>
    %450 = arith.addf %441, %449 : vector<16x16xf32>
    %451 = vector.extract_strided_slice %321 {offsets = [2, 0], sizes = [16, 16], strides = [1, 1]} : vector<24x16xf32> to vector<16x16xf32>
    %c25_i32_143 = arith.constant 25 : i32
    %452 = arith.muli %323, %c25_i32_143 : i32
    %c10_i32_144 = arith.constant 10 : i32
    %453 = arith.addi %452, %c10_i32_144 : i32
    %c4_i32_145 = arith.constant 4 : i32
    %454 = arith.addi %453, %c4_i32_145 : i32
    %455 = arith.index_cast %454 : i32 to index
    %456 = memref.load %arg3[%455] : memref<100xf32, #tpu.memory_space<smem>>
    %457 = vector.broadcast %456 : f32 to vector<16x16xf32>
    %458 = arith.mulf %451, %457 : vector<16x16xf32>
    %459 = arith.addf %450, %458 : vector<16x16xf32>
    %460 = vector.extract_strided_slice %317 {offsets = [3, 0], sizes = [16, 16], strides = [1, 1]} : vector<24x16xf32> to vector<16x16xf32>
    %c25_i32_146 = arith.constant 25 : i32
    %461 = arith.muli %323, %c25_i32_146 : i32
    %c15_i32_147 = arith.constant 15 : i32
    %462 = arith.addi %461, %c15_i32_147 : i32
    %c0_i32_148 = arith.constant 0 : i32
    %463 = arith.addi %462, %c0_i32_148 : i32
    %464 = arith.index_cast %463 : i32 to index
    %465 = memref.load %arg3[%464] : memref<100xf32, #tpu.memory_space<smem>>
    %466 = vector.broadcast %465 : f32 to vector<16x16xf32>
    %467 = arith.mulf %460, %466 : vector<16x16xf32>
    %468 = arith.addf %459, %467 : vector<16x16xf32>
    %469 = vector.extract_strided_slice %318 {offsets = [3, 0], sizes = [16, 16], strides = [1, 1]} : vector<24x16xf32> to vector<16x16xf32>
    %c25_i32_149 = arith.constant 25 : i32
    %470 = arith.muli %323, %c25_i32_149 : i32
    %c15_i32_150 = arith.constant 15 : i32
    %471 = arith.addi %470, %c15_i32_150 : i32
    %c1_i32_151 = arith.constant 1 : i32
    %472 = arith.addi %471, %c1_i32_151 : i32
    %473 = arith.index_cast %472 : i32 to index
    %474 = memref.load %arg3[%473] : memref<100xf32, #tpu.memory_space<smem>>
    %475 = vector.broadcast %474 : f32 to vector<16x16xf32>
    %476 = arith.mulf %469, %475 : vector<16x16xf32>
    %477 = arith.addf %468, %476 : vector<16x16xf32>
    %478 = vector.extract_strided_slice %319 {offsets = [3, 0], sizes = [16, 16], strides = [1, 1]} : vector<24x16xf32> to vector<16x16xf32>
    %c25_i32_152 = arith.constant 25 : i32
    %479 = arith.muli %323, %c25_i32_152 : i32
    %c15_i32_153 = arith.constant 15 : i32
    %480 = arith.addi %479, %c15_i32_153 : i32
    %c2_i32_154 = arith.constant 2 : i32
    %481 = arith.addi %480, %c2_i32_154 : i32
    %482 = arith.index_cast %481 : i32 to index
    %483 = memref.load %arg3[%482] : memref<100xf32, #tpu.memory_space<smem>>
    %484 = vector.broadcast %483 : f32 to vector<16x16xf32>
    %485 = arith.mulf %478, %484 : vector<16x16xf32>
    %486 = arith.addf %477, %485 : vector<16x16xf32>
    %487 = vector.extract_strided_slice %320 {offsets = [3, 0], sizes = [16, 16], strides = [1, 1]} : vector<24x16xf32> to vector<16x16xf32>
    %c25_i32_155 = arith.constant 25 : i32
    %488 = arith.muli %323, %c25_i32_155 : i32
    %c15_i32_156 = arith.constant 15 : i32
    %489 = arith.addi %488, %c15_i32_156 : i32
    %c3_i32_157 = arith.constant 3 : i32
    %490 = arith.addi %489, %c3_i32_157 : i32
    %491 = arith.index_cast %490 : i32 to index
    %492 = memref.load %arg3[%491] : memref<100xf32, #tpu.memory_space<smem>>
    %493 = vector.broadcast %492 : f32 to vector<16x16xf32>
    %494 = arith.mulf %487, %493 : vector<16x16xf32>
    %495 = arith.addf %486, %494 : vector<16x16xf32>
    %496 = vector.extract_strided_slice %321 {offsets = [3, 0], sizes = [16, 16], strides = [1, 1]} : vector<24x16xf32> to vector<16x16xf32>
    %c25_i32_158 = arith.constant 25 : i32
    %497 = arith.muli %323, %c25_i32_158 : i32
    %c15_i32_159 = arith.constant 15 : i32
    %498 = arith.addi %497, %c15_i32_159 : i32
    %c4_i32_160 = arith.constant 4 : i32
    %499 = arith.addi %498, %c4_i32_160 : i32
    %500 = arith.index_cast %499 : i32 to index
    %501 = memref.load %arg3[%500] : memref<100xf32, #tpu.memory_space<smem>>
    %502 = vector.broadcast %501 : f32 to vector<16x16xf32>
    %503 = arith.mulf %496, %502 : vector<16x16xf32>
    %504 = arith.addf %495, %503 : vector<16x16xf32>
    %505 = vector.extract_strided_slice %317 {offsets = [4, 0], sizes = [16, 16], strides = [1, 1]} : vector<24x16xf32> to vector<16x16xf32>
    %c25_i32_161 = arith.constant 25 : i32
    %506 = arith.muli %323, %c25_i32_161 : i32
    %c20_i32_162 = arith.constant 20 : i32
    %507 = arith.addi %506, %c20_i32_162 : i32
    %c0_i32_163 = arith.constant 0 : i32
    %508 = arith.addi %507, %c0_i32_163 : i32
    %509 = arith.index_cast %508 : i32 to index
    %510 = memref.load %arg3[%509] : memref<100xf32, #tpu.memory_space<smem>>
    %511 = vector.broadcast %510 : f32 to vector<16x16xf32>
    %512 = arith.mulf %505, %511 : vector<16x16xf32>
    %513 = arith.addf %504, %512 : vector<16x16xf32>
    %514 = vector.extract_strided_slice %318 {offsets = [4, 0], sizes = [16, 16], strides = [1, 1]} : vector<24x16xf32> to vector<16x16xf32>
    %c25_i32_164 = arith.constant 25 : i32
    %515 = arith.muli %323, %c25_i32_164 : i32
    %c20_i32_165 = arith.constant 20 : i32
    %516 = arith.addi %515, %c20_i32_165 : i32
    %c1_i32_166 = arith.constant 1 : i32
    %517 = arith.addi %516, %c1_i32_166 : i32
    %518 = arith.index_cast %517 : i32 to index
    %519 = memref.load %arg3[%518] : memref<100xf32, #tpu.memory_space<smem>>
    %520 = vector.broadcast %519 : f32 to vector<16x16xf32>
    %521 = arith.mulf %514, %520 : vector<16x16xf32>
    %522 = arith.addf %513, %521 : vector<16x16xf32>
    %523 = vector.extract_strided_slice %319 {offsets = [4, 0], sizes = [16, 16], strides = [1, 1]} : vector<24x16xf32> to vector<16x16xf32>
    %c25_i32_167 = arith.constant 25 : i32
    %524 = arith.muli %323, %c25_i32_167 : i32
    %c20_i32_168 = arith.constant 20 : i32
    %525 = arith.addi %524, %c20_i32_168 : i32
    %c2_i32_169 = arith.constant 2 : i32
    %526 = arith.addi %525, %c2_i32_169 : i32
    %527 = arith.index_cast %526 : i32 to index
    %528 = memref.load %arg3[%527] : memref<100xf32, #tpu.memory_space<smem>>
    %529 = vector.broadcast %528 : f32 to vector<16x16xf32>
    %530 = arith.mulf %523, %529 : vector<16x16xf32>
    %531 = arith.addf %522, %530 : vector<16x16xf32>
    %532 = vector.extract_strided_slice %320 {offsets = [4, 0], sizes = [16, 16], strides = [1, 1]} : vector<24x16xf32> to vector<16x16xf32>
    %c25_i32_170 = arith.constant 25 : i32
    %533 = arith.muli %323, %c25_i32_170 : i32
    %c20_i32_171 = arith.constant 20 : i32
    %534 = arith.addi %533, %c20_i32_171 : i32
    %c3_i32_172 = arith.constant 3 : i32
    %535 = arith.addi %534, %c3_i32_172 : i32
    %536 = arith.index_cast %535 : i32 to index
    %537 = memref.load %arg3[%536] : memref<100xf32, #tpu.memory_space<smem>>
    %538 = vector.broadcast %537 : f32 to vector<16x16xf32>
    %539 = arith.mulf %532, %538 : vector<16x16xf32>
    %540 = arith.addf %531, %539 : vector<16x16xf32>
    %541 = vector.extract_strided_slice %321 {offsets = [4, 0], sizes = [16, 16], strides = [1, 1]} : vector<24x16xf32> to vector<16x16xf32>
    %c25_i32_173 = arith.constant 25 : i32
    %542 = arith.muli %323, %c25_i32_173 : i32
    %c20_i32_174 = arith.constant 20 : i32
    %543 = arith.addi %542, %c20_i32_174 : i32
    %c4_i32_175 = arith.constant 4 : i32
    %544 = arith.addi %543, %c4_i32_175 : i32
    %545 = arith.index_cast %544 : i32 to index
    %546 = memref.load %arg3[%545] : memref<100xf32, #tpu.memory_space<smem>>
    %547 = vector.broadcast %546 : f32 to vector<16x16xf32>
    %548 = arith.mulf %541, %547 : vector<16x16xf32>
    %549 = arith.addf %540, %548 : vector<16x16xf32>
    %c0_176 = arith.constant 0 : index
    %550 = arith.index_cast %c1_i32_89 : i32 to index
    %c0_177 = arith.constant 0 : index
    %c0_178 = arith.constant 0 : index
    %551 = vector.load %arg7[%c0_176, %550, %c0_177, %c0_178] : memref<1x4x16x16xf32, #tpu.memory_space<vmem>>, vector<1x1x16x16xf32>
    %552 = vector.shape_cast %551 : vector<1x1x16x16xf32> to vector<16x16xf32>
    %553 = vector.shape_cast %549 : vector<16x16xf32> to vector<1x1x16x16xf32>
    tpu.vector_store %arg7[%c0_176, %550, %c0_177, %c0_178], %553 {strides = array<i32>} : memref<1x4x16x16xf32, #tpu.memory_space<vmem>>, vector<1x1x16x16xf32>,
    %c2_i32_179 = arith.constant 2 : i32
    %c0_180 = arith.constant 0 : index
    %554 = arith.index_cast %c2_i32_179 : i32 to index
    %c0_181 = arith.constant 0 : index
    %c0_182 = arith.constant 0 : index
    %555 = vector.load %arg5[%c0_180, %554, %c0_181, %c0_182] : memref<1x4x16x20xf32, #tpu.memory_space<vmem>>, vector<1x1x16x20xf32>
    %556 = vector.shape_cast %555 : vector<1x1x16x20xf32> to vector<16x20xf32>
    %c0_183 = arith.constant 0 : index
    %c0_184 = arith.constant 0 : index
    %557 = vector.load %arg8[%c0_183, %c0_184] : memref<24x20xf32, #tpu.memory_space<vmem>>, vector<16x20xf32>
    tpu.vector_store %arg8[%c0_183, %c0_184], %556 {strides = array<i32>} : memref<24x20xf32, #tpu.memory_space<vmem>>, vector<16x20xf32>,
    %c0_185 = arith.constant 0 : index
    %558 = arith.index_cast %c2_i32_179 : i32 to index
    %c0_186 = arith.constant 0 : index
    %c0_187 = arith.constant 0 : index
    %559 = vector.load %arg6[%c0_185, %558, %c0_186, %c0_187] : memref<1x4x8x20xf32, #tpu.memory_space<vmem>>, vector<1x1x8x20xf32>
    %560 = vector.shape_cast %559 : vector<1x1x8x20xf32> to vector<8x20xf32>
    %c16_188 = arith.constant 16 : index
    %c0_189 = arith.constant 0 : index
    %561 = vector.load %arg8[%c16_188, %c0_189] : memref<24x20xf32, #tpu.memory_space<vmem>>, vector<8x20xf32>
    tpu.vector_store %arg8[%c16_188, %c0_189], %560 {strides = array<i32>} : memref<24x20xf32, #tpu.memory_space<vmem>>, vector<8x20xf32>,
    %c0_190 = arith.constant 0 : index
    %c0_191 = arith.constant 0 : index
    %562 = vector.load %arg8[%c0_190, %c0_191] : memref<24x20xf32, #tpu.memory_space<vmem>>, vector<24x20xf32>
    %563 = vector.extract_strided_slice %562 {offsets = [1, 0], sizes = [23, 20], strides = [1, 1]} : vector<24x20xf32> to vector<23x20xf32>
    %564 = vector.extract_strided_slice %562 {offsets = [0, 0], sizes = [1, 20], strides = [1, 1]} : vector<24x20xf32> to vector<1x20xf32>
    %565 = tpu.concatenate %563, %564 in 0 : vector<23x20xf32>, vector<1x20xf32> -> vector<24x20xf32>
    %566 = vector.extract_strided_slice %562 {offsets = [23, 0], sizes = [1, 20], strides = [1, 1]} : vector<24x20xf32> to vector<1x20xf32>
    %567 = vector.extract_strided_slice %562 {offsets = [0, 0], sizes = [23, 20], strides = [1, 1]} : vector<24x20xf32> to vector<23x20xf32>
    %568 = tpu.concatenate %566, %567 in 0 : vector<1x20xf32>, vector<23x20xf32> -> vector<24x20xf32>
    %569 = arith.select %4, %565, %568 : vector<24x20xi1>, vector<24x20xf32>
    %570 = arith.mulf %12, %562 : vector<24x20xf32>
    %571 = arith.mulf %18, %569 : vector<24x20xf32>
    %572 = arith.addf %570, %571 : vector<24x20xf32>
    %573 = vector.extract_strided_slice %572 {offsets = [0, 1], sizes = [24, 19], strides = [1, 1]} : vector<24x20xf32> to vector<24x19xf32>
    %574 = vector.extract_strided_slice %572 {offsets = [0, 0], sizes = [24, 1], strides = [1, 1]} : vector<24x20xf32> to vector<24x1xf32>
    %575 = tpu.concatenate %573, %574 in 1 : vector<24x19xf32>, vector<24x1xf32> -> vector<24x20xf32>
    %576 = vector.extract_strided_slice %572 {offsets = [0, 19], sizes = [24, 1], strides = [1, 1]} : vector<24x20xf32> to vector<24x1xf32>
    %577 = vector.extract_strided_slice %572 {offsets = [0, 0], sizes = [24, 19], strides = [1, 1]} : vector<24x20xf32> to vector<24x19xf32>
    %578 = tpu.concatenate %576, %577 in 1 : vector<24x1xf32>, vector<24x19xf32> -> vector<24x20xf32>
    %579 = arith.select %9, %575, %578 : vector<24x20xi1>, vector<24x20xf32>
    %580 = arith.mulf %15, %572 : vector<24x20xf32>
    %581 = arith.mulf %21, %579 : vector<24x20xf32>
    %582 = arith.addf %580, %581 : vector<24x20xf32>
    %583 = vector.extract_strided_slice %582 {offsets = [0, 0], sizes = [24, 16], strides = [1, 1]} : vector<24x20xf32> to vector<24x16xf32>
    %584 = vector.extract_strided_slice %582 {offsets = [0, 1], sizes = [24, 16], strides = [1, 1]} : vector<24x20xf32> to vector<24x16xf32>
    %585 = vector.extract_strided_slice %582 {offsets = [0, 2], sizes = [24, 16], strides = [1, 1]} : vector<24x20xf32> to vector<24x16xf32>
    %586 = vector.extract_strided_slice %582 {offsets = [0, 3], sizes = [24, 16], strides = [1, 1]} : vector<24x20xf32> to vector<24x16xf32>
    %587 = vector.extract_strided_slice %582 {offsets = [0, 4], sizes = [24, 16], strides = [1, 1]} : vector<24x20xf32> to vector<24x16xf32>
    %c4_i32_192 = arith.constant 4 : i32
    %588 = arith.muli %arg1, %c4_i32_192 : i32
    %589 = arith.addi %588, %c2_i32_179 : i32
    %590 = vector.extract_strided_slice %583 {offsets = [0, 0], sizes = [16, 16], strides = [1, 1]} : vector<24x16xf32> to vector<16x16xf32>
    %c25_i32_193 = arith.constant 25 : i32
    %591 = arith.muli %589, %c25_i32_193 : i32
    %592 = arith.index_cast %591 : i32 to index
    %593 = memref.load %arg3[%592] : memref<100xf32, #tpu.memory_space<smem>>
    %594 = vector.broadcast %593 : f32 to vector<16x16xf32>
    %595 = arith.mulf %590, %594 : vector<16x16xf32>
    %596 = arith.index_cast %589 : i32 to index
    %597 = memref.load %arg4[%596] : memref<4xf32, #tpu.memory_space<smem>>
    %598 = vector.broadcast %597 : f32 to vector<16x16xf32>
    %599 = arith.addf %595, %598 : vector<16x16xf32>
    %600 = vector.extract_strided_slice %584 {offsets = [0, 0], sizes = [16, 16], strides = [1, 1]} : vector<24x16xf32> to vector<16x16xf32>
    %c25_i32_194 = arith.constant 25 : i32
    %601 = arith.muli %589, %c25_i32_194 : i32
    %c0_i32_195 = arith.constant 0 : i32
    %602 = arith.addi %601, %c0_i32_195 : i32
    %c1_i32_196 = arith.constant 1 : i32
    %603 = arith.addi %602, %c1_i32_196 : i32
    %604 = arith.index_cast %603 : i32 to index
    %605 = memref.load %arg3[%604] : memref<100xf32, #tpu.memory_space<smem>>
    %606 = vector.broadcast %605 : f32 to vector<16x16xf32>
    %607 = arith.mulf %600, %606 : vector<16x16xf32>
    %608 = arith.addf %599, %607 : vector<16x16xf32>
    %609 = vector.extract_strided_slice %585 {offsets = [0, 0], sizes = [16, 16], strides = [1, 1]} : vector<24x16xf32> to vector<16x16xf32>
    %c25_i32_197 = arith.constant 25 : i32
    %610 = arith.muli %589, %c25_i32_197 : i32
    %c0_i32_198 = arith.constant 0 : i32
    %611 = arith.addi %610, %c0_i32_198 : i32
    %c2_i32_199 = arith.constant 2 : i32
    %612 = arith.addi %611, %c2_i32_199 : i32
    %613 = arith.index_cast %612 : i32 to index
    %614 = memref.load %arg3[%613] : memref<100xf32, #tpu.memory_space<smem>>
    %615 = vector.broadcast %614 : f32 to vector<16x16xf32>
    %616 = arith.mulf %609, %615 : vector<16x16xf32>
    %617 = arith.addf %608, %616 : vector<16x16xf32>
    %618 = vector.extract_strided_slice %586 {offsets = [0, 0], sizes = [16, 16], strides = [1, 1]} : vector<24x16xf32> to vector<16x16xf32>
    %c25_i32_200 = arith.constant 25 : i32
    %619 = arith.muli %589, %c25_i32_200 : i32
    %c0_i32_201 = arith.constant 0 : i32
    %620 = arith.addi %619, %c0_i32_201 : i32
    %c3_i32_202 = arith.constant 3 : i32
    %621 = arith.addi %620, %c3_i32_202 : i32
    %622 = arith.index_cast %621 : i32 to index
    %623 = memref.load %arg3[%622] : memref<100xf32, #tpu.memory_space<smem>>
    %624 = vector.broadcast %623 : f32 to vector<16x16xf32>
    %625 = arith.mulf %618, %624 : vector<16x16xf32>
    %626 = arith.addf %617, %625 : vector<16x16xf32>
    %627 = vector.extract_strided_slice %587 {offsets = [0, 0], sizes = [16, 16], strides = [1, 1]} : vector<24x16xf32> to vector<16x16xf32>
    %c25_i32_203 = arith.constant 25 : i32
    %628 = arith.muli %589, %c25_i32_203 : i32
    %c0_i32_204 = arith.constant 0 : i32
    %629 = arith.addi %628, %c0_i32_204 : i32
    %c4_i32_205 = arith.constant 4 : i32
    %630 = arith.addi %629, %c4_i32_205 : i32
    %631 = arith.index_cast %630 : i32 to index
    %632 = memref.load %arg3[%631] : memref<100xf32, #tpu.memory_space<smem>>
    %633 = vector.broadcast %632 : f32 to vector<16x16xf32>
    %634 = arith.mulf %627, %633 : vector<16x16xf32>
    %635 = arith.addf %626, %634 : vector<16x16xf32>
    %636 = vector.extract_strided_slice %583 {offsets = [1, 0], sizes = [16, 16], strides = [1, 1]} : vector<24x16xf32> to vector<16x16xf32>
    %c25_i32_206 = arith.constant 25 : i32
    %637 = arith.muli %589, %c25_i32_206 : i32
    %c5_i32_207 = arith.constant 5 : i32
    %638 = arith.addi %637, %c5_i32_207 : i32
    %c0_i32_208 = arith.constant 0 : i32
    %639 = arith.addi %638, %c0_i32_208 : i32
    %640 = arith.index_cast %639 : i32 to index
    %641 = memref.load %arg3[%640] : memref<100xf32, #tpu.memory_space<smem>>
    %642 = vector.broadcast %641 : f32 to vector<16x16xf32>
    %643 = arith.mulf %636, %642 : vector<16x16xf32>
    %644 = arith.addf %635, %643 : vector<16x16xf32>
    %645 = vector.extract_strided_slice %584 {offsets = [1, 0], sizes = [16, 16], strides = [1, 1]} : vector<24x16xf32> to vector<16x16xf32>
    %c25_i32_209 = arith.constant 25 : i32
    %646 = arith.muli %589, %c25_i32_209 : i32
    %c5_i32_210 = arith.constant 5 : i32
    %647 = arith.addi %646, %c5_i32_210 : i32
    %c1_i32_211 = arith.constant 1 : i32
    %648 = arith.addi %647, %c1_i32_211 : i32
    %649 = arith.index_cast %648 : i32 to index
    %650 = memref.load %arg3[%649] : memref<100xf32, #tpu.memory_space<smem>>
    %651 = vector.broadcast %650 : f32 to vector<16x16xf32>
    %652 = arith.mulf %645, %651 : vector<16x16xf32>
    %653 = arith.addf %644, %652 : vector<16x16xf32>
    %654 = vector.extract_strided_slice %585 {offsets = [1, 0], sizes = [16, 16], strides = [1, 1]} : vector<24x16xf32> to vector<16x16xf32>
    %c25_i32_212 = arith.constant 25 : i32
    %655 = arith.muli %589, %c25_i32_212 : i32
    %c5_i32_213 = arith.constant 5 : i32
    %656 = arith.addi %655, %c5_i32_213 : i32
    %c2_i32_214 = arith.constant 2 : i32
    %657 = arith.addi %656, %c2_i32_214 : i32
    %658 = arith.index_cast %657 : i32 to index
    %659 = memref.load %arg3[%658] : memref<100xf32, #tpu.memory_space<smem>>
    %660 = vector.broadcast %659 : f32 to vector<16x16xf32>
    %661 = arith.mulf %654, %660 : vector<16x16xf32>
    %662 = arith.addf %653, %661 : vector<16x16xf32>
    %663 = vector.extract_strided_slice %586 {offsets = [1, 0], sizes = [16, 16], strides = [1, 1]} : vector<24x16xf32> to vector<16x16xf32>
    %c25_i32_215 = arith.constant 25 : i32
    %664 = arith.muli %589, %c25_i32_215 : i32
    %c5_i32_216 = arith.constant 5 : i32
    %665 = arith.addi %664, %c5_i32_216 : i32
    %c3_i32_217 = arith.constant 3 : i32
    %666 = arith.addi %665, %c3_i32_217 : i32
    %667 = arith.index_cast %666 : i32 to index
    %668 = memref.load %arg3[%667] : memref<100xf32, #tpu.memory_space<smem>>
    %669 = vector.broadcast %668 : f32 to vector<16x16xf32>
    %670 = arith.mulf %663, %669 : vector<16x16xf32>
    %671 = arith.addf %662, %670 : vector<16x16xf32>
    %672 = vector.extract_strided_slice %587 {offsets = [1, 0], sizes = [16, 16], strides = [1, 1]} : vector<24x16xf32> to vector<16x16xf32>
    %c25_i32_218 = arith.constant 25 : i32
    %673 = arith.muli %589, %c25_i32_218 : i32
    %c5_i32_219 = arith.constant 5 : i32
    %674 = arith.addi %673, %c5_i32_219 : i32
    %c4_i32_220 = arith.constant 4 : i32
    %675 = arith.addi %674, %c4_i32_220 : i32
    %676 = arith.index_cast %675 : i32 to index
    %677 = memref.load %arg3[%676] : memref<100xf32, #tpu.memory_space<smem>>
    %678 = vector.broadcast %677 : f32 to vector<16x16xf32>
    %679 = arith.mulf %672, %678 : vector<16x16xf32>
    %680 = arith.addf %671, %679 : vector<16x16xf32>
    %681 = vector.extract_strided_slice %583 {offsets = [2, 0], sizes = [16, 16], strides = [1, 1]} : vector<24x16xf32> to vector<16x16xf32>
    %c25_i32_221 = arith.constant 25 : i32
    %682 = arith.muli %589, %c25_i32_221 : i32
    %c10_i32_222 = arith.constant 10 : i32
    %683 = arith.addi %682, %c10_i32_222 : i32
    %c0_i32_223 = arith.constant 0 : i32
    %684 = arith.addi %683, %c0_i32_223 : i32
    %685 = arith.index_cast %684 : i32 to index
    %686 = memref.load %arg3[%685] : memref<100xf32, #tpu.memory_space<smem>>
    %687 = vector.broadcast %686 : f32 to vector<16x16xf32>
    %688 = arith.mulf %681, %687 : vector<16x16xf32>
    %689 = arith.addf %680, %688 : vector<16x16xf32>
    %690 = vector.extract_strided_slice %584 {offsets = [2, 0], sizes = [16, 16], strides = [1, 1]} : vector<24x16xf32> to vector<16x16xf32>
    %c25_i32_224 = arith.constant 25 : i32
    %691 = arith.muli %589, %c25_i32_224 : i32
    %c10_i32_225 = arith.constant 10 : i32
    %692 = arith.addi %691, %c10_i32_225 : i32
    %c1_i32_226 = arith.constant 1 : i32
    %693 = arith.addi %692, %c1_i32_226 : i32
    %694 = arith.index_cast %693 : i32 to index
    %695 = memref.load %arg3[%694] : memref<100xf32, #tpu.memory_space<smem>>
    %696 = vector.broadcast %695 : f32 to vector<16x16xf32>
    %697 = arith.mulf %690, %696 : vector<16x16xf32>
    %698 = arith.addf %689, %697 : vector<16x16xf32>
    %699 = vector.extract_strided_slice %585 {offsets = [2, 0], sizes = [16, 16], strides = [1, 1]} : vector<24x16xf32> to vector<16x16xf32>
    %c25_i32_227 = arith.constant 25 : i32
    %700 = arith.muli %589, %c25_i32_227 : i32
    %c10_i32_228 = arith.constant 10 : i32
    %701 = arith.addi %700, %c10_i32_228 : i32
    %c2_i32_229 = arith.constant 2 : i32
    %702 = arith.addi %701, %c2_i32_229 : i32
    %703 = arith.index_cast %702 : i32 to index
    %704 = memref.load %arg3[%703] : memref<100xf32, #tpu.memory_space<smem>>
    %705 = vector.broadcast %704 : f32 to vector<16x16xf32>
    %706 = arith.mulf %699, %705 : vector<16x16xf32>
    %707 = arith.addf %698, %706 : vector<16x16xf32>
    %708 = vector.extract_strided_slice %586 {offsets = [2, 0], sizes = [16, 16], strides = [1, 1]} : vector<24x16xf32> to vector<16x16xf32>
    %c25_i32_230 = arith.constant 25 : i32
    %709 = arith.muli %589, %c25_i32_230 : i32
    %c10_i32_231 = arith.constant 10 : i32
    %710 = arith.addi %709, %c10_i32_231 : i32
    %c3_i32_232 = arith.constant 3 : i32
    %711 = arith.addi %710, %c3_i32_232 : i32
    %712 = arith.index_cast %711 : i32 to index
    %713 = memref.load %arg3[%712] : memref<100xf32, #tpu.memory_space<smem>>
    %714 = vector.broadcast %713 : f32 to vector<16x16xf32>
    %715 = arith.mulf %708, %714 : vector<16x16xf32>
    %716 = arith.addf %707, %715 : vector<16x16xf32>
    %717 = vector.extract_strided_slice %587 {offsets = [2, 0], sizes = [16, 16], strides = [1, 1]} : vector<24x16xf32> to vector<16x16xf32>
    %c25_i32_233 = arith.constant 25 : i32
    %718 = arith.muli %589, %c25_i32_233 : i32
    %c10_i32_234 = arith.constant 10 : i32
    %719 = arith.addi %718, %c10_i32_234 : i32
    %c4_i32_235 = arith.constant 4 : i32
    %720 = arith.addi %719, %c4_i32_235 : i32
    %721 = arith.index_cast %720 : i32 to index
    %722 = memref.load %arg3[%721] : memref<100xf32, #tpu.memory_space<smem>>
    %723 = vector.broadcast %722 : f32 to vector<16x16xf32>
    %724 = arith.mulf %717, %723 : vector<16x16xf32>
    %725 = arith.addf %716, %724 : vector<16x16xf32>
    %726 = vector.extract_strided_slice %583 {offsets = [3, 0], sizes = [16, 16], strides = [1, 1]} : vector<24x16xf32> to vector<16x16xf32>
    %c25_i32_236 = arith.constant 25 : i32
    %727 = arith.muli %589, %c25_i32_236 : i32
    %c15_i32_237 = arith.constant 15 : i32
    %728 = arith.addi %727, %c15_i32_237 : i32
    %c0_i32_238 = arith.constant 0 : i32
    %729 = arith.addi %728, %c0_i32_238 : i32
    %730 = arith.index_cast %729 : i32 to index
    %731 = memref.load %arg3[%730] : memref<100xf32, #tpu.memory_space<smem>>
    %732 = vector.broadcast %731 : f32 to vector<16x16xf32>
    %733 = arith.mulf %726, %732 : vector<16x16xf32>
    %734 = arith.addf %725, %733 : vector<16x16xf32>
    %735 = vector.extract_strided_slice %584 {offsets = [3, 0], sizes = [16, 16], strides = [1, 1]} : vector<24x16xf32> to vector<16x16xf32>
    %c25_i32_239 = arith.constant 25 : i32
    %736 = arith.muli %589, %c25_i32_239 : i32
    %c15_i32_240 = arith.constant 15 : i32
    %737 = arith.addi %736, %c15_i32_240 : i32
    %c1_i32_241 = arith.constant 1 : i32
    %738 = arith.addi %737, %c1_i32_241 : i32
    %739 = arith.index_cast %738 : i32 to index
    %740 = memref.load %arg3[%739] : memref<100xf32, #tpu.memory_space<smem>>
    %741 = vector.broadcast %740 : f32 to vector<16x16xf32>
    %742 = arith.mulf %735, %741 : vector<16x16xf32>
    %743 = arith.addf %734, %742 : vector<16x16xf32>
    %744 = vector.extract_strided_slice %585 {offsets = [3, 0], sizes = [16, 16], strides = [1, 1]} : vector<24x16xf32> to vector<16x16xf32>
    %c25_i32_242 = arith.constant 25 : i32
    %745 = arith.muli %589, %c25_i32_242 : i32
    %c15_i32_243 = arith.constant 15 : i32
    %746 = arith.addi %745, %c15_i32_243 : i32
    %c2_i32_244 = arith.constant 2 : i32
    %747 = arith.addi %746, %c2_i32_244 : i32
    %748 = arith.index_cast %747 : i32 to index
    %749 = memref.load %arg3[%748] : memref<100xf32, #tpu.memory_space<smem>>
    %750 = vector.broadcast %749 : f32 to vector<16x16xf32>
    %751 = arith.mulf %744, %750 : vector<16x16xf32>
    %752 = arith.addf %743, %751 : vector<16x16xf32>
    %753 = vector.extract_strided_slice %586 {offsets = [3, 0], sizes = [16, 16], strides = [1, 1]} : vector<24x16xf32> to vector<16x16xf32>
    %c25_i32_245 = arith.constant 25 : i32
    %754 = arith.muli %589, %c25_i32_245 : i32
    %c15_i32_246 = arith.constant 15 : i32
    %755 = arith.addi %754, %c15_i32_246 : i32
    %c3_i32_247 = arith.constant 3 : i32
    %756 = arith.addi %755, %c3_i32_247 : i32
    %757 = arith.index_cast %756 : i32 to index
    %758 = memref.load %arg3[%757] : memref<100xf32, #tpu.memory_space<smem>>
    %759 = vector.broadcast %758 : f32 to vector<16x16xf32>
    %760 = arith.mulf %753, %759 : vector<16x16xf32>
    %761 = arith.addf %752, %760 : vector<16x16xf32>
    %762 = vector.extract_strided_slice %587 {offsets = [3, 0], sizes = [16, 16], strides = [1, 1]} : vector<24x16xf32> to vector<16x16xf32>
    %c25_i32_248 = arith.constant 25 : i32
    %763 = arith.muli %589, %c25_i32_248 : i32
    %c15_i32_249 = arith.constant 15 : i32
    %764 = arith.addi %763, %c15_i32_249 : i32
    %c4_i32_250 = arith.constant 4 : i32
    %765 = arith.addi %764, %c4_i32_250 : i32
    %766 = arith.index_cast %765 : i32 to index
    %767 = memref.load %arg3[%766] : memref<100xf32, #tpu.memory_space<smem>>
    %768 = vector.broadcast %767 : f32 to vector<16x16xf32>
    %769 = arith.mulf %762, %768 : vector<16x16xf32>
    %770 = arith.addf %761, %769 : vector<16x16xf32>
    %771 = vector.extract_strided_slice %583 {offsets = [4, 0], sizes = [16, 16], strides = [1, 1]} : vector<24x16xf32> to vector<16x16xf32>
    %c25_i32_251 = arith.constant 25 : i32
    %772 = arith.muli %589, %c25_i32_251 : i32
    %c20_i32_252 = arith.constant 20 : i32
    %773 = arith.addi %772, %c20_i32_252 : i32
    %c0_i32_253 = arith.constant 0 : i32
    %774 = arith.addi %773, %c0_i32_253 : i32
    %775 = arith.index_cast %774 : i32 to index
    %776 = memref.load %arg3[%775] : memref<100xf32, #tpu.memory_space<smem>>
    %777 = vector.broadcast %776 : f32 to vector<16x16xf32>
    %778 = arith.mulf %771, %777 : vector<16x16xf32>
    %779 = arith.addf %770, %778 : vector<16x16xf32>
    %780 = vector.extract_strided_slice %584 {offsets = [4, 0], sizes = [16, 16], strides = [1, 1]} : vector<24x16xf32> to vector<16x16xf32>
    %c25_i32_254 = arith.constant 25 : i32
    %781 = arith.muli %589, %c25_i32_254 : i32
    %c20_i32_255 = arith.constant 20 : i32
    %782 = arith.addi %781, %c20_i32_255 : i32
    %c1_i32_256 = arith.constant 1 : i32
    %783 = arith.addi %782, %c1_i32_256 : i32
    %784 = arith.index_cast %783 : i32 to index
    %785 = memref.load %arg3[%784] : memref<100xf32, #tpu.memory_space<smem>>
    %786 = vector.broadcast %785 : f32 to vector<16x16xf32>
    %787 = arith.mulf %780, %786 : vector<16x16xf32>
    %788 = arith.addf %779, %787 : vector<16x16xf32>
    %789 = vector.extract_strided_slice %585 {offsets = [4, 0], sizes = [16, 16], strides = [1, 1]} : vector<24x16xf32> to vector<16x16xf32>
    %c25_i32_257 = arith.constant 25 : i32
    %790 = arith.muli %589, %c25_i32_257 : i32
    %c20_i32_258 = arith.constant 20 : i32
    %791 = arith.addi %790, %c20_i32_258 : i32
    %c2_i32_259 = arith.constant 2 : i32
    %792 = arith.addi %791, %c2_i32_259 : i32
    %793 = arith.index_cast %792 : i32 to index
    %794 = memref.load %arg3[%793] : memref<100xf32, #tpu.memory_space<smem>>
    %795 = vector.broadcast %794 : f32 to vector<16x16xf32>
    %796 = arith.mulf %789, %795 : vector<16x16xf32>
    %797 = arith.addf %788, %796 : vector<16x16xf32>
    %798 = vector.extract_strided_slice %586 {offsets = [4, 0], sizes = [16, 16], strides = [1, 1]} : vector<24x16xf32> to vector<16x16xf32>
    %c25_i32_260 = arith.constant 25 : i32
    %799 = arith.muli %589, %c25_i32_260 : i32
    %c20_i32_261 = arith.constant 20 : i32
    %800 = arith.addi %799, %c20_i32_261 : i32
    %c3_i32_262 = arith.constant 3 : i32
    %801 = arith.addi %800, %c3_i32_262 : i32
    %802 = arith.index_cast %801 : i32 to index
    %803 = memref.load %arg3[%802] : memref<100xf32, #tpu.memory_space<smem>>
    %804 = vector.broadcast %803 : f32 to vector<16x16xf32>
    %805 = arith.mulf %798, %804 : vector<16x16xf32>
    %806 = arith.addf %797, %805 : vector<16x16xf32>
    %807 = vector.extract_strided_slice %587 {offsets = [4, 0], sizes = [16, 16], strides = [1, 1]} : vector<24x16xf32> to vector<16x16xf32>
    %c25_i32_263 = arith.constant 25 : i32
    %808 = arith.muli %589, %c25_i32_263 : i32
    %c20_i32_264 = arith.constant 20 : i32
    %809 = arith.addi %808, %c20_i32_264 : i32
    %c4_i32_265 = arith.constant 4 : i32
    %810 = arith.addi %809, %c4_i32_265 : i32
    %811 = arith.index_cast %810 : i32 to index
    %812 = memref.load %arg3[%811] : memref<100xf32, #tpu.memory_space<smem>>
    %813 = vector.broadcast %812 : f32 to vector<16x16xf32>
    %814 = arith.mulf %807, %813 : vector<16x16xf32>
    %815 = arith.addf %806, %814 : vector<16x16xf32>
    %c0_266 = arith.constant 0 : index
    %816 = arith.index_cast %c2_i32_179 : i32 to index
    %c0_267 = arith.constant 0 : index
    %c0_268 = arith.constant 0 : index
    %817 = vector.load %arg7[%c0_266, %816, %c0_267, %c0_268] : memref<1x4x16x16xf32, #tpu.memory_space<vmem>>, vector<1x1x16x16xf32>
    %818 = vector.shape_cast %817 : vector<1x1x16x16xf32> to vector<16x16xf32>
    %819 = vector.shape_cast %815 : vector<16x16xf32> to vector<1x1x16x16xf32>
    tpu.vector_store %arg7[%c0_266, %816, %c0_267, %c0_268], %819 {strides = array<i32>} : memref<1x4x16x16xf32, #tpu.memory_space<vmem>>, vector<1x1x16x16xf32>,
    %c3_i32_269 = arith.constant 3 : i32
    %c0_270 = arith.constant 0 : index
    %820 = arith.index_cast %c3_i32_269 : i32 to index
    %c0_271 = arith.constant 0 : index
    %c0_272 = arith.constant 0 : index
    %821 = vector.load %arg5[%c0_270, %820, %c0_271, %c0_272] : memref<1x4x16x20xf32, #tpu.memory_space<vmem>>, vector<1x1x16x20xf32>
    %822 = vector.shape_cast %821 : vector<1x1x16x20xf32> to vector<16x20xf32>
    %c0_273 = arith.constant 0 : index
    %c0_274 = arith.constant 0 : index
    %823 = vector.load %arg8[%c0_273, %c0_274] : memref<24x20xf32, #tpu.memory_space<vmem>>, vector<16x20xf32>
    tpu.vector_store %arg8[%c0_273, %c0_274], %822 {strides = array<i32>} : memref<24x20xf32, #tpu.memory_space<vmem>>, vector<16x20xf32>,
    %c0_275 = arith.constant 0 : index
    %824 = arith.index_cast %c3_i32_269 : i32 to index
    %c0_276 = arith.constant 0 : index
    %c0_277 = arith.constant 0 : index
    %825 = vector.load %arg6[%c0_275, %824, %c0_276, %c0_277] : memref<1x4x8x20xf32, #tpu.memory_space<vmem>>, vector<1x1x8x20xf32>
    %826 = vector.shape_cast %825 : vector<1x1x8x20xf32> to vector<8x20xf32>
    %c16_278 = arith.constant 16 : index
    %c0_279 = arith.constant 0 : index
    %827 = vector.load %arg8[%c16_278, %c0_279] : memref<24x20xf32, #tpu.memory_space<vmem>>, vector<8x20xf32>
    tpu.vector_store %arg8[%c16_278, %c0_279], %826 {strides = array<i32>} : memref<24x20xf32, #tpu.memory_space<vmem>>, vector<8x20xf32>,
    %c0_280 = arith.constant 0 : index
    %c0_281 = arith.constant 0 : index
    %828 = vector.load %arg8[%c0_280, %c0_281] : memref<24x20xf32, #tpu.memory_space<vmem>>, vector<24x20xf32>
    %829 = vector.extract_strided_slice %828 {offsets = [1, 0], sizes = [23, 20], strides = [1, 1]} : vector<24x20xf32> to vector<23x20xf32>
    %830 = vector.extract_strided_slice %828 {offsets = [0, 0], sizes = [1, 20], strides = [1, 1]} : vector<24x20xf32> to vector<1x20xf32>
    %831 = tpu.concatenate %829, %830 in 0 : vector<23x20xf32>, vector<1x20xf32> -> vector<24x20xf32>
    %832 = vector.extract_strided_slice %828 {offsets = [23, 0], sizes = [1, 20], strides = [1, 1]} : vector<24x20xf32> to vector<1x20xf32>
    %833 = vector.extract_strided_slice %828 {offsets = [0, 0], sizes = [23, 20], strides = [1, 1]} : vector<24x20xf32> to vector<23x20xf32>
    %834 = tpu.concatenate %832, %833 in 0 : vector<1x20xf32>, vector<23x20xf32> -> vector<24x20xf32>
    %835 = arith.select %4, %831, %834 : vector<24x20xi1>, vector<24x20xf32>
    %836 = arith.mulf %12, %828 : vector<24x20xf32>
    %837 = arith.mulf %18, %835 : vector<24x20xf32>
    %838 = arith.addf %836, %837 : vector<24x20xf32>
    %839 = vector.extract_strided_slice %838 {offsets = [0, 1], sizes = [24, 19], strides = [1, 1]} : vector<24x20xf32> to vector<24x19xf32>
    %840 = vector.extract_strided_slice %838 {offsets = [0, 0], sizes = [24, 1], strides = [1, 1]} : vector<24x20xf32> to vector<24x1xf32>
    %841 = tpu.concatenate %839, %840 in 1 : vector<24x19xf32>, vector<24x1xf32> -> vector<24x20xf32>
    %842 = vector.extract_strided_slice %838 {offsets = [0, 19], sizes = [24, 1], strides = [1, 1]} : vector<24x20xf32> to vector<24x1xf32>
    %843 = vector.extract_strided_slice %838 {offsets = [0, 0], sizes = [24, 19], strides = [1, 1]} : vector<24x20xf32> to vector<24x19xf32>
    %844 = tpu.concatenate %842, %843 in 1 : vector<24x1xf32>, vector<24x19xf32> -> vector<24x20xf32>
    %845 = arith.select %9, %841, %844 : vector<24x20xi1>, vector<24x20xf32>
    %846 = arith.mulf %15, %838 : vector<24x20xf32>
    %847 = arith.mulf %21, %845 : vector<24x20xf32>
    %848 = arith.addf %846, %847 : vector<24x20xf32>
    %849 = vector.extract_strided_slice %848 {offsets = [0, 0], sizes = [24, 16], strides = [1, 1]} : vector<24x20xf32> to vector<24x16xf32>
    %850 = vector.extract_strided_slice %848 {offsets = [0, 1], sizes = [24, 16], strides = [1, 1]} : vector<24x20xf32> to vector<24x16xf32>
    %851 = vector.extract_strided_slice %848 {offsets = [0, 2], sizes = [24, 16], strides = [1, 1]} : vector<24x20xf32> to vector<24x16xf32>
    %852 = vector.extract_strided_slice %848 {offsets = [0, 3], sizes = [24, 16], strides = [1, 1]} : vector<24x20xf32> to vector<24x16xf32>
    %853 = vector.extract_strided_slice %848 {offsets = [0, 4], sizes = [24, 16], strides = [1, 1]} : vector<24x20xf32> to vector<24x16xf32>
    %c4_i32_282 = arith.constant 4 : i32
    %854 = arith.muli %arg1, %c4_i32_282 : i32
    %855 = arith.addi %854, %c3_i32_269 : i32
    %856 = vector.extract_strided_slice %849 {offsets = [0, 0], sizes = [16, 16], strides = [1, 1]} : vector<24x16xf32> to vector<16x16xf32>
    %c25_i32_283 = arith.constant 25 : i32
    %857 = arith.muli %855, %c25_i32_283 : i32
    %858 = arith.index_cast %857 : i32 to index
    %859 = memref.load %arg3[%858] : memref<100xf32, #tpu.memory_space<smem>>
    %860 = vector.broadcast %859 : f32 to vector<16x16xf32>
    %861 = arith.mulf %856, %860 : vector<16x16xf32>
    %862 = arith.index_cast %855 : i32 to index
    %863 = memref.load %arg4[%862] : memref<4xf32, #tpu.memory_space<smem>>
    %864 = vector.broadcast %863 : f32 to vector<16x16xf32>
    %865 = arith.addf %861, %864 : vector<16x16xf32>
    %866 = vector.extract_strided_slice %850 {offsets = [0, 0], sizes = [16, 16], strides = [1, 1]} : vector<24x16xf32> to vector<16x16xf32>
    %c25_i32_284 = arith.constant 25 : i32
    %867 = arith.muli %855, %c25_i32_284 : i32
    %c0_i32_285 = arith.constant 0 : i32
    %868 = arith.addi %867, %c0_i32_285 : i32
    %c1_i32_286 = arith.constant 1 : i32
    %869 = arith.addi %868, %c1_i32_286 : i32
    %870 = arith.index_cast %869 : i32 to index
    %871 = memref.load %arg3[%870] : memref<100xf32, #tpu.memory_space<smem>>
    %872 = vector.broadcast %871 : f32 to vector<16x16xf32>
    %873 = arith.mulf %866, %872 : vector<16x16xf32>
    %874 = arith.addf %865, %873 : vector<16x16xf32>
    %875 = vector.extract_strided_slice %851 {offsets = [0, 0], sizes = [16, 16], strides = [1, 1]} : vector<24x16xf32> to vector<16x16xf32>
    %c25_i32_287 = arith.constant 25 : i32
    %876 = arith.muli %855, %c25_i32_287 : i32
    %c0_i32_288 = arith.constant 0 : i32
    %877 = arith.addi %876, %c0_i32_288 : i32
    %c2_i32_289 = arith.constant 2 : i32
    %878 = arith.addi %877, %c2_i32_289 : i32
    %879 = arith.index_cast %878 : i32 to index
    %880 = memref.load %arg3[%879] : memref<100xf32, #tpu.memory_space<smem>>
    %881 = vector.broadcast %880 : f32 to vector<16x16xf32>
    %882 = arith.mulf %875, %881 : vector<16x16xf32>
    %883 = arith.addf %874, %882 : vector<16x16xf32>
    %884 = vector.extract_strided_slice %852 {offsets = [0, 0], sizes = [16, 16], strides = [1, 1]} : vector<24x16xf32> to vector<16x16xf32>
    %c25_i32_290 = arith.constant 25 : i32
    %885 = arith.muli %855, %c25_i32_290 : i32
    %c0_i32_291 = arith.constant 0 : i32
    %886 = arith.addi %885, %c0_i32_291 : i32
    %c3_i32_292 = arith.constant 3 : i32
    %887 = arith.addi %886, %c3_i32_292 : i32
    %888 = arith.index_cast %887 : i32 to index
    %889 = memref.load %arg3[%888] : memref<100xf32, #tpu.memory_space<smem>>
    %890 = vector.broadcast %889 : f32 to vector<16x16xf32>
    %891 = arith.mulf %884, %890 : vector<16x16xf32>
    %892 = arith.addf %883, %891 : vector<16x16xf32>
    %893 = vector.extract_strided_slice %853 {offsets = [0, 0], sizes = [16, 16], strides = [1, 1]} : vector<24x16xf32> to vector<16x16xf32>
    %c25_i32_293 = arith.constant 25 : i32
    %894 = arith.muli %855, %c25_i32_293 : i32
    %c0_i32_294 = arith.constant 0 : i32
    %895 = arith.addi %894, %c0_i32_294 : i32
    %c4_i32_295 = arith.constant 4 : i32
    %896 = arith.addi %895, %c4_i32_295 : i32
    %897 = arith.index_cast %896 : i32 to index
    %898 = memref.load %arg3[%897] : memref<100xf32, #tpu.memory_space<smem>>
    %899 = vector.broadcast %898 : f32 to vector<16x16xf32>
    %900 = arith.mulf %893, %899 : vector<16x16xf32>
    %901 = arith.addf %892, %900 : vector<16x16xf32>
    %902 = vector.extract_strided_slice %849 {offsets = [1, 0], sizes = [16, 16], strides = [1, 1]} : vector<24x16xf32> to vector<16x16xf32>
    %c25_i32_296 = arith.constant 25 : i32
    %903 = arith.muli %855, %c25_i32_296 : i32
    %c5_i32_297 = arith.constant 5 : i32
    %904 = arith.addi %903, %c5_i32_297 : i32
    %c0_i32_298 = arith.constant 0 : i32
    %905 = arith.addi %904, %c0_i32_298 : i32
    %906 = arith.index_cast %905 : i32 to index
    %907 = memref.load %arg3[%906] : memref<100xf32, #tpu.memory_space<smem>>
    %908 = vector.broadcast %907 : f32 to vector<16x16xf32>
    %909 = arith.mulf %902, %908 : vector<16x16xf32>
    %910 = arith.addf %901, %909 : vector<16x16xf32>
    %911 = vector.extract_strided_slice %850 {offsets = [1, 0], sizes = [16, 16], strides = [1, 1]} : vector<24x16xf32> to vector<16x16xf32>
    %c25_i32_299 = arith.constant 25 : i32
    %912 = arith.muli %855, %c25_i32_299 : i32
    %c5_i32_300 = arith.constant 5 : i32
    %913 = arith.addi %912, %c5_i32_300 : i32
    %c1_i32_301 = arith.constant 1 : i32
    %914 = arith.addi %913, %c1_i32_301 : i32
    %915 = arith.index_cast %914 : i32 to index
    %916 = memref.load %arg3[%915] : memref<100xf32, #tpu.memory_space<smem>>
    %917 = vector.broadcast %916 : f32 to vector<16x16xf32>
    %918 = arith.mulf %911, %917 : vector<16x16xf32>
    %919 = arith.addf %910, %918 : vector<16x16xf32>
    %920 = vector.extract_strided_slice %851 {offsets = [1, 0], sizes = [16, 16], strides = [1, 1]} : vector<24x16xf32> to vector<16x16xf32>
    %c25_i32_302 = arith.constant 25 : i32
    %921 = arith.muli %855, %c25_i32_302 : i32
    %c5_i32_303 = arith.constant 5 : i32
    %922 = arith.addi %921, %c5_i32_303 : i32
    %c2_i32_304 = arith.constant 2 : i32
    %923 = arith.addi %922, %c2_i32_304 : i32
    %924 = arith.index_cast %923 : i32 to index
    %925 = memref.load %arg3[%924] : memref<100xf32, #tpu.memory_space<smem>>
    %926 = vector.broadcast %925 : f32 to vector<16x16xf32>
    %927 = arith.mulf %920, %926 : vector<16x16xf32>
    %928 = arith.addf %919, %927 : vector<16x16xf32>
    %929 = vector.extract_strided_slice %852 {offsets = [1, 0], sizes = [16, 16], strides = [1, 1]} : vector<24x16xf32> to vector<16x16xf32>
    %c25_i32_305 = arith.constant 25 : i32
    %930 = arith.muli %855, %c25_i32_305 : i32
    %c5_i32_306 = arith.constant 5 : i32
    %931 = arith.addi %930, %c5_i32_306 : i32
    %c3_i32_307 = arith.constant 3 : i32
    %932 = arith.addi %931, %c3_i32_307 : i32
    %933 = arith.index_cast %932 : i32 to index
    %934 = memref.load %arg3[%933] : memref<100xf32, #tpu.memory_space<smem>>
    %935 = vector.broadcast %934 : f32 to vector<16x16xf32>
    %936 = arith.mulf %929, %935 : vector<16x16xf32>
    %937 = arith.addf %928, %936 : vector<16x16xf32>
    %938 = vector.extract_strided_slice %853 {offsets = [1, 0], sizes = [16, 16], strides = [1, 1]} : vector<24x16xf32> to vector<16x16xf32>
    %c25_i32_308 = arith.constant 25 : i32
    %939 = arith.muli %855, %c25_i32_308 : i32
    %c5_i32_309 = arith.constant 5 : i32
    %940 = arith.addi %939, %c5_i32_309 : i32
    %c4_i32_310 = arith.constant 4 : i32
    %941 = arith.addi %940, %c4_i32_310 : i32
    %942 = arith.index_cast %941 : i32 to index
    %943 = memref.load %arg3[%942] : memref<100xf32, #tpu.memory_space<smem>>
    %944 = vector.broadcast %943 : f32 to vector<16x16xf32>
    %945 = arith.mulf %938, %944 : vector<16x16xf32>
    %946 = arith.addf %937, %945 : vector<16x16xf32>
    %947 = vector.extract_strided_slice %849 {offsets = [2, 0], sizes = [16, 16], strides = [1, 1]} : vector<24x16xf32> to vector<16x16xf32>
    %c25_i32_311 = arith.constant 25 : i32
    %948 = arith.muli %855, %c25_i32_311 : i32
    %c10_i32_312 = arith.constant 10 : i32
    %949 = arith.addi %948, %c10_i32_312 : i32
    %c0_i32_313 = arith.constant 0 : i32
    %950 = arith.addi %949, %c0_i32_313 : i32
    %951 = arith.index_cast %950 : i32 to index
    %952 = memref.load %arg3[%951] : memref<100xf32, #tpu.memory_space<smem>>
    %953 = vector.broadcast %952 : f32 to vector<16x16xf32>
    %954 = arith.mulf %947, %953 : vector<16x16xf32>
    %955 = arith.addf %946, %954 : vector<16x16xf32>
    %956 = vector.extract_strided_slice %850 {offsets = [2, 0], sizes = [16, 16], strides = [1, 1]} : vector<24x16xf32> to vector<16x16xf32>
    %c25_i32_314 = arith.constant 25 : i32
    %957 = arith.muli %855, %c25_i32_314 : i32
    %c10_i32_315 = arith.constant 10 : i32
    %958 = arith.addi %957, %c10_i32_315 : i32
    %c1_i32_316 = arith.constant 1 : i32
    %959 = arith.addi %958, %c1_i32_316 : i32
    %960 = arith.index_cast %959 : i32 to index
    %961 = memref.load %arg3[%960] : memref<100xf32, #tpu.memory_space<smem>>
    %962 = vector.broadcast %961 : f32 to vector<16x16xf32>
    %963 = arith.mulf %956, %962 : vector<16x16xf32>
    %964 = arith.addf %955, %963 : vector<16x16xf32>
    %965 = vector.extract_strided_slice %851 {offsets = [2, 0], sizes = [16, 16], strides = [1, 1]} : vector<24x16xf32> to vector<16x16xf32>
    %c25_i32_317 = arith.constant 25 : i32
    %966 = arith.muli %855, %c25_i32_317 : i32
    %c10_i32_318 = arith.constant 10 : i32
    %967 = arith.addi %966, %c10_i32_318 : i32
    %c2_i32_319 = arith.constant 2 : i32
    %968 = arith.addi %967, %c2_i32_319 : i32
    %969 = arith.index_cast %968 : i32 to index
    %970 = memref.load %arg3[%969] : memref<100xf32, #tpu.memory_space<smem>>
    %971 = vector.broadcast %970 : f32 to vector<16x16xf32>
    %972 = arith.mulf %965, %971 : vector<16x16xf32>
    %973 = arith.addf %964, %972 : vector<16x16xf32>
    %974 = vector.extract_strided_slice %852 {offsets = [2, 0], sizes = [16, 16], strides = [1, 1]} : vector<24x16xf32> to vector<16x16xf32>
    %c25_i32_320 = arith.constant 25 : i32
    %975 = arith.muli %855, %c25_i32_320 : i32
    %c10_i32_321 = arith.constant 10 : i32
    %976 = arith.addi %975, %c10_i32_321 : i32
    %c3_i32_322 = arith.constant 3 : i32
    %977 = arith.addi %976, %c3_i32_322 : i32
    %978 = arith.index_cast %977 : i32 to index
    %979 = memref.load %arg3[%978] : memref<100xf32, #tpu.memory_space<smem>>
    %980 = vector.broadcast %979 : f32 to vector<16x16xf32>
    %981 = arith.mulf %974, %980 : vector<16x16xf32>
    %982 = arith.addf %973, %981 : vector<16x16xf32>
    %983 = vector.extract_strided_slice %853 {offsets = [2, 0], sizes = [16, 16], strides = [1, 1]} : vector<24x16xf32> to vector<16x16xf32>
    %c25_i32_323 = arith.constant 25 : i32
    %984 = arith.muli %855, %c25_i32_323 : i32
    %c10_i32_324 = arith.constant 10 : i32
    %985 = arith.addi %984, %c10_i32_324 : i32
    %c4_i32_325 = arith.constant 4 : i32
    %986 = arith.addi %985, %c4_i32_325 : i32
    %987 = arith.index_cast %986 : i32 to index
    %988 = memref.load %arg3[%987] : memref<100xf32, #tpu.memory_space<smem>>
    %989 = vector.broadcast %988 : f32 to vector<16x16xf32>
    %990 = arith.mulf %983, %989 : vector<16x16xf32>
    %991 = arith.addf %982, %990 : vector<16x16xf32>
    %992 = vector.extract_strided_slice %849 {offsets = [3, 0], sizes = [16, 16], strides = [1, 1]} : vector<24x16xf32> to vector<16x16xf32>
    %c25_i32_326 = arith.constant 25 : i32
    %993 = arith.muli %855, %c25_i32_326 : i32
    %c15_i32_327 = arith.constant 15 : i32
    %994 = arith.addi %993, %c15_i32_327 : i32
    %c0_i32_328 = arith.constant 0 : i32
    %995 = arith.addi %994, %c0_i32_328 : i32
    %996 = arith.index_cast %995 : i32 to index
    %997 = memref.load %arg3[%996] : memref<100xf32, #tpu.memory_space<smem>>
    %998 = vector.broadcast %997 : f32 to vector<16x16xf32>
    %999 = arith.mulf %992, %998 : vector<16x16xf32>
    %1000 = arith.addf %991, %999 : vector<16x16xf32>
    %1001 = vector.extract_strided_slice %850 {offsets = [3, 0], sizes = [16, 16], strides = [1, 1]} : vector<24x16xf32> to vector<16x16xf32>
    %c25_i32_329 = arith.constant 25 : i32
    %1002 = arith.muli %855, %c25_i32_329 : i32
    %c15_i32_330 = arith.constant 15 : i32
    %1003 = arith.addi %1002, %c15_i32_330 : i32
    %c1_i32_331 = arith.constant 1 : i32
    %1004 = arith.addi %1003, %c1_i32_331 : i32
    %1005 = arith.index_cast %1004 : i32 to index
    %1006 = memref.load %arg3[%1005] : memref<100xf32, #tpu.memory_space<smem>>
    %1007 = vector.broadcast %1006 : f32 to vector<16x16xf32>
    %1008 = arith.mulf %1001, %1007 : vector<16x16xf32>
    %1009 = arith.addf %1000, %1008 : vector<16x16xf32>
    %1010 = vector.extract_strided_slice %851 {offsets = [3, 0], sizes = [16, 16], strides = [1, 1]} : vector<24x16xf32> to vector<16x16xf32>
    %c25_i32_332 = arith.constant 25 : i32
    %1011 = arith.muli %855, %c25_i32_332 : i32
    %c15_i32_333 = arith.constant 15 : i32
    %1012 = arith.addi %1011, %c15_i32_333 : i32
    %c2_i32_334 = arith.constant 2 : i32
    %1013 = arith.addi %1012, %c2_i32_334 : i32
    %1014 = arith.index_cast %1013 : i32 to index
    %1015 = memref.load %arg3[%1014] : memref<100xf32, #tpu.memory_space<smem>>
    %1016 = vector.broadcast %1015 : f32 to vector<16x16xf32>
    %1017 = arith.mulf %1010, %1016 : vector<16x16xf32>
    %1018 = arith.addf %1009, %1017 : vector<16x16xf32>
    %1019 = vector.extract_strided_slice %852 {offsets = [3, 0], sizes = [16, 16], strides = [1, 1]} : vector<24x16xf32> to vector<16x16xf32>
    %c25_i32_335 = arith.constant 25 : i32
    %1020 = arith.muli %855, %c25_i32_335 : i32
    %c15_i32_336 = arith.constant 15 : i32
    %1021 = arith.addi %1020, %c15_i32_336 : i32
    %c3_i32_337 = arith.constant 3 : i32
    %1022 = arith.addi %1021, %c3_i32_337 : i32
    %1023 = arith.index_cast %1022 : i32 to index
    %1024 = memref.load %arg3[%1023] : memref<100xf32, #tpu.memory_space<smem>>
    %1025 = vector.broadcast %1024 : f32 to vector<16x16xf32>
    %1026 = arith.mulf %1019, %1025 : vector<16x16xf32>
    %1027 = arith.addf %1018, %1026 : vector<16x16xf32>
    %1028 = vector.extract_strided_slice %853 {offsets = [3, 0], sizes = [16, 16], strides = [1, 1]} : vector<24x16xf32> to vector<16x16xf32>
    %c25_i32_338 = arith.constant 25 : i32
    %1029 = arith.muli %855, %c25_i32_338 : i32
    %c15_i32_339 = arith.constant 15 : i32
    %1030 = arith.addi %1029, %c15_i32_339 : i32
    %c4_i32_340 = arith.constant 4 : i32
    %1031 = arith.addi %1030, %c4_i32_340 : i32
    %1032 = arith.index_cast %1031 : i32 to index
    %1033 = memref.load %arg3[%1032] : memref<100xf32, #tpu.memory_space<smem>>
    %1034 = vector.broadcast %1033 : f32 to vector<16x16xf32>
    %1035 = arith.mulf %1028, %1034 : vector<16x16xf32>
    %1036 = arith.addf %1027, %1035 : vector<16x16xf32>
    %1037 = vector.extract_strided_slice %849 {offsets = [4, 0], sizes = [16, 16], strides = [1, 1]} : vector<24x16xf32> to vector<16x16xf32>
    %c25_i32_341 = arith.constant 25 : i32
    %1038 = arith.muli %855, %c25_i32_341 : i32
    %c20_i32_342 = arith.constant 20 : i32
    %1039 = arith.addi %1038, %c20_i32_342 : i32
    %c0_i32_343 = arith.constant 0 : i32
    %1040 = arith.addi %1039, %c0_i32_343 : i32
    %1041 = arith.index_cast %1040 : i32 to index
    %1042 = memref.load %arg3[%1041] : memref<100xf32, #tpu.memory_space<smem>>
    %1043 = vector.broadcast %1042 : f32 to vector<16x16xf32>
    %1044 = arith.mulf %1037, %1043 : vector<16x16xf32>
    %1045 = arith.addf %1036, %1044 : vector<16x16xf32>
    %1046 = vector.extract_strided_slice %850 {offsets = [4, 0], sizes = [16, 16], strides = [1, 1]} : vector<24x16xf32> to vector<16x16xf32>
    %c25_i32_344 = arith.constant 25 : i32
    %1047 = arith.muli %855, %c25_i32_344 : i32
    %c20_i32_345 = arith.constant 20 : i32
    %1048 = arith.addi %1047, %c20_i32_345 : i32
    %c1_i32_346 = arith.constant 1 : i32
    %1049 = arith.addi %1048, %c1_i32_346 : i32
    %1050 = arith.index_cast %1049 : i32 to index
    %1051 = memref.load %arg3[%1050] : memref<100xf32, #tpu.memory_space<smem>>
    %1052 = vector.broadcast %1051 : f32 to vector<16x16xf32>
    %1053 = arith.mulf %1046, %1052 : vector<16x16xf32>
    %1054 = arith.addf %1045, %1053 : vector<16x16xf32>
    %1055 = vector.extract_strided_slice %851 {offsets = [4, 0], sizes = [16, 16], strides = [1, 1]} : vector<24x16xf32> to vector<16x16xf32>
    %c25_i32_347 = arith.constant 25 : i32
    %1056 = arith.muli %855, %c25_i32_347 : i32
    %c20_i32_348 = arith.constant 20 : i32
    %1057 = arith.addi %1056, %c20_i32_348 : i32
    %c2_i32_349 = arith.constant 2 : i32
    %1058 = arith.addi %1057, %c2_i32_349 : i32
    %1059 = arith.index_cast %1058 : i32 to index
    %1060 = memref.load %arg3[%1059] : memref<100xf32, #tpu.memory_space<smem>>
    %1061 = vector.broadcast %1060 : f32 to vector<16x16xf32>
    %1062 = arith.mulf %1055, %1061 : vector<16x16xf32>
    %1063 = arith.addf %1054, %1062 : vector<16x16xf32>
    %1064 = vector.extract_strided_slice %852 {offsets = [4, 0], sizes = [16, 16], strides = [1, 1]} : vector<24x16xf32> to vector<16x16xf32>
    %c25_i32_350 = arith.constant 25 : i32
    %1065 = arith.muli %855, %c25_i32_350 : i32
    %c20_i32_351 = arith.constant 20 : i32
    %1066 = arith.addi %1065, %c20_i32_351 : i32
    %c3_i32_352 = arith.constant 3 : i32
    %1067 = arith.addi %1066, %c3_i32_352 : i32
    %1068 = arith.index_cast %1067 : i32 to index
    %1069 = memref.load %arg3[%1068] : memref<100xf32, #tpu.memory_space<smem>>
    %1070 = vector.broadcast %1069 : f32 to vector<16x16xf32>
    %1071 = arith.mulf %1064, %1070 : vector<16x16xf32>
    %1072 = arith.addf %1063, %1071 : vector<16x16xf32>
    %1073 = vector.extract_strided_slice %853 {offsets = [4, 0], sizes = [16, 16], strides = [1, 1]} : vector<24x16xf32> to vector<16x16xf32>
    %c25_i32_353 = arith.constant 25 : i32
    %1074 = arith.muli %855, %c25_i32_353 : i32
    %c20_i32_354 = arith.constant 20 : i32
    %1075 = arith.addi %1074, %c20_i32_354 : i32
    %c4_i32_355 = arith.constant 4 : i32
    %1076 = arith.addi %1075, %c4_i32_355 : i32
    %1077 = arith.index_cast %1076 : i32 to index
    %1078 = memref.load %arg3[%1077] : memref<100xf32, #tpu.memory_space<smem>>
    %1079 = vector.broadcast %1078 : f32 to vector<16x16xf32>
    %1080 = arith.mulf %1073, %1079 : vector<16x16xf32>
    %1081 = arith.addf %1072, %1080 : vector<16x16xf32>
    %c0_356 = arith.constant 0 : index
    %1082 = arith.index_cast %c3_i32_269 : i32 to index
    %c0_357 = arith.constant 0 : index
    %c0_358 = arith.constant 0 : index
    %1083 = vector.load %arg7[%c0_356, %1082, %c0_357, %c0_358] : memref<1x4x16x16xf32, #tpu.memory_space<vmem>>, vector<1x1x16x16xf32>
    %1084 = vector.shape_cast %1083 : vector<1x1x16x16xf32> to vector<16x16xf32>
    %1085 = vector.shape_cast %1081 : vector<16x16xf32> to vector<1x1x16x16xf32>
    tpu.vector_store %arg7[%c0_356, %1082, %c0_357, %c0_358], %1085 {strides = array<i32>} : memref<1x4x16x16xf32, #tpu.memory_space<vmem>>, vector<1x1x16x16xf32>,
    %c4_i32_359 = arith.constant 4 : i32
    return
  }
  func.func @transform_0(%arg0: i32, %arg1: i32, %arg2: i32) -> i32 {
    %c0_i32 = arith.constant 0 : i32
    %c0_i32_0 = arith.constant 0 : i32
    return %c0_i32 : i32
  }
  func.func @transform_1(%arg0: i32, %arg1: i32, %arg2: i32) -> i32 {
    %c0_i32 = arith.constant 0 : i32
    %c0_i32_0 = arith.constant 0 : i32
    return %c0_i32 : i32
  }
  func.func @transform_2(%arg0: i32, %arg1: i32, %arg2: i32) -> (i32, i32, i32, i32) {
    %c0_i32 = arith.constant 0 : i32
    %c0_i32_0 = arith.constant 0 : i32
    return %arg0, %arg1, %arg2, %c0_i32 : i32, i32, i32, i32
  }
  func.func @transform_3(%arg0: i32, %arg1: i32, %arg2: i32) -> (i32, i32, i32, i32) {
    %c1_i32 = arith.constant 1 : i32
    %0 = arith.addi %arg2, %c1_i32 : i32
    %c2_i32 = arith.constant 2 : i32
    %1 = arith.muli %0, %c2_i32 : i32
    %c0_i32 = arith.constant 0 : i32
    %c0_i32_0 = arith.constant 0 : i32
    return %arg0, %arg1, %1, %c0_i32 : i32, i32, i32, i32
  }
  func.func @transform_4(%arg0: i32, %arg1: i32, %arg2: i32) -> (i32, i32, i32, i32) {
    %c0_i32 = arith.constant 0 : i32
    %c0_i32_0 = arith.constant 0 : i32
    return %arg0, %arg1, %arg2, %c0_i32 : i32, i32, i32, i32
  }
}

</mosaic_0001>

<bundles_post_ra>
// kernel: wtconv2d_forward.1
= control target key start
LH: loop header
LB: loop body
LE: loop exit
PB: predicated region body
PF: predicated region fallthrough
CT: control target
= control target key end

     0   :  { %s5757_s0 = inlined_call_operand.vmem [shape: f32[100], index: 0, kind: input, shape index: {}]   ;;  %s5758_s1 = inlined_call_operand.vmem [shape: f32[4], index: 1, kind: input, shape index: {}]   ;;  %s5759_s2 = inlined_call_operand.vmem [shape: f32[2,4,24,20], index: 2, kind: input, shape index: {}, may-alias: {2,3}]   ;;  %s5760_s3 = inlined_call_operand.vmem [shape: f32[2,4,24,20], index: 3, kind: input, shape index: {}, may-alias: {2,3}]   ;;  %s5761_s4 = inlined_call_operand.hbm [shape: f32[2,4,16,16], index: 4, kind: output, shape index: {}]  }
   0x1   :  { %5798 = sst [smem:[#allocation32_spill]] %s5757_s0 }
   0x2   :  { %5799 = sst [smem:[#allocation33_spill]] %s5758_s1 }
   0x3   :  { %5800 = sst [smem:[#allocation34_spill]] %s5759_s2 }
   0x4   :  { %5801 = sst [smem:[#allocation35_spill]] %s5760_s3 }
   0x5   :  { %5802 = sst [smem:[#allocation36_spill]] %s5761_s4 }
   0x6   :  { %9 = vsyncpa [#allocation5], 0 }
   0x7   :  { %10 = vsyncpa [#allocation7], 0 }
   0x8   :  { %11 = vsyncpa [#allocation4], 0 }
   0x9   :  { %13 = vsyncpa [#allocation4 + $0x1], 0  ;;  %s3562_s15 = smov 0   ;;  %s3564_s16 = smov 0  }
   0xa   :  { %s3566_s17 = smov 0   ;;  %s3568_s18 = smov 0  }
   0xb   :  { %s3570_s19 = smov 0   ;;  %s3572_s20 = smov 0  }
   0xc LB: > { %5803 = sst [smem:[#allocation14_spill]] %s3499_s15  ;;  %s3118_s21 = sadd.s32 4294967295, %s3519_s20   ;;  %s3519_s20 = sphi %s3572_s20, %s19_s20   ;;  %s3515_s19 = sphi %s3570_s19, %s5885_s19   ;;  %s3511_s18 = sphi %s3568_s18, %s5884_s18   ;;  %s3507_s17 = sphi %s3566_s17, %s5883_s17   ;;  %s3503_s16 = sphi %s3564_s16, %s5882_s16   ;;  %s3499_s15 = sphi %s3562_s15, %s5881_s15  }
   0xd   : > { %5804 = sst [smem:[#allocation15_spill]] %s3503_s16  ;;  %s3119_s22 = sadd.s32 4294967294, %s3519_s20  }
   0xe   : > { %5805 = sst [smem:[#allocation16_spill]] %s3507_s17  ;;  %s38_s23 = sadd.s32 1, %s3515_s19 }
   0xf   : > { %5806 = sst [smem:[#allocation17_spill]] %s3511_s18  ;;  %s91_s24 = sadd.s32 1, %s3507_s17 }
  0x10   : > { %5807 = sst [smem:[#allocation18_spill]] %s3515_s19  ;;  %p40_p0 = scmp.ge.s32.totalorder %s38_s23, 2 }
  0x11   : > { %5808 = sst [smem:[#allocation19_spill]] %s3519_s20  ;;  %p98_p1 = scmp.ne.s32.totalorder %s3507_s17, %s3503_s16 }
  0x12   : > { %p99_p2 = scmp.eq.s32.totalorder %s3519_s20, 0  ;;  %p166_p3 = scmp.eq.s32.totalorder %s3118_s21, 1 }
  0x13   : > { %s5887_s23 = smov (%p40_p0, %s38_s23), 0  ;;  %p171_p6 = scmp.ne.s32.totalorder %s3503_s16, %s3499_s15 }
  0x14   : > { %5809 = sst [smem:[#allocation20_spill]] %s5887_s23  ;;  %p3601_p4 = por %p99_p2, %p98_p1 }
  0x15   : > { %p3605_p5 = por %p166_p3, %p98_p1  ;;  %s84_s27 = ssub.s32 %s3515_s19, %s5887_s23 }
  0x16   : > { %s5810_s25 = scalar_select %p3601_p4, 1, 0 }
  0x17   : > { %s5811_s26 = scalar_select %p3605_p5, 1, 0 }
  0x18   : > { %p89_p7 = scmp.eq.s32.totalorder %s84_s27, 0  ;;  %p172_p8 = scmp.eq.s32.totalorder %s3119_s22, 1 }
  0x19   : > { %5812 = sst [smem:[#allocation21_spill]] %s5811_s26  ;;  %p3120_p9 = scmp.ge.s32.totalorder %s3519_s20, 1 }
  0x1a   : > { %p179_p10 = scmp.lt.s32.totalorder %s3519_s20, 3  ;;  %p3618_p11 = por %p172_p8, %p171_p6 }
  0x1b   : > { %s3616_s28 = scalar_select %p89_p7, %s3507_s17, %s91_s24  }
  0x1c   : > { %s5814_s29 = scalar_select %p3618_p11, 1, 0 }
  0x1d   : > { %5813 = sst [smem:[#allocation22_spill]] %s3616_s28  ;;  %p3622_p12 = pnand %p3120_p9, %p179_p10 }
  0x1e   : > { %5815 = sst [smem:[#allocation23_spill]] %s5814_s29  ;;  %p3626_p13 = scmp.eq.s32.totalorder %s3118_s21, 0 }
  0x1f   : > { %s5816_s30 = scalar_select %p3622_p12, 1, 0 }
  0x20   : > { %s5817_s5 = scalar_select %p3626_p13, 1, 0 }
  0x21   : > { %p3280_p0 = pneg %p3622_p12  ;;  %s5818_s0 = sld [smem:[#allocation32_spill]] }
  0x22   : > { %s5820_s1 = sld [smem:[#allocation33_spill]] }
  0x23   : > { %p3637_p1 = pnand %p3626_p13, %p3280_p0 }
  0x25   : > { %p3389_p3 = pneg %p3637_p1 }
  0x27   : > { %s192_s8 = sshll.u32 %s5818_s0, 4  ;;  %s193_s8 = int_to_ptr.vmem [resolvable:$true] %s192_s8 }
  0x28   : > { %s203_s12 = sshll.u32 %s5820_s1, 4  ;;  %s3387_s13 = scalar_lea.vmem %s193_s8, 16  ;;  %s204_s12 = int_to_ptr.vmem [resolvable:$true] %s203_s12 }
  0x29   : > { %p3388_p2 = scmp.ne.s32.totalorder %s193_s8, %s3387_s13  ;;  %p3395_p8 = scmp.lt.s32.totalorder %s193_s8, %s193_s8 }
  0x2a   : > { %p3396_p9 = scmp.lt.s32.totalorder %s3387_s13, %s3387_s13 }
  0x2b   : > { %p3390_p6 = pnand %p3389_p3, %p3388_p2 }
  0x2c   : > { %p3397_p10 = por %p3396_p9, %p3395_p8 }
  0x2d   : > { %p3391_p7 = pneg %p3390_p6 }
  0x2f   : > { %p3398_p11 = pnand %p3397_p10, %p3391_p7 }
  0x31   : > { %3401 = shalt.err (!%p3398_p11)
}
  0x32   : > { %s3525_s14 = smov [#allocation3]   ;;  %s3402_s21 = scalar_lea.vmem %s204_s12, 16 }
  0x33   : > { %3283 = dma.vmem_to_smem (!%p3637_p1), %s193_s8, 16, %s3525_s14, [#allocation5]  }
  0x34   : > { %p3403_p0 = scmp.ne.s32.totalorder %s204_s12, %s3402_s21  ;;  %p3410_p12 = scmp.lt.s32.totalorder %s204_s12, %s204_s12 }
  0x35   : > { %p3411_p4 = scmp.lt.s32.totalorder %s3402_s21, %s3402_s21 }
  0x36   : > { %p3405_p5 = pnand %p3403_p0, %p3389_p3 }
  0x37   : > { %p3412_p2 = por %p3411_p4, %p3410_p12 }
  0x38   : > { %p3406_p13 = pneg %p3405_p5 }
  0x3a   : > { %p3413_p6 = pnand %p3412_p2, %p3406_p13 }
  0x3c   : > { %3416 = shalt.err (!%p3413_p6)
}
  0x3d   : > { %s3526_s22 = smov [#allocation6]   ;;  %p3123_p11 = scmp.ge.s32.totalorder %s3519_s20, 2 }
  0x3e   : > { %3286 = dma.vmem_to_smem (!%p3637_p1), %s204_s12, 16, %s3526_s22, [#allocation7]  }
  0x3f   : > { %210 = sbr.rel (%p3123_p11) target bundleno = 102 (0x66), region = 24  ;;  %p5821_p7 = scmp.ne.s32.totalorder (!%p3123_p11), %s5810_s25, 0 }
  0x46   : > { %213 = sbr.rel (!%p5821_p7) target bundleno = 89 (0x59), region = 28  ;;  %s215_s24 = sand.u32 (%p5821_p7), 1, %s3507_s17  }
  0x47   : > { %s3269_s27 = smul.u32 (%p5821_p7), 96, %s3515_s19  ;;  %s3124_s6 = sshll.u32 (%p5821_p7), %s215_s24, 6 }
  0x48   : > { %s5822_s2 = sld [smem:[#allocation34_spill]] (%p5821_p7)  ;;  %s217_s11 = scalar_lea.vmem (%p5821_p7), [#allocation8], %s3124_s6  }
  0x49   : > { %s3521_s9 = smov (%p5821_p7), 0  }
  0x4e   : > { %s230_s10 = scalar_lea.vmem %s5822_s2, %s3269_s27  }
  0x4f LB: >> { %v315_v0 = vld [vmem:[%s230_s10] sm:$0xff]  ;;  %v317_v1 = vld [vmem:[%s230_s10 + $0x8] sm:$0xff]  ;;  %v319_v2 = vld [vmem:[%s230_s10 + $0x18] sm:$0xff]  ;;  %s309_s9 = sadd.s32 1, %s3523_s9   ;;  %s3523_s9 = sphi %s3521_s9, %s309_s9  }
  0x50   : >> { %316 = vst [vmem:[%s217_s11] sm:$0xff] %v315_v0  ;;  %318 = vst [vmem:[%s217_s11 + $0x8] sm:$0xff] %v317_v1  ;;  %v321_v3 = vld [vmem:[%s230_s10 + $0x20] sm:$0xff]  ;;  %v323_v4 = vld [vmem:[%s230_s10 + $0x30] sm:$0xff]  ;;  %p308_p4 = scmp.ge.s32.totalorder %s309_s9, 1 }
  0x51   : >> { %320 = vst [vmem:[%s217_s11 + $0x10] sm:$0xff] %v319_v2  ;;  %v325_v5 = vld [vmem:[%s230_s10 + $0x38] sm:$0xff]  ;;  %322 = vst [vmem:[%s217_s11 + $0x18] sm:$0xff] %v321_v3  ;;  %v327_v6 = vld [vmem:[%s230_s10 + $0x48] sm:$0xff] }
  0x52   : >> { %324 = vst [vmem:[%s217_s11 + $0x20] sm:$0xff] %v323_v4  ;;  %326 = vst [vmem:[%s217_s11 + $0x28] sm:$0xff] %v325_v5  ;;  %v329_v7 = vld [vmem:[%s230_s10 + $0x50] sm:$0xff]  ;;  %311 = sbr.rel (!%p308_p4) target bundleno = 79 (0x4f), region = 200 }
  0x53   : >> { %328 = vst [vmem:[%s217_s11 + $0x30] sm:$0xff] %v327_v6  ;;  %330 = vst [vmem:[%s217_s11 + $0x38] sm:$0xff] %v329_v7 }
  0x59 PF: > { %p5823_p5 = scmp.ne.s32.totalorder %s5810_s25, 0 }
  0x5a   : > { %s376_s12 = sand.u32 (%p5823_p5), 1, %s3507_s17   ;;  %s3135_s13 = smul.u32 (%p5823_p5), 96, %s3515_s19 }
  0x5b   : > { %374 = sbr.rel (!%p5823_p5) target bundleno = 102 (0x66), region = 80  ;;  %s3134_s14 = sshll.u32 (%p5823_p5), %s376_s12, 5 }
  0x5c   : > { %s5824_s3 = sld [smem:[#allocation35_spill]] (%p5823_p5)  ;;  %s378_s27 = scalar_lea.vmem (%p5823_p5), [#allocation9], %s3134_s14 }
  0x62   : > { %s3004_s24 = scalar_lea.vmem %s5824_s3, %s3135_s13 }
  0x63   : > { %v3136_v8 = vld [vmem:[%s3004_s24 + $0x10] sm:$0xff]  ;;  %v3137_v9 = vld [vmem:[%s3004_s24 + $0x28] sm:$0xff]  ;;  %v3138_v10 = vld [vmem:[%s3004_s24 + $0x40] sm:$0xff] }
  0x64   : > { %422 = vst [vmem:[%s378_s27] sm:$0xff] %v3136_v8  ;;  %424 = vst [vmem:[%s378_s27 + $0x8] sm:$0xff] %v3137_v9  ;;  %v3139_v11 = vld [vmem:[%s3004_s24 + $0x58] sm:$0xff] }
  0x65   : > { %426 = vst [vmem:[%s378_s27 + $0x10] sm:$0xff] %v3138_v10  ;;  %428 = vst [vmem:[%s378_s27 + $0x18] sm:$0xff] %v3139_v11 }
  0x66 PF: > { %p5825_p12 = scmp.ne.s32.totalorder %s5816_s30, 0 }
  0x68   : > { %437 = sbr.rel (%p5825_p12) target bundleno = 963 (0x3c3), region = 118 }
  0x6f   : > { %p5826_p13 = scmp.ne.s32.totalorder %s5817_s5, 0 }
  0x71   : > { %3486 = dma.done.wait (%p5826_p13), [#allocation5], 16  }
  0x72   : > { %3488 = vsyncadd (%p5826_p13), [#allocation5], 4294967280 }
  0x73   : > { %3490 = dma.done.wait (%p5826_p13), [#allocation7], 16  }
  0x74   : > { %3492 = vsyncadd (%p5826_p13), [#allocation7], 4294967280  ;;  %s3678_s25 = sand.u32 1, %s3503_s16  }
  0x75   : > { %s5766_s30 = sshll.u32 %s3678_s25, 6  ;;  %s3144_s6 = sshll.u32 %s3678_s25, 5 }
  0x76   : > { %s3684_s7 = scalar_lea.vmem [#allocation8], %s5766_s30  ;;  %s3686_s8 = scalar_lea.vmem [#allocation9], %s3144_s6 }
  0x77   : > { %461 = sfence }
  0x78   : > { %v496_v12 = vlaneseq  ;;  %v510_v13 = vld [vmem:[%s3684_s7] sm:$0xff]  ;;  %v511_v14 = vld [vmem:[%s3684_s7 + $0x8] sm:$0xff]  ;;  %vm512_vm0 = vcmask 162816   ;;  %v3170_v20 = vld [vmem:[%s3684_s7 + $0x10] sm:$0xff]  ;;  %v5827_v25 = vmov 0  ;;  %vm523_vm2 = vcmask 1046528  }
  0x79   : > { %v515_v15 = vld [vmem:[%s3686_s8] sm:$0xff]  ;;  %513 = vst.msk [vmem:[#allocation2] sm:$0xff] %vm512_vm0, %v510_v13  ;;  %514 = vst.msk [vmem:[#allocation2 + $0x8] sm:$0xff] %vm512_vm0, %v511_v14  ;;  %v3171_v21 = vld [vmem:[%s3684_s7 + $0x18] sm:$0xff]  ;;  %vm536_vm3 = vcmask 1040384   ;;  %v5830_v33 = vmov 0 }
  0x7a   : > { %516 = vst.msk [vmem:[#allocation2 + $0x10] sm:$0xff] %vm512_vm0, %v515_v15  ;;  %v497_v16 = vshrl.u32 %v496_v12, 7  ;;  %v3172_v22 = vld [vmem:[%s3686_s8 + $0x8] sm:$0xff]  ;;  %v5833_v36 = vmov 0  ;;  %v3201_v51 = vld [vmem:[%s3684_s7 + $0x20] sm:$0xff]  ;;  %v3203_v53 = vld [vmem:[%s3686_s8 + $0x10] sm:$0xff] }
  0x7b   : > { %v3202_v52 = vld [vmem:[%s3684_s7 + $0x28] sm:$0xff]  ;;  %s5773_s5 = smov 127   ;;  %s5771_s10 = smov 19   ;;  %vm578_vm6 = vcmask 154624   ;;  %vm600_vm8 = vcmask 7168   ;;  %vm801_vm9 = vcmask 1045504  }
  0x7c   : > { %v500_v17 = vand.u32 1, %v497_v16  ;;  %v499_v18 = vadd.s32 16, %v497_v16  ;;  %v498_v19 = vadd.s32 8, %v497_v16  ;;  %s5769_s11 = smov 109   ;;  %s5767_s9 = smov 1   ;;  %vm908_vm10 = vcmask 1044480  }
  0x7d   : > { %s3792_s12 = sld [smem:[#allocation3 + $0x1]]  ;;  %s3794_s13 = sld [smem:[#allocation3 + $0x2]]  ;;  %vm1015_vm11 = vcmask 1043456   ;;  %vm1113_vm12 = vcmask 130048  }
  0x7e   : > { %v502_v23 = vand.u32 1, %v499_v18  ;;  %v501_v24 = vand.u32 1, %v498_v19  ;;  %vm3698_vm1 = vcmp.eq.s32.totalorder %v500_v17, 0  ;;  %s3796_s14 = sld [smem:[#allocation3 + $0x3]]  ;;  %s3798_s21 = sld [smem:[#allocation3 + $0x4]] }
  0x7f   : > { %v5828_v25 = vsel %vm3698_vm1, 4294967295, %v5827_v25  ;;  %s3800_s22 = sld [smem:[#allocation3 + $0x6]]  ;;  %s3802_s24 = sld [smem:[#allocation3 + $0x7]] }
  0x80   : > { %5829 = vst [vmem:[#allocation24_spill] sm:$0xff] %v5828_v25  ;;  %v517_v26 = vld [vmem:[#allocation2] sm:$0xff]  ;;  %v518_v27 = vld [vmem:[#allocation2 + $0x8] sm:$0xff]  ;;  %vm3705_vm4 = vcmp.eq.s32.totalorder %v502_v23, 0  ;;  %vm3709_vm5 = vcmp.eq.s32.totalorder %v501_v24, 0  ;;  %s3804_s27 = sld [smem:[#allocation3 + $0x8]] }
  0x81   : > { %v519_v28 = vld [vmem:[#allocation2 + $0x10] sm:$0xff]  ;;  %v524_v29 = vrot.slane %v517_v26, 1  ;;  %v525_v30 = vrot.slane %v518_v27, 1  ;;  %v537_v32 = vrot.slane %v517_v26, 7  ;;  %1119 = vst.msk [vmem:[#allocation2] sm:$0xff] %vm512_vm0, %v3170_v20  ;;  %1120 = vst.msk [vmem:[#allocation2 + $0x8] sm:$0xff] %vm512_vm0, %v3171_v21 }
  0x82   : > { %v534_v31 = vrot.slane %v519_v28, 7  ;;  %1123 = vst.msk [vmem:[#allocation2 + $0x10] sm:$0xff] %vm512_vm0, %v3172_v22  ;;  %v5831_v33 = vsel %vm3705_vm4, 4294967295, %v5830_v33  ;;  %v527_v34 = vrot.slane %v519_v28, 1  ;;  %v538_v35 = vrot.slane %v518_v27, 7  ;;  %s3806_s6 = sld [smem:[#allocation3 + $0x9]] }
  0x83   : > { %5832 = vst [vmem:[#allocation25_spill] sm:$0xff] %v5831_v33  ;;  %v5834_v36 = vsel %vm3709_vm5, 4294967295, %v5833_v36  ;;  %v526_v37 = vsel %vm523_vm2, %v524_v29, %v525_v30  ;;  %v548_v39 = vmul.f32 0.99999994, %v517_v26  ;;  %v550_v40 = vmul.f32 0.99999994, %v519_v28 }
  0x84   : > { %5835 = vst [vmem:[#allocation26_spill] sm:$0xff] %v5834_v36  ;;  %v544_v38 = vsel %vm536_vm3, %v534_v31, %v537_v32  ;;  %v533_v42 = vsel %vm523_vm2, %v527_v34, %v524_v29  ;;  %v540_v43 = vsel %vm536_vm3, %v538_v35, %v534_v31  ;;  %v528_v44 = vsel %vm523_vm2, %v525_v30, %v527_v34  ;;  %s3808_s30 = sld [smem:[#allocation3 + $0xb]]  ;;  %s3823_s0 = sld [smem:[#allocation3 + $0x11]] }
  0x85   : > { %v545_v41 = vsel %vm3698_vm1, %v526_v37, %v544_v38  ;;  %v547_v46 = vsel %vm3705_vm4, %v533_v42, %v540_v43  ;;  %v539_v47 = vsel %vm536_vm3, %v537_v32, %v538_v35  ;;  %v549_v48 = vmul.f32 0.99999994, %v518_v27  ;;  %s3828_s1 = sld [smem:[#allocation3 + $0x12]]  ;;  %s3830_s2 = sld [smem:[#allocation3 + $0x13]] }
  0x86   : > { %v551_v45 = vmul.f32 -1.26880515e-08, %v545_v41  ;;  %v553_v49 = vmul.f32 -1.26880515e-08, %v547_v46  ;;  %v546_v50 = vsel %vm3709_vm5, %v528_v44, %v539_v47  ;;  %v507_v27 = vand.u32 127, %v496_v12  ;;  %s3833_s3 = sld [smem:[#allocation3 + $0x15]] }
  0x87   : > { %v552_v55 = vmul.f32 -1.26880515e-08, %v546_v50  ;;  %s3835_s23 = sld [smem:[#allocation3 + $0x16]]  ;;  %s3841_s19 = sld [smem:[#allocation3 + $0x17]]  ;;  %v628_v47 = vstv %s3792_s12 }
  0x88   : > { %v3728_v54 = vadd.f32 %v551_v45, %v548_v39  ;;  %v3730_v56 = vadd.f32 %v553_v49, %v550_v40  ;;  %v1124_v57 = vld [vmem:[#allocation2] sm:$0xff]  ;;  %v1125_v58 = vld [vmem:[#allocation2 + $0x8] sm:$0xff]  ;;  %v508_v30 = vand.u32 1, %v507_v27  ;;  %s3843_s28 = sld [smem:[#allocation3 + $0x18]]  ;;  %s3849_s17 = sld [smem:[#allocation3 + $0x1a]] }
  0x89   : > { %v1126_v59 = vld [vmem:[#allocation2 + $0x10] sm:$0xff]  ;;  %v3734_v60 = vadd.f32 %v552_v55, %v549_v48  ;;  %1719 = vst.msk [vmem:[#allocation2] sm:$0xff] %vm512_vm0, %v3201_v51  ;;  %1720 = vst.msk [vmem:[#allocation2 + $0x8] sm:$0xff] %vm512_vm0, %v3202_v52  ;;  %v1130_v61 = vrot.slane %v1124_v57, 1  ;;  %v1131_v62 = vrot.slane %v1125_v58, 1  ;;  %v1142_v0 = vrot.slane %v1124_v57, 7 }
  0x8a   : > { %560 = vrot.lane.b32.xlu0 %v3728_v54, %s5773_s5  ;;  %1723 = vst.msk [vmem:[#allocation2 + $0x10] sm:$0xff] %vm512_vm0, %v3203_v53  ;;  %564 = vrot.lane.b32.xlu1 %v3730_v56, %s5773_s5  ;;  %v1140_v63 = vrot.slane %v1126_v59, 7  ;;  %v1133_v1 = vrot.slane %v1126_v59, 1  ;;  %v1143_v2 = vrot.slane %v1125_v58, 7  ;;  %v1153_v11 = vmul.f32 0.99999994, %v1124_v57 }
  0x8b   : > { %v1132_v3 = vsel %vm523_vm2, %v1130_v61, %v1131_v62  ;;  %v1154_v14 = vmul.f32 0.99999994, %v1125_v58  ;;  %v1155_v18 = vmul.f32 0.99999994, %v1126_v59  ;;  %vm3812_vm7 = vcmp.eq.s32.totalorder %v508_v30, 0  ;;  %s3851_s16 = sld [smem:[#allocation3 + $0x1f]] }
  0x8c   : > { %v1149_v4 = vsel %vm536_vm3, %v1140_v63, %v1142_v0  ;;  %v1134_v5 = vsel %vm523_vm2, %v1131_v62, %v1133_v1  ;;  %v1144_v6 = vsel %vm536_vm3, %v1142_v0, %v1143_v2  ;;  %v1139_v9 = vsel %vm523_vm2, %v1133_v1, %v1130_v61  ;;  %s3855_s20 = sld [smem:[#allocation3 + $0x20]]  ;;  %s3857_s29 = sld [smem:[#allocation3 + $0x21]] }
  0x8d   : > { %v1150_v7 = vsel %vm3698_vm1, %v1132_v3, %v1149_v4  ;;  %v1151_v8 = vsel %vm3709_vm5, %v1134_v5, %v1144_v6  ;;  %v1145_v10 = vsel %vm536_vm3, %v1143_v2, %v1140_v63  ;;  %v607_v34 = vmul.f32 0.99999994, %v3728_v54  ;;  %s3863_s15 = sld [smem:[#allocation3 + $0x22]]  ;;  %s3865_s4 = sld [smem:[#allocation3 + $0x24]] }
  0x8e   : > { %562 = vrot.lane.b32.xlu0 %v3734_v60, %s5773_s5  ;;  %569 = vrot.lane.b32.xlu1 %v3728_v54, %s5771_s10  ;;  %v1156_v13 = vmul.f32 -1.26880515e-08, %v1150_v7  ;;  %v1157_v15 = vmul.f32 -1.26880515e-08, %v1151_v8  ;;  %v1152_v16 = vsel %vm3705_vm4, %v1139_v9, %v1145_v10  ;;  %v3826_v35 = vmul.f32 0.99999994, %v3730_v56 }
  0x8f   : > { %v1158_v19 = vmul.f32 -1.26880515e-08, %v1152_v16  ;;  %v608_v38 = vmul.f32 0.99999994, %v3734_v60  ;;  %v643_v48 = vstv %s3794_s13  ;;  %v658_v52 = vstv %s3796_s14  ;;  %s3873_s12 = sld [smem:[#allocation3 + $0x25]]  ;;  %s3875_s13 = sld [smem:[#allocation3 + $0x26]] }
  0x90   : > { %v1159_v17 = vadd.f32 %v1156_v13, %v1153_v11  ;;  %v1160_v20 = vadd.f32 %v1157_v15, %v1154_v14  ;;  %v673_v53 = vstv %s3798_s21  ;;  %v3883_v61 = vstv %s3802_s24  ;;  %s3885_s26 = sld [smem:[#allocation3 + $0x27]]  ;;  %s3887_s18 = sld [smem:[#allocation3 + $0x29]] }
  0x91   : > { %v3774_v21 = vadd.f32 %v1158_v19, %v1155_v18  ;;  %v3891_v63 = vstv %s3804_s27  ;;  %v3894_v0 = vstv %s3806_s6  ;;  %v3897_v1 = vstv %s3808_s30  ;;  %s3903_s24 = sld [smem:[#allocation3 + $0x2b]]  ;;  %s3918_s30 = sld [smem:[#allocation3 + $0x2c]] }
  0x92   : > { %571 = vrot.lane.b32.xlu0 %v3734_v60, %s5771_s10  ;;  %573 = vrot.lane.b32.xlu1 %v3730_v56, %s5771_s10  ;;  %v3837_v40 = vmul.f32 0.99999994, %v1159_v17  ;;  %v3845_v43 = vmul.f32 0.99999994, %v1160_v20  ;;  %s3920_s27 = sld [smem:[#allocation3 + $0x2e]]  ;;  %s5838_s6 = smov 127   ;;  %v3927_v10 = vstv %s3823_s0  ;;  %v3930_v11 = vstv %s3828_s1 }
  0x93   : > { %v3934_v14 = vstv %s3830_s2  ;;  %v3937_v15 = vstv %s3833_s3  ;;  %v3940_v16 = vstv %s3835_s23  ;;  %v3946_v19 = vstv %s3841_s19  ;;  %s3531_s0 = smov 126   ;;  %s3532_s1 = smov 125  }
  0x94   : > { %v3962_v27 = vstv %s3855_s20  ;;  %v3975_v30 = vstv %s3865_s4  ;;  %s3533_s2 = smov 124   ;;  %s4410_s3 = sld [smem:[#allocation3 + $0x2f]] }
  0x95   : > { %s4433_s4 = sld [smem:[#allocation3 + $0x30]]  ;;  %s4532_s19 = sld [smem:[#allocation3 + $0x1d]] }
  0x96   : > { %582 = vrot.lane.b32.xlu0 %v3728_v54, %s5769_s11  ;;  %584 = vrot.lane.b32.xlu1 %v3734_v60, %s5769_s11  ;;  %s3179_s20 = sld [smem:[#allocation3 + $0x1e]]  ;;  %s3184_s23 = sld [smem:[#allocation3 + $0x23]] }
  0x97   : > { %s5855_s14 = smov 1   ;;  %s3173_s21 = sld [smem:[#allocation3 + $0x19]] }
  0x9a   : > { %586 = vrot.lane.b32.xlu0 %v3730_v56, %s5769_s11  ;;  %591 = vrot.lane.b32.xlu1 %v3728_v54, %s5767_s9 }
  0x9e   : > { %593 = vrot.lane.b32.xlu0 %v3734_v60, %s5767_s9  ;;  %595 = vrot.lane.b32.xlu1 %v3730_v56, %s5767_s9  ;;  %v3880_v60 = vstv %s3800_s22  ;;  %s3901_s22 = sld [smem:[#allocation3 + $0x2a]] }
  0xa2   : > { %1165 = vrot.lane.b32.xlu0 %v1159_v17, %s5773_s5  ;;  %1167 = vrot.lane.b32.xlu1 %v1160_v20, %s5773_s5 }
  0xa6   : > { %1169 = vrot.lane.b32.xlu0 %v3774_v21, %s5773_s5  ;;  %1174 = vrot.lane.b32.xlu1 %v1159_v17, %s5771_s10  ;;  %s3821_s5 = sld [smem:[#allocation3 + $0x10]] }
  0xaa   : > { %1176 = vrot.lane.b32.xlu0 %v1160_v20, %s5771_s10  ;;  %1178 = vrot.lane.b32.xlu1 %v3774_v21, %s5771_s10  ;;  %s3818_s10 = sld [smem:[#allocation3 + $0xe]] }
  0xac   : > { %v3924_v9 = vstv %s3821_s5  ;;  %s3160_s5 = sld [smem:[#allocation3 + $0xf]] }
  0xae   : > { %1186 = vrot.lane.b32.xlu0 %v1159_v17, %s5769_s11  ;;  %1188 = vrot.lane.b32.xlu1 %v1160_v20, %s5769_s11 }
  0xb0   : > { %v3916_v7 = vstv %s3818_s10  ;;  %s3165_s10 = sld [smem:[#allocation3 + $0x14]] }
  0xb2   : > { %1190 = vrot.lane.b32.xlu0 %v3774_v21, %s5769_s11  ;;  %1195 = vrot.lane.b32.xlu1 %v1159_v17, %s5767_s9  ;;  %s3816_s11 = sld [smem:[#allocation3 + $0xd]] }
  0xb6   : > { %1197 = vrot.lane.b32.xlu0 %v1160_v20, %s5767_s9  ;;  %1199 = vrot.lane.b32.xlu1 %v3774_v21, %s5767_s9  ;;  %s3810_s9 = sld [smem:[#allocation3 + $0xc]]  ;;  %v3949_v20 = vstv %s3843_s28  ;;  %s618_s28 = sld [smem:[#allocation3]] }
  0xb7   : > { %5839 = vst [vmem:[#allocation27_spill] sm:$0xff] %v3949_v20 }
  0xb8   : > { %v3913_v6 = vstv %s3816_s11  ;;  %s5853_s11 = smov 19  }
  0xbc   : > { %v3908_v4 = vstv %s3810_s9  ;;  %s5854_s9 = smov 109  }
  0xfc   : > { %v561_v22 = vpop.permute.xlu0 %560  ;;  %v565_v23 = vpop.permute.xlu1 %564 }
 0x100   : > { %v563_v24 = vpop.permute.xlu0 %562  ;;  %v570_v26 = vpop.permute.xlu1 %569 }
 0x101   : > { %v579_v41 = vsel %vm578_vm6, %v561_v22, %v570_v26  ;;  %v3959_v26 = vstv %s3851_s16  ;;  %s4492_s16 = sld [smem:[#allocation3 + $0x1b]] }
 0x104   : > { %v572_v28 = vpop.permute.xlu0 %571  ;;  %v574_v29 = vpop.permute.xlu1 %573 }
 0x105   : > { %v580_v49 = vsel %vm578_vm6, %v563_v24, %v572_v28  ;;  %v581_v54 = vsel %vm578_vm6, %v565_v23, %v574_v29  ;;  %v3953_v23 = vmul.f32 0.99999994, %v3774_v21  ;;  %v3965_v28 = vstv %s3857_s29  ;;  %s622_s29 = sld [smem:[#allocation6]] }
 0x106   : > { %v3972_v21 = vstv %s3863_s15  ;;  %s4449_s15 = sld [smem:[#allocation3 + $0x31]] }
 0x108   : > { %v583_v31 = vpop.permute.xlu0 %582  ;;  %v585_v12 = vpop.permute.xlu1 %584 }
 0x10c   : > { %v587_v37 = vpop.permute.xlu0 %586  ;;  %v592_v39 = vpop.permute.xlu1 %591 }
 0x10d   : > { %v601_v42 = vsel %vm600_vm8, %v583_v31, %v592_v39  ;;  %v3978_v31 = vstv %s3873_s12  ;;  %s3174_s12 = sld [smem:[#allocation6 + $0x1]] }
 0x10e   : > { %v604_v44 = vsel %vm3812_vm7, %v579_v41, %v601_v42 }
 0x10f   : > { %v610_v45 = vmul.f32 -1.26880515e-08, %v604_v44  ;;  %v4002_v44 = vstv %s3901_s22 }
 0x110   : > { %v594_v46 = vpop.permute.xlu0 %593  ;;  %v596_v50 = vpop.permute.xlu1 %595  ;;  %5840 = vst [vmem:[#allocation28_spill] sm:$0xff] %v4002_v44 }
 0x111   : > { %v602_v51 = vsel %vm600_vm8, %v585_v12, %v594_v46  ;;  %v3868_v55 = vadd.f32 %v610_v45, %v607_v34  ;;  %v603_v56 = vsel %vm600_vm8, %v587_v37, %v596_v50  ;;  %v3982_v34 = vstv %s3875_s13  ;;  %s5856_s13 = sshll.u32 %s3678_s25, 6 }
 0x112   : > { %v605_v57 = vsel %vm3812_vm7, %v580_v49, %v602_v51  ;;  %v606_v58 = vsel %vm3812_vm7, %v581_v54, %v603_v56  ;;  %v3985_v37 = vstv %s3885_s26  ;;  %v4016_v49 = vstv %s3920_s27  ;;  %s3189_s26 = sld [smem:[#allocation3 + $0x28]]  ;;  %s4734_s22 = scalar_lea.vmem [#allocation10], %s5856_s13 }
 0x113   : > { %v611_v59 = vmul.f32 -1.26880515e-08, %v605_v57  ;;  %v629_v62 = vmul.f32 %v628_v47, %v3868_v55  ;;  %v612_v8 = vmul.f32 -1.26880515e-08, %v606_v58  ;;  %v644_v17 = vmul.f32 %v643_v48, %v3868_v55  ;;  %5843 = vst [vmem:[#allocation31_spill] sm:$0xff] %v4016_v49  ;;  %s4775_s27 = sld [smem:[#allocation3 + $0x35]] }
 0x114   : > { %v3899_v2 = vpop.permute.xlu0 %1165  ;;  %v3910_v5 = vpop.permute.xlu1 %1167  ;;  %v707_v45 = vmul.f32 %v3880_v60, %v3868_v55  ;;  %v674_v50 = vmul.f32 %v673_v53, %v3868_v55  ;;  %v729_v51 = vmul.f32 %v3883_v61, %v3868_v55  ;;  %v751_v56 = vmul.f32 %v3891_v63, %v3868_v55  ;;  %s3204_s13 = sld [smem:[#allocation3 + $0x32]] }
 0x115   : > { %v3905_v3 = vadd.f32 %v611_v59, %v608_v38  ;;  %633 = vrot.lane.b32.xlu0 %v629_v62, %s5838_s6  ;;  %v3968_v29 = vadd.f32 %v612_v8, %v3826_v35  ;;  %v3988_v35 = vstv %s3887_s18  ;;  %v659_v38 = vmul.f32 %v658_v52, %v3868_v55  ;;  %s4516_s18 = sld [smem:[#allocation3 + $0x1c]] }
 0x116   : > { %v773_v59 = vmul.f32 %v3894_v0, %v3868_v55  ;;  %v814_v62 = vmul.f32 %v3897_v1, %v3868_v55  ;;  %v757_v33 = vrot.slane %v751_v56, 1 }
 0x117   : > { %v630_v13 = vmul.f32 %v628_v47, %v3905_v3  ;;  %v645_v12 = vmul.f32 %v643_v48, %v3905_v3  ;;  %v708_v39 = vmul.f32 %v3880_v60, %v3905_v3  ;;  %v3997_v41 = vmul.f32 %v3883_v61, %v3905_v3 }
 0x118   : > { %v3943_v18 = vpop.permute.xlu0 %1169  ;;  %v3956_v24 = vpop.permute.xlu1 %1174  ;;  %v4010_v47 = vstv %s3903_s24  ;;  %v4013_v48 = vstv %s3918_s30  ;;  %v709_v54 = vmul.f32 %v3880_v60, %v3968_v29  ;;  %v660_v57 = vmul.f32 %v658_v52, %v3905_v3  ;;  %s4758_s24 = sld [smem:[#allocation3 + $0x33]]  ;;  %s4763_s30 = sld [smem:[#allocation3 + $0x34]] }
 0x119   : > { %635 = vrot.lane.b32.xlu1 %v630_v13, %s5838_s6  ;;  %648 = vrot.lane.b32.xlu0 %v644_v17, %s3531_s0  ;;  %5841 = vst [vmem:[#allocation29_spill] sm:$0xff] %v4010_v47  ;;  %5842 = vst [vmem:[#allocation30_spill] sm:$0xff] %v4013_v48  ;;  %v752_v58 = vmul.f32 %v3891_v63, %v3905_v3  ;;  %v714_v8 = vrot.slane %v708_v39, 1  ;;  %v736_v13 = vrot.slane %v3997_v41, 1  ;;  %v713_v52 = vrot.slane %v707_v45, 1 }
 0x11a   : > { %v731_v60 = vmul.f32 %v3883_v61, %v3968_v29  ;;  %v774_v17 = vmul.f32 %v3894_v0, %v3905_v3  ;;  %v753_v22 = vmul.f32 %v3891_v63, %v3968_v29  ;;  %v815_v39 = vmul.f32 %v3897_v1, %v3905_v3 }
 0x11b   : > { %v735_v61 = vrot.slane %v729_v51, 1  ;;  %v716_v36 = vrot.slane %v709_v54, 1  ;;  %v775_v45 = vmul.f32 %v3894_v0, %v3968_v29  ;;  %v779_v25 = vrot.slane %v773_v59, 1 }
 0x11c   : > { %v3999_v42 = vpop.permute.xlu0 %1176  ;;  %v4007_v46 = vpop.permute.xlu1 %1178  ;;  %v816_v63 = vmul.f32 %v3897_v1, %v3968_v29  ;;  %v715_v49 = vsel %vm523_vm2, %v713_v52, %v714_v8  ;;  %v738_v47 = vrot.slane %v731_v60, 1  ;;  %v760_v51 = vrot.slane %v753_v22, 1 }
 0x11d   : > { %650 = vrot.lane.b32.xlu1 %v645_v12, %s3531_s0  ;;  %663 = vrot.lane.b32.xlu0 %v659_v38, %s3532_s1  ;;  %v675_v38 = vmul.f32 %v673_v53, %v3905_v3  ;;  %v837_v53 = vmul.f32 %v3908_v4, %v3905_v3  ;;  %v737_v48 = vsel %vm523_vm2, %v735_v61, %v736_v13  ;;  %v821_v54 = vrot.slane %v815_v39, 2 }
 0x11e   : > { %v836_v0 = vmul.f32 %v3908_v4, %v3868_v55  ;;  %v859_v56 = vmul.f32 %v3913_v6, %v3905_v3  ;;  %v717_v1 = vsel %vm523_vm2, %v714_v8, %v716_v36  ;;  %v782_v59 = vrot.slane %v775_v45, 1 }
 0x11f   : > { %v858_v60 = vmul.f32 %v3913_v6, %v3868_v55  ;;  %v843_v39 = vrot.slane %v837_v53, 2  ;;  %v823_v61 = vrot.slane %v816_v63, 2  ;;  %v739_v44 = vsel %vm523_vm2, %v736_v13, %v738_v47 }
 0x120   : > { %v4042_v12 = vpop.permute.xlu0 %1186  ;;  %v4052_v41 = vpop.permute.xlu1 %1188  ;;  %v4079_v36 = vmul.f32 %v3916_v7, %v3905_v3  ;;  %v865_v8 = vrot.slane %v859_v56, 2  ;;  %v880_v45 = vmul.f32 %v3916_v7, %v3868_v55  ;;  %v1183_v53 = vsel %vm578_vm6, %v3899_v2, %v3956_v24 }
 0x121   : > { %665 = vrot.lane.b32.xlu1 %v660_v57, %s3532_s1  ;;  %678 = vrot.lane.b32.xlu0 %v674_v50, %s3533_s2  ;;  %v758_v57 = vrot.slane %v752_v58, 1  ;;  %v780_v50 = vrot.slane %v774_v17, 1  ;;  %v838_v17 = vmul.f32 %v3908_v4, %v3968_v29  ;;  %v864_v47 = vrot.slane %v858_v60, 2 }
 0x122   : > { %v4109_v56 = vmul.f32 %v3924_v9, %v3905_v3  ;;  %v882_v24 = vmul.f32 %v3916_v7, %v3968_v29 }
 0x123   : > { %v759_v52 = vsel %vm523_vm2, %v757_v33, %v758_v57  ;;  %v781_v20 = vsel %vm523_vm2, %v779_v25, %v780_v50  ;;  %v761_v4 = vsel %vm523_vm2, %v758_v57, %v760_v51  ;;  %v783_v25 = vsel %vm523_vm2, %v780_v50, %v782_v59 }
 0x124   : > { %v1191_v58 = vpop.permute.xlu0 %1190  ;;  %v1196_v22 = vpop.permute.xlu1 %1195  ;;  %v845_v13 = vrot.slane %v838_v17, 2  ;;  %v4096_v57 = vsel %vm801_vm9, %v821_v54, %v823_v61  ;;  %v1184_v50 = vsel %vm578_vm6, %v3910_v5, %v3999_v42  ;;  %v887_v51 = vrot.slane %v4079_v36, 2 }
 0x125   : > { %680 = vrot.lane.b32.xlu1 %v675_v38, %s3533_s2  ;;  %718 = vrot.lane.b32.xlu0 %v715_v49, %s5838_s6  ;;  %v820_v38 = vrot.slane %v814_v62, 2  ;;  %v860_v49 = vmul.f32 %v3913_v6, %v3968_v29  ;;  %v842_v62 = vrot.slane %v836_v0, 2  ;;  %v4113_v2 = vsel %vm801_vm9, %v864_v47, %v865_v8 }
 0x126   : > { %v1204_v5 = vsel %vm600_vm8, %v4042_v12, %v1196_v22  ;;  %v4125_v42 = vsel %vm801_vm9, %v843_v39, %v845_v13  ;;  %v886_v59 = vrot.slane %v880_v45, 2  ;;  %v944_v17 = vmul.f32 %v3927_v10, %v3905_v3 }
 0x127   : > { %v4086_v33 = vsel %vm801_vm9, %v820_v38, %v821_v54  ;;  %v4093_v6 = vsel %vm801_vm9, %v842_v62, %v843_v39  ;;  %v867_v0 = vrot.slane %v860_v49, 2  ;;  %v923_v12 = vmul.f32 %v3924_v9, %v3968_v29 }
 0x128   : > { %v1198_v63 = vpop.permute.xlu0 %1197  ;;  %v1200_v54 = vpop.permute.xlu1 %1199  ;;  %v945_v61 = vmul.f32 %v3927_v10, %v3968_v29  ;;  %v988_v49 = vmul.f32 %v3934_v14, %v3905_v3  ;;  %v950_v62 = vrot.slane %v944_v17, 3  ;;  %v4163_v13 = vmul.f32 %v3937_v15, %v3905_v3 }
 0x129   : > { %720 = vrot.lane.b32.xlu1 %v717_v1, %s5838_s6  ;;  %740 = vrot.lane.b32.xlu0 %v737_v48, %s3531_s0  ;;  %v921_v48 = vmul.f32 %v3924_v9, %v3868_v55  ;;  %v4119_v1 = vmul.f32 %v3927_v10, %v3868_v55  ;;  %v1205_v7 = vsel %vm600_vm8, %v4052_v41, %v1198_v63  ;;  %v889_v41 = vrot.slane %v882_v24, 2 }
 0x12a   : > { %v1206_v22 = vsel %vm600_vm8, %v1191_v58, %v1200_v54  ;;  %v4141_v38 = vsel %vm801_vm9, %v865_v8, %v867_v0  ;;  %v1208_v9 = vsel %vm3812_vm7, %v1184_v50, %v1205_v7  ;;  %v966_v58 = vmul.f32 %v3930_v11, %v3905_v3  ;;  %v4181_v54 = vld [vmem:[#allocation2 + $0x10] sm:$0xff] }
 0x12b   : > { %v927_v60 = vrot.slane %v921_v48, 3  ;;  %v949_v39 = vrot.slane %v4119_v1, 3  ;;  %v930_v8 = vrot.slane %v923_v12, 3  ;;  %v965_v10 = vmul.f32 %v3930_v11, %v3868_v55 }
 0x12c   : > { %v987_v45 = vmul.f32 %v3934_v14, %v3868_v55  ;;  %v972_v63 = vrot.slane %v966_v58, 3  ;;  %v1028_v0 = vmul.f32 %v3937_v15, %v3868_v55  ;;  %v994_v24 = vrot.slane %v988_v49, 3 }
 0x12d   : > { %742 = vrot.lane.b32.xlu1 %v739_v44, %s3531_s0  ;;  %762 = vrot.lane.b32.xlu0 %v759_v52, %s3532_s1  ;;  %v1185_v44 = vsel %vm578_vm6, %v3943_v18, %v4007_v46  ;;  %v4138_v52 = vsel %vm801_vm9, %v886_v59, %v887_v51  ;;  %v928_v18 = vrot.slane %v4109_v56, 3  ;;  %v1207_v46 = vsel %vm3812_vm7, %v1183_v53, %v1204_v5  ;;  %v4179_v56 = vld [vmem:[#allocation2 + $0x8] sm:$0xff]  ;;  %v3233_v59 = vld [vmem:[%s3684_s7 + $0x38] sm:$0xff] }
 0x12e   : > { %v1209_v36 = vsel %vm3812_vm7, %v1185_v44, %v1206_v22  ;;  %v1213_v47 = vmul.f32 -1.26880515e-08, %v1207_v46  ;;  %v989_v53 = vmul.f32 %v3934_v14, %v3968_v29  ;;  %v4186_v14 = vsel %vm801_vm9, %v887_v51, %v889_v41  ;;  %v3232_v5 = vld [vmem:[%s3684_s7 + $0x30] sm:$0xff]  ;;  %v3234_v44 = vld [vmem:[%s3686_s8 + $0x18] sm:$0xff]  ;;  %2320 = vst.msk [vmem:[#allocation2 + $0x8] sm:$0xff] %vm512_vm0, %v3233_v59  ;;  %s3150_s7 = sld [smem:[#allocation3 + $0x5]] }
 0x12f   : > { %v4173_v48 = vsel %vm908_vm10, %v927_v60, %v928_v18  ;;  %v1215_v50 = vmul.f32 -1.26880515e-08, %v1209_v36  ;;  %v1035_v60 = vrot.slane %v4163_v13, 4  ;;  %v4197_v17 = vmul.f32 %v3940_v16, %v3868_v55  ;;  %2323 = vst.msk [vmem:[#allocation2 + $0x10] sm:$0xff] %vm512_vm0, %v3234_v44  ;;  %s3155_s8 = sld [smem:[#allocation3 + $0xa]] }
 0x130   : > { %v4192_v7 = vadd.f32 %v1213_v47, %v3837_v40  ;;  %v971_v40 = vrot.slane %v965_v10, 3  ;;  %v993_v12 = vrot.slane %v987_v45, 3  ;;  %v996_v22 = vrot.slane %v989_v53, 3 }
 0x131   : > { %764 = vrot.lane.b32.xlu1 %v761_v4, %s3532_s1  ;;  %784 = vrot.lane.b32.xlu0 %v781_v20, %s3533_s2  ;;  %v967_v4 = vmul.f32 %v3930_v11, %v3968_v29  ;;  %v1214_v20 = vmul.f32 -1.26880515e-08, %v1208_v9  ;;  %v4177_v11 = vld [vmem:[#allocation2] sm:$0xff]  ;;  %v4212_v46 = vsel %vm908_vm10, %v949_v39, %v950_v62  ;;  %v4215_v41 = vsel %vm908_vm10, %v928_v18, %v930_v8 }
 0x132   : > { %2319 = vst.msk [vmem:[#allocation2] sm:$0xff] %vm512_vm0, %v3232_v5  ;;  %v4218_v9 = vadd.f32 %v1215_v50, %v3953_v23  ;;  %v1034_v58 = vrot.slane %v1028_v0, 4  ;;  %v1056_v18 = vrot.slane %v4197_v17, 4  ;;  %v4243_v36 = vmul.f32 %v3937_v15, %v3968_v29 }
 0x133   : > { %v974_v1 = vrot.slane %v967_v4, 3  ;;  %v4207_v51 = vadd.f32 %v1214_v20, %v3845_v43  ;;  %v4223_v43 = vsel %vm908_vm10, %v971_v40, %v972_v63  ;;  %v4246_v49 = vsel %vm908_vm10, %v994_v24, %v996_v22 }
 0x134   : > { %v4237_v23 = vsel %vm1015_vm11, %v1034_v58, %v1035_v60  ;;  %v4250_v4 = vmul.f32 %v3946_v19, %v3868_v55  ;;  %v1332_v15 = vmul.f32 %v3962_v27, %v4192_v7  ;;  %v1312_v20 = vmul.f32 %v3959_v26, %v4218_v9 }
 0x135   : > { %786 = vrot.lane.b32.xlu1 %v783_v25, %s3533_s2  ;;  %825 = vrot.lane.b32.xlu0 %v4086_v33, %s5838_s6  ;;  %v952_v25 = vrot.slane %v945_v61, 3  ;;  %v4201_v33 = vmul.f32 %v3940_v16, %v3905_v3  ;;  %v4232_v39 = vsel %vm908_vm10, %v972_v63, %v974_v1  ;;  %v1311_v8 = vmul.f32 %v3959_v26, %v4207_v51 }
 0x136   : > { %v1333_v47 = vmul.f32 %v3962_v27, %v4207_v51  ;;  %v1354_v10 = vmul.f32 %v3965_v28, %v4192_v7  ;;  %v1334_v63 = vmul.f32 %v3962_v27, %v4218_v9  ;;  %v1338_v50 = vrot.slane %v1332_v15, 1 }
 0x137   : > { %v4226_v61 = vsel %vm908_vm10, %v950_v62, %v952_v25  ;;  %v1310_v62 = vmul.f32 %v3959_v26, %v4192_v7  ;;  %v1317_v53 = vrot.slane %v1311_v8, 1  ;;  %v1319_v25 = vrot.slane %v1312_v20, 1 }
 0x138   : > { %v1339_v0 = vrot.slane %v1333_v47, 1  ;;  %v1341_v5 = vrot.slane %v1334_v63, 1  ;;  %v1377_v44 = vmul.f32 %v3972_v21, %v4207_v51  ;;  %v1356_v40 = vmul.f32 %v3965_v28, %v4218_v9 }
 0x139   : > { %827 = vrot.lane.b32.xlu1 %v4096_v57, %s5838_s6  ;;  %847 = vrot.lane.b32.xlu0 %v4093_v6, %s3531_s0  ;;  %v4229_v57 = vsel %vm908_vm10, %v993_v12, %v994_v24  ;;  %v1057_v6 = vrot.slane %v4201_v33, 4  ;;  %v1316_v45 = vrot.slane %v1310_v62, 1  ;;  %v1360_v24 = vrot.slane %v1354_v10, 1 }
 0x13a   : > { %v4280_v59 = vsel %vm523_vm2, %v1338_v50, %v1339_v0  ;;  %v4283_v27 = vsel %vm523_vm2, %v1317_v53, %v1319_v25  ;;  %v1416_v58 = vmul.f32 %v3975_v30, %v4192_v7  ;;  %v1383_v62 = vrot.slane %v1377_v44, 1 }
 0x13b   : > { %v4273_v26 = vsel %vm523_vm2, %v1316_v45, %v1317_v53  ;;  %v1363_v8 = vrot.slane %v1356_v40, 1  ;;  %v1417_v15 = vmul.f32 %v3975_v30, %v4207_v51  ;;  %v1438_v20 = vmul.f32 %v3978_v31, %v4192_v7 }
 0x13c   : > { %v1422_v47 = vrot.slane %v1416_v58, 2  ;;  %v1439_v10 = vmul.f32 %v3978_v31, %v4207_v51  ;;  %v1482_v40 = vmul.f32 %v3985_v37, %v4192_v7  ;;  %v1462_v17 = vmul.f32 %v3982_v34, %v4218_v9 }
 0x13d   : > { %849 = vrot.lane.b32.xlu1 %v4125_v42, %s3531_s0  ;;  %869 = vrot.lane.b32.xlu0 %v4113_v2, %s3532_s1  ;;  %v1355_v42 = vmul.f32 %v3965_v28, %v4207_v51  ;;  %v1376_v2 = vmul.f32 %v3972_v21, %v4192_v7  ;;  %v1378_v28 = vmul.f32 %v3972_v21, %v4218_v9  ;;  %v1444_v63 = vrot.slane %v1438_v20, 2 }
 0x13e   : > { %v1445_v50 = vrot.slane %v1439_v10, 2  ;;  %v1484_v20 = vmul.f32 %v3985_v37, %v4218_v9 }
 0x13f   : > { %v1361_v1 = vrot.slane %v1355_v42, 1  ;;  %v1382_v22 = vrot.slane %v1376_v2, 1  ;;  %v1423_v42 = vrot.slane %v1417_v15, 2  ;;  %v1385_v21 = vrot.slane %v1378_v28, 1 }
 0x140   : > { %v4350_v2 = vsel %vm1015_vm11, %v1056_v18, %v1057_v6  ;;  %v1488_v18 = vrot.slane %v1482_v40, 2  ;;  %v1523_v15 = vmul.f32 %v3988_v35, %v4207_v51 }
 0x141   : > { %871 = vrot.lane.b32.xlu1 %v4141_v38, %s3532_s1  ;;  %891 = vrot.lane.b32.xlu0 %v4138_v52, %s3533_s2  ;;  %v4292_v12 = vsel %vm523_vm2, %v1360_v24, %v1361_v1  ;;  %v4295_v38 = vsel %vm523_vm2, %v1339_v0, %v1341_v5  ;;  %v1037_v52 = vrot.slane %v4243_v36, 4  ;;  %v4311_v45 = vsel %vm523_vm2, %v1382_v22, %v1383_v62 }
 0x142   : > { %v4314_v53 = vsel %vm523_vm2, %v1361_v1, %v1363_v8  ;;  %v4320_v36 = vmul.f32 %v3946_v19, %v3905_v3  ;;  %v4326_v0 = vmul.f32 %v3940_v16, %v3968_v29  ;;  %v4329_v25 = vsel %vm801_vm9, %v1422_v47, %v1423_v42 }
 0x143   : > { %v4332_v24 = vsel %vm523_vm2, %v1383_v62, %v1385_v21  ;;  %v4337_v1 = vsel %vm801_vm9, %v1444_v63, %v1445_v50  ;;  %v1440_v16 = vmul.f32 %v3978_v31, %v4218_v9  ;;  %v1483_v22 = vmul.f32 %v3985_v37, %v4207_v51  ;;  %v5844_v63 = vld [vmem:[#allocation27_spill] sm:$0xff] }
 0x144   : > { %v1522_v8 = vmul.f32 %v3988_v35, %v4192_v7  ;;  %v1469_v47 = vrot.slane %v1462_v17, 2  ;;  %v1529_v21 = vrot.slane %v1523_v15, 3  ;;  %v1491_v37 = vrot.slane %v1484_v20, 2  ;;  %v5846_v17 = vld [vmem:[#allocation29_spill] sm:$0xff] }
 0x145   : > { %893 = vrot.lane.b32.xlu1 %v4186_v14, %s3533_s2  ;;  %932 = vrot.lane.b32.xlu0 %v4173_v48, %s5838_s6  ;;  %v1418_v14 = vmul.f32 %v3975_v30, %v4218_v9  ;;  %v1460_v48 = vmul.f32 %v3982_v34, %v4192_v7  ;;  %v1461_v30 = vmul.f32 %v3982_v34, %v4207_v51  ;;  %v1447_v58 = vrot.slane %v1440_v16, 2 }
 0x146   : > { %v1489_v62 = vrot.slane %v1483_v22, 2  ;;  %v1078_v34 = vrot.slane %v4250_v4, 4  ;;  %v4394_v4 = vmul.f32 %v5844_v63, %v3905_v3  ;;  %v1038_v16 = vsel %vm1015_vm11, %v1035_v60, %v1037_v52 }
 0x147   : > { %v1425_v5 = vrot.slane %v1418_v14, 2  ;;  %v1466_v44 = vrot.slane %v1460_v48, 2  ;;  %v1567_v13 = vmul.f32 %v5846_v17, %v4207_v51  ;;  %v1059_v60 = vrot.slane %v4326_v0, 4 }
 0x148   : > { %v4379_v10 = vsel %vm801_vm9, %v1488_v18, %v1489_v62  ;;  %v4408_v40 = vsel %vm801_vm9, %v1489_v62, %v1491_v37  ;;  %v1074_v52 = vmul.f32 %v3946_v19, %v3968_v29 }
 0x149   : > { %934 = vrot.lane.b32.xlu1 %v4215_v41, %s5838_s6  ;;  %954 = vrot.lane.b32.xlu0 %v4212_v46, %s3531_s0  ;;  %v4359_v31 = vsel %vm801_vm9, %v1423_v42, %v1425_v5  ;;  %v1467_v41 = vrot.slane %v1461_v30, 2  ;;  %v4371_v46 = vsel %vm801_vm9, %v1445_v50, %v1447_v58  ;;  %v1528_v42 = vrot.slane %v1522_v8, 3 }
 0x14a   : > { %v4385_v50 = vmul.f32 %v5844_v63, %v3868_v55  ;;  %v1524_v30 = vmul.f32 %v3988_v35, %v4218_v9  ;;  %v1566_v35 = vmul.f32 %v5846_v17, %v4192_v7  ;;  %v1573_v20 = vrot.slane %v1567_v13, 3 }
 0x14b   : > { %v4368_v28 = vsel %vm801_vm9, %v1466_v44, %v1467_v41  ;;  %v4388_v14 = vsel %vm801_vm9, %v1467_v41, %v1469_v47  ;;  %v4397_v5 = vsel %vm908_vm10, %v1528_v42, %v1529_v21  ;;  %v1079_v44 = vrot.slane %v4320_v36, 4 }
 0x14c   : > { %v1531_v58 = vrot.slane %v1524_v30, 3  ;;  %v1572_v47 = vrot.slane %v1566_v35, 3  ;;  %v1730_v36 = vrot.slane %v4177_v11, 1 }
 0x14d   : > { %956 = vrot.lane.b32.xlu1 %v4226_v61, %s3531_s0  ;;  %976 = vrot.lane.b32.xlu0 %v4223_v43, %s3532_s1  ;;  %v5845_v61 = vld [vmem:[#allocation28_spill] sm:$0xff] }
 0x14e   : > { %v1544_v48 = vmul.f32 %v5845_v61, %v4192_v7  ;;  %v1545_v43 = vmul.f32 %v5845_v61, %v4207_v51  ;;  %v1546_v18 = vmul.f32 %v5845_v61, %v4218_v9  ;;  %v4431_v15 = vsel %vm908_vm10, %v1529_v21, %v1531_v58  ;;  %v5848_v61 = vld [vmem:[#allocation31_spill] sm:$0xff] }
 0x14f   : > { %v4441_v37 = vsel %vm908_vm10, %v1572_v47, %v1573_v20  ;;  %v1568_v21 = vmul.f32 %v5846_v17, %v4218_v9  ;;  %v1096_v58 = vmul.f32 %v5844_v63, %v3968_v29  ;;  %v1081_v47 = vrot.slane %v1074_v52, 4 }
 0x150   : > { %v1550_v22 = vrot.slane %v1544_v48, 3  ;;  %v1551_v41 = vrot.slane %v1545_v43, 3  ;;  %v1553_v0 = vrot.slane %v1546_v18, 3  ;;  %v1628_v48 = vmul.f32 %v5848_v61, %v4192_v7 }
 0x151   : > { %978 = vrot.lane.b32.xlu1 %v4232_v39, %s3532_s1  ;;  %998 = vrot.lane.b32.xlu0 %v4229_v57, %s3533_s2  ;;  %v5847_v39 = vld [vmem:[#allocation30_spill] sm:$0xff]  ;;  %v1100_v57 = vrot.slane %v4385_v50, 4  ;;  %v1629_v50 = vmul.f32 %v5848_v61, %v4207_v51  ;;  %v1575_v17 = vrot.slane %v1568_v21, 3  ;;  %v1080_v18 = vsel %vm1015_vm11, %v1078_v34, %v1079_v44 }
 0x152   : > { %v1588_v62 = vmul.f32 %v5847_v39, %v4192_v7  ;;  %v4428_v8 = vsel %vm908_vm10, %v1550_v22, %v1551_v41  ;;  %v1589_v19 = vmul.f32 %v5847_v39, %v4207_v51  ;;  %v4455_v43 = vsel %vm908_vm10, %v1551_v41, %v1553_v0 }
 0x153   : > { %v1590_v22 = vmul.f32 %v5847_v39, %v4218_v9  ;;  %v1634_v35 = vrot.slane %v1628_v48, 4  ;;  %v1635_v13 = vrot.slane %v1629_v50, 4  ;;  %v1649_v41 = vstv %s4410_s3  ;;  %s4785_s3 = sld [smem:[#allocation3 + $0x36]] }
 0x154   : > { %v1594_v42 = vrot.slane %v1588_v62, 3  ;;  %v1595_v30 = vrot.slane %v1589_v19, 3  ;;  %v1060_v39 = vsel %vm1015_vm11, %v1057_v6, %v1059_v60  ;;  %v4473_v63 = vsel %vm908_vm10, %v1573_v20, %v1575_v17 }
 0x155   : > { %1000 = vrot.lane.b32.xlu1 %v4246_v49, %s3533_s2  ;;  %1039 = vrot.lane.b32.xlu0 %v4237_v23, %s5838_s6  ;;  %v1101_v49 = vrot.slane %v4394_v4, 4  ;;  %v1597_v4 = vrot.slane %v1590_v22, 3  ;;  %v4476_v62 = vsel %vm1015_vm11, %v1634_v35, %v1635_v13  ;;  %v1650_v34 = vmul.f32 %v1649_v41, %v4192_v7 }
 0x156   : > { %v4465_v23 = vsel %vm908_vm10, %v1594_v42, %v1595_v30  ;;  %v1651_v33 = vmul.f32 %v1649_v41, %v4207_v51  ;;  %v1630_v6 = vmul.f32 %v5848_v61, %v4218_v9  ;;  %v1671_v20 = vstv %s4433_s4  ;;  %s4787_s4 = sld [smem:[#allocation3 + $0x38]] }
 0x157   : > { %v4482_v0 = vsel %vm908_vm10, %v1595_v30, %v1597_v4  ;;  %v1656_v60 = vrot.slane %v1650_v34, 4  ;;  %v1652_v19 = vmul.f32 %v1649_v41, %v4218_v9  ;;  %v1103_v42 = vrot.slane %v1096_v58, 4 }
 0x158   : > { %v1657_v21 = vrot.slane %v1651_v33, 4  ;;  %v1637_v48 = vrot.slane %v1630_v6, 4  ;;  %v1673_v52 = vmul.f32 %v1671_v20, %v4207_v51  ;;  %v1693_v30 = vstv %s4449_s15  ;;  %s4792_s15 = sld [smem:[#allocation3 + $0x39]] }
 0x159   : > { %1041 = vrot.lane.b32.xlu1 %v1038_v16, %s5838_s6  ;;  %1061 = vrot.lane.b32.xlu0 %v4350_v2, %s3531_s0  ;;  %v1102_v16 = vsel %vm1015_vm11, %v1100_v57, %v1101_v49  ;;  %v1672_v2 = vmul.f32 %v1671_v20, %v4192_v7  ;;  %v1659_v50 = vrot.slane %v1652_v19, 4  ;;  %v1674_v61 = vmul.f32 %v1671_v20, %v4218_v9 }
 0x15a   : > { %v1082_v57 = vsel %vm1015_vm11, %v1079_v44, %v1081_v47  ;;  %v4502_v22 = vsel %vm1015_vm11, %v1656_v60, %v1657_v21  ;;  %v4505_v58 = vsel %vm1015_vm11, %v1635_v13, %v1637_v48  ;;  %v1679_v35 = vrot.slane %v1673_v52, 4 }
 0x15b   : > { %v1678_v17 = vrot.slane %v1672_v2, 4  ;;  %v4508_v4 = vsel %vm1015_vm11, %v1657_v21, %v1659_v50  ;;  %v1694_v41 = vmul.f32 %v1693_v30, %v4192_v7  ;;  %v1731_v44 = vrot.slane %v4179_v56, 1 }
 0x15c   : > { %v1740_v34 = vrot.slane %v4181_v54, 7  ;;  %v1742_v6 = vrot.slane %v4177_v11, 7  ;;  %v5849_v60 = vstv %s3849_s17  ;;  %v1696_v48 = vmul.f32 %v1693_v30, %v4218_v9  ;;  %s4575_s17 = sld [smem:[#allocation3 + $0x2d]] }
 0x15d   : > { %1063 = vrot.lane.b32.xlu1 %v1060_v39, %s3531_s0  ;;  %1083 = vrot.lane.b32.xlu0 %v1080_v18, %s3532_s1  ;;  %v1695_v18 = vmul.f32 %v1693_v30, %v4207_v51  ;;  %v1681_v39 = vrot.slane %v1674_v61, 4  ;;  %v4519_v13 = vsel %vm1015_vm11, %v1678_v17, %v1679_v35  ;;  %v1700_v47 = vrot.slane %v1694_v41, 4 }
 0x15e   : > { %v1232_v20 = vmul.f32 %v5849_v60, %v4192_v7  ;;  %v1732_v21 = vsel %vm523_vm2, %v1730_v36, %v1731_v44  ;;  %v1104_v2 = vsel %vm1015_vm11, %v1101_v49, %v1103_v42  ;;  %v1749_v50 = vsel %vm536_vm3, %v1740_v34, %v1742_v6 }
 0x15f   : > { %v1701_v33 = vrot.slane %v1695_v18, 4  ;;  %v4527_v19 = vsel %vm1015_vm11, %v1679_v35, %v1681_v39  ;;  %v1703_v17 = vrot.slane %v1696_v48, 4  ;;  %v1733_v35 = vrot.slane %v4181_v54, 1 }
 0x160   : > { %v1743_v30 = vrot.slane %v4179_v56, 7  ;;  %v1246_v49 = vstv %s4492_s16  ;;  %v1755_v41 = vmul.f32 0.99999994, %v4181_v54  ;;  %s4794_s16 = sld [smem:[#allocation3 + $0x3a]] }
 0x161   : > { %1085 = vrot.lane.b32.xlu1 %v1082_v57, %s3532_s1  ;;  %1105 = vrot.lane.b32.xlu0 %v1102_v16, %s3533_s2  ;;  %v4535_v52 = vsel %vm1015_vm11, %v1700_v47, %v1701_v33  ;;  %v1753_v16 = vmul.f32 0.99999994, %v4177_v11  ;;  %v1750_v57 = vsel %vm3698_vm1, %v1732_v21, %v1749_v50  ;;  %v4548_v18 = vsel %vm1015_vm11, %v1701_v33, %v1703_v17 }
 0x162   : > { %v1756_v42 = vmul.f32 -1.26880515e-08, %v1750_v57  ;;  %v1739_v11 = vsel %vm523_vm2, %v1733_v35, %v1730_v36  ;;  %v1745_v39 = vsel %vm536_vm3, %v1743_v30, %v1740_v34  ;;  %v1734_v47 = vsel %vm523_vm2, %v1731_v44, %v1733_v35 }
 0x163   : > { %v1233_v21 = vmul.f32 %v5849_v60, %v4207_v51  ;;  %v1744_v33 = vsel %vm536_vm3, %v1742_v6, %v1743_v30  ;;  %v1754_v44 = vmul.f32 0.99999994, %v4179_v56  ;;  %v1261_v57 = vstv %s4516_s18  ;;  %s4800_s18 = sld [smem:[#allocation3 + $0x3b]] }
 0x164   : > { %v4556_v48 = vadd.f32 %v1756_v42, %v1753_v16  ;;  %v1751_v34 = vsel %vm3709_vm5, %v1734_v47, %v1744_v33  ;;  %v1248_v35 = vmul.f32 %v1246_v49, %v4207_v51  ;;  %v1276_v6 = vstv %s4532_s19  ;;  %s4802_s19 = sld [smem:[#allocation3 + $0x40]] }
 0x165   : > { %1107 = vrot.lane.b32.xlu1 %v1104_v2, %s3533_s2  ;;  %1236 = vrot.lane.b32.xlu0 %v1232_v20, %s5838_s6  ;;  %v1752_v20 = vsel %vm3705_vm4, %v1739_v11, %v1745_v39  ;;  %v1247_v2 = vmul.f32 %v1246_v49, %v4192_v7  ;;  %v1757_v17 = vmul.f32 -1.26880515e-08, %v1751_v34  ;;  %v1262_v42 = vmul.f32 %v1261_v57, %v4192_v7 }
 0x166   : > { %v1758_v36 = vmul.f32 -1.26880515e-08, %v1752_v20  ;;  %v1277_v56 = vmul.f32 %v1276_v6, %v4192_v7  ;;  %v1263_v11 = vmul.f32 %v1261_v57, %v4207_v51  ;;  %v1291_v39 = vstv %s3179_s20  ;;  %s4807_s20 = sld [smem:[#allocation3 + $0x42]] }
 0x167   : > { %v4572_v30 = vadd.f32 %v1757_v17, %v1754_v44  ;;  %v1278_v47 = vmul.f32 %v1276_v6, %v4207_v51  ;;  %v1292_v49 = vmul.f32 %v1291_v39, %v4192_v7  ;;  %v1293_v60 = vmul.f32 %v1291_v39, %v4207_v51 }
 0x168   : > { %v4568_v16 = vadd.f32 %v1758_v36, %v1755_v41  ;;  %v1397_v41 = vstv %s3184_s23  ;;  %v1503_v36 = vstv %s3189_s26  ;;  %s4809_s23 = sld [smem:[#allocation3 + $0x43]]  ;;  %s4812_s26 = sld [smem:[#allocation3 + $0x37]] }
 0x169   : > { %1238 = vrot.lane.b32.xlu1 %v1233_v21, %s5838_s6  ;;  %1251 = vrot.lane.b32.xlu0 %v1247_v2, %s3531_s0  ;;  %v1294_v21 = vmul.f32 %v1291_v39, %v4218_v9  ;;  %v1398_v20 = vmul.f32 %v1397_v41, %v4192_v7  ;;  %v1399_v33 = vmul.f32 %v1397_v41, %v4207_v51  ;;  %v1298_v34 = vrot.slane %v1292_v49, 1 }
 0x16a   : > { %v1400_v2 = vmul.f32 %v1397_v41, %v4218_v9  ;;  %v1299_v44 = vrot.slane %v1293_v60, 1  ;;  %v1504_v17 = vmul.f32 %v1503_v36, %v4192_v7  ;;  %v1505_v39 = vmul.f32 %v1503_v36, %v4207_v51 }
 0x16b   : > { %v1301_v57 = vrot.slane %v1294_v21, 1  ;;  %v1405_v6 = vrot.slane %v1399_v33, 2  ;;  %v1506_v49 = vmul.f32 %v1503_v36, %v4218_v9 }
 0x16c   : > { %v4593_v54 = vsel %vm523_vm2, %v1298_v34, %v1299_v44 }
 0x16d   : > { %1253 = vrot.lane.b32.xlu1 %v1248_v35, %s3531_s0  ;;  %1266 = vrot.lane.b32.xlu0 %v1262_v42, %s3532_s1  ;;  %v1404_v35 = vrot.slane %v1398_v20, 2  ;;  %v1407_v42 = vrot.slane %v1400_v2, 2  ;;  %v4596_v41 = vsel %vm523_vm2, %v1299_v44, %v1301_v57  ;;  %v1609_v20 = vstv %s4575_s17  ;;  %s4814_s17 = sld [smem:[#allocation3 + $0x3c]] }
 0x16e   : > { %v1513_v33 = vrot.slane %v1506_v49, 3  ;;  %v1610_v2 = vmul.f32 %v1609_v20, %v4192_v7  ;;  %v1611_v34 = vmul.f32 %v1609_v20, %v4207_v51  ;;  %v1612_v44 = vmul.f32 %v1609_v20, %v4218_v9 }
 0x16f   : > { %v4600_v60 = vsel %vm801_vm9, %v1404_v35, %v1405_v6  ;;  %v4603_v21 = vsel %vm801_vm9, %v1405_v6, %v1407_v42  ;;  %v688_v42 = vstv %s3150_s7  ;;  %s4825_s7 = sld [smem:[#allocation3 + $0x45]] }
 0x170   : > { %v1617_v35 = vrot.slane %v1611_v34, 4  ;;  %v1619_v6 = vrot.slane %v1612_v44, 4  ;;  %v690_v49 = vmul.f32 %v688_v42, %v3905_v3  ;;  %v689_v20 = vmul.f32 %v688_v42, %v3868_v55 }
 0x171   : > { %1268 = vrot.lane.b32.xlu1 %v1263_v11, %s3532_s1  ;;  %1281 = vrot.lane.b32.xlu0 %v1277_v56, %s3533_s2  ;;  %v1510_v11 = vrot.slane %v1504_v17, 3  ;;  %v1511_v56 = vrot.slane %v1505_v39, 3  ;;  %v1616_v17 = vrot.slane %v1610_v2, 4 }
 0x172   : > { %v4624_v9 = vsel %vm1015_vm11, %v1617_v35, %v1619_v6  ;;  %v696_v34 = vrot.slane %v690_v49, 1 }
 0x173   : > { %v4613_v36 = vsel %vm908_vm10, %v1510_v11, %v1511_v56  ;;  %v4616_v57 = vsel %vm908_vm10, %v1511_v56, %v1513_v33 }
 0x175   : > { %1283 = vrot.lane.b32.xlu1 %v1278_v47, %s3533_s2  ;;  %1321 = vrot.lane.b32.xlu0 %v4273_v26, %s5838_s6  ;;  %v4621_v47 = vsel %vm1015_vm11, %v1616_v17, %v1617_v35 }
 0x179   : > { %1323 = vrot.lane.b32.xlu1 %v4283_v27, %s5838_s6  ;;  %1343 = vrot.lane.b32.xlu0 %v4280_v59, %s3531_s0 }
 0x17d   : > { %1345 = vrot.lane.b32.xlu1 %v4295_v38, %s3531_s0  ;;  %1365 = vrot.lane.b32.xlu0 %v4292_v12, %s3532_s1  ;;  %v619_v12 = vstv %s618_s28  ;;  %s4819_s28 = sld [smem:[#allocation3 + $0x41]] }
 0x181   : > { %1367 = vrot.lane.b32.xlu1 %v4314_v53, %s3532_s1  ;;  %1387 = vrot.lane.b32.xlu0 %v4311_v45, %s3533_s2  ;;  %v620_v53 = vmul.f32 %v619_v12, %v3868_v55 }
 0x185   : > { %1389 = vrot.lane.b32.xlu1 %v4332_v24, %s3533_s2  ;;  %1427 = vrot.lane.b32.xlu0 %v4329_v25, %s5838_s6  ;;  %v623_v25 = vstv %s622_s29  ;;  %s4821_s29 = sld [smem:[#allocation3 + $0x44]] }
 0x187   : > { %v634_v26 = vpop.permute.xlu0 %633 }
 0x189   : > { %1429 = vrot.lane.b32.xlu1 %v4359_v31, %s5838_s6  ;;  %1449 = vrot.lane.b32.xlu0 %v4337_v1, %s3531_s0  ;;  %v621_v1 = vmul.f32 %v619_v12, %v3905_v3 }
 0x18b   : > { %v636_v59 = vpop.permute.xlu1 %635  ;;  %v649_v27 = vpop.permute.xlu0 %648  ;;  %v625_v11 = vadd.f32 %v623_v25, %v621_v1 }
 0x18d   : > { %1451 = vrot.lane.b32.xlu1 %v4371_v46, %s3531_s0  ;;  %1471 = vrot.lane.b32.xlu0 %v4368_v28, %s3532_s1  ;;  %v624_v46 = vadd.f32 %v623_v25, %v620_v53 }
 0x18f   : > { %v651_v38 = vpop.permute.xlu1 %650  ;;  %v664_v45 = vpop.permute.xlu0 %663  ;;  %v639_v28 = vadd.f32 %v634_v26, %v624_v46 }
 0x191   : > { %1473 = vrot.lane.b32.xlu1 %v4388_v14, %s3532_s1  ;;  %1493 = vrot.lane.b32.xlu0 %v4379_v10, %s3533_s2  ;;  %v654_v56 = vadd.f32 %v649_v27, %v639_v28  ;;  %v640_v10 = vadd.f32 %v636_v59, %v625_v11 }
 0x193   : > { %v666_v24 = vpop.permute.xlu1 %665  ;;  %v679_v31 = vpop.permute.xlu0 %678  ;;  %v655_v2 = vadd.f32 %v651_v38, %v640_v10 }
 0x195   : > { %1495 = vrot.lane.b32.xlu1 %v4408_v40, %s3533_s2  ;;  %1533 = vrot.lane.b32.xlu0 %v4397_v5, %s5838_s6  ;;  %v669_v40 = vadd.f32 %v664_v45, %v654_v56  ;;  %v691_v5 = vmul.f32 %v688_v42, %v3968_v29  ;;  %v670_v35 = vadd.f32 %v666_v24, %v655_v2 }
 0x197   : > { %v681_v39 = vpop.permute.xlu1 %680  ;;  %v719_v14 = vpop.permute.xlu0 %718  ;;  %v684_v17 = vadd.f32 %v679_v31, %v669_v40  ;;  %v698_v6 = vrot.slane %v691_v5, 1 }
 0x198   : > { %v685_v59 = vadd.f32 %v681_v39, %v670_v35 }
 0x199   : > { %1535 = vrot.lane.b32.xlu1 %v4431_v15, %s5838_s6  ;;  %1555 = vrot.lane.b32.xlu0 %v4428_v8, %s3531_s0  ;;  %v695_v15 = vrot.slane %v689_v20, 1 }
 0x19b   : > { %v721_v33 = vpop.permute.xlu1 %720  ;;  %v741_v44 = vpop.permute.xlu0 %740  ;;  %v697_v8 = vsel %vm523_vm2, %v695_v15, %v696_v34 }
 0x19c   : > { %v702_v12 = vadd.f32 %v697_v8, %v684_v17 }
 0x19d   : > { %1557 = vrot.lane.b32.xlu1 %v4455_v43, %s3531_s0  ;;  %1577 = vrot.lane.b32.xlu0 %v4441_v37, %s3532_s1  ;;  %v699_v43 = vsel %vm523_vm2, %v696_v34, %v698_v6  ;;  %v794_v37 = vstv %s3155_s8  ;;  %s4827_s8 = sld [smem:[#allocation3 + $0x47]] }
 0x19e   : > { %v703_v45 = vadd.f32 %v699_v43, %v685_v59  ;;  %v724_v25 = vadd.f32 %v719_v14, %v702_v12  ;;  %v796_v24 = vmul.f32 %v794_v37, %v3905_v3  ;;  %v797_v42 = vmul.f32 %v794_v37, %v3968_v29 }
 0x19f   : > { %v743_v26 = vpop.permute.xlu1 %742  ;;  %v763_v27 = vpop.permute.xlu0 %762 }
 0x1a0   : > { %v746_v1 = vadd.f32 %v741_v44, %v724_v25  ;;  %v725_v31 = vadd.f32 %v721_v33, %v703_v45  ;;  %v805_v10 = vrot.slane %v797_v42, 2  ;;  %v901_v44 = vstv %s3160_s5  ;;  %s4832_s5 = sld [smem:[#allocation3 + $0x48]] }
 0x1a1   : > { %1579 = vrot.lane.b32.xlu1 %v4473_v63, %s3532_s1  ;;  %1599 = vrot.lane.b32.xlu0 %v4465_v23, %s3533_s2  ;;  %v795_v23 = vmul.f32 %v794_v37, %v3868_v55  ;;  %v903_v35 = vmul.f32 %v901_v44, %v3905_v3 }
 0x1a2   : > { %v768_v28 = vadd.f32 %v763_v27, %v746_v1  ;;  %v747_v39 = vadd.f32 %v743_v26, %v725_v31 }
 0x1a3   : > { %v765_v38 = vpop.permute.xlu1 %764  ;;  %v785_v53 = vpop.permute.xlu0 %784  ;;  %v802_v49 = vrot.slane %v795_v23, 2  ;;  %v910_v59 = vrot.slane %v903_v35, 3 }
 0x1a4   : > { %v769_v14 = vadd.f32 %v765_v38, %v747_v39 }
 0x1a5   : > { %1601 = vrot.lane.b32.xlu1 %v4482_v0, %s3533_s2  ;;  %1639 = vrot.lane.b32.xlu0 %v4476_v62, %s5838_s6  ;;  %v803_v0 = vrot.slane %v796_v24, 2  ;;  %v790_v62 = vadd.f32 %v785_v53, %v768_v28  ;;  %v1008_v28 = vstv %s3165_s10  ;;  %s4834_s10 = sld [smem:[#allocation3 + $0x49]] }
 0x1a6   : > { %v1010_v42 = vmul.f32 %v1008_v28, %v3905_v3 }
 0x1a7   : > { %v787_v63 = vpop.permute.xlu1 %786  ;;  %v826_v46 = vpop.permute.xlu0 %825  ;;  %v804_v20 = vsel %vm801_vm9, %v802_v49, %v803_v0 }
 0x1a8   : > { %v809_v40 = vadd.f32 %v804_v20, %v790_v62  ;;  %v1017_v20 = vrot.slane %v1010_v42, 4 }
 0x1a9   : > { %1641 = vrot.lane.b32.xlu1 %v4505_v58, %s5838_s6  ;;  %1661 = vrot.lane.b32.xlu0 %v4502_v22, %s3531_s0  ;;  %v791_v58 = vadd.f32 %v787_v63, %v769_v14  ;;  %v806_v22 = vsel %vm801_vm9, %v803_v0, %v805_v10  ;;  %v1009_v14 = vmul.f32 %v1008_v28, %v3868_v55 }
 0x1aa   : > { %v831_v34 = vadd.f32 %v826_v46, %v809_v40 }
 0x1ab   : > { %v828_v11 = vpop.permute.xlu1 %827  ;;  %v848_v56 = vpop.permute.xlu0 %847  ;;  %v810_v2 = vadd.f32 %v806_v22, %v791_v58 }
 0x1ac   : > { %v853_v15 = vadd.f32 %v848_v56, %v831_v34  ;;  %v1011_v56 = vmul.f32 %v1008_v28, %v3968_v29 }
 0x1ad   : > { %1663 = vrot.lane.b32.xlu1 %v4508_v4, %s3531_s0  ;;  %1683 = vrot.lane.b32.xlu0 %v4519_v13, %s3532_s1  ;;  %v832_v13 = vadd.f32 %v828_v11, %v810_v2 }
 0x1af   : > { %v850_v5 = vpop.permute.xlu1 %849  ;;  %v870_v33 = vpop.permute.xlu0 %869 }
 0x1b0   : > { %v875_v6 = vadd.f32 %v870_v33, %v853_v15  ;;  %v854_v8 = vadd.f32 %v850_v5, %v832_v13  ;;  %v1016_v5 = vrot.slane %v1009_v14, 4 }
 0x1b1   : > { %1685 = vrot.lane.b32.xlu1 %v4527_v19, %s3532_s1  ;;  %1705 = vrot.lane.b32.xlu0 %v4535_v52, %s3533_s2  ;;  %v902_v19 = vmul.f32 %v901_v44, %v3868_v55  ;;  %v904_v52 = vmul.f32 %v901_v44, %v3968_v29  ;;  %v1019_v55 = vrot.slane %v1011_v56, 4 }
 0x1b2   : > { %v1018_v22 = vsel %vm1015_vm11, %v1016_v5, %v1017_v20 }
 0x1b3   : > { %v872_v4 = vpop.permute.xlu1 %871  ;;  %v892_v17 = vpop.permute.xlu0 %891  ;;  %v912_v38 = vrot.slane %v904_v52, 3  ;;  %v1020_v44 = vsel %vm1015_vm11, %v1017_v20, %v1019_v55 }
 0x1b4   : > { %v897_v12 = vadd.f32 %v892_v17, %v875_v6  ;;  %v876_v43 = vadd.f32 %v872_v4, %v854_v8 }
 0x1b5   : > { %1707 = vrot.lane.b32.xlu1 %v4548_v18, %s3533_s2  ;;  %1765 = vrot.lane.b32.xlu0 %v4556_v48, %s5838_s6  ;;  %v909_v18 = vrot.slane %v902_v19, 3  ;;  %v913_v1 = vsel %vm908_vm10, %v910_v59, %v912_v38 }
 0x1b7   : > { %v894_v26 = vpop.permute.xlu1 %893  ;;  %v933_v27 = vpop.permute.xlu0 %932  ;;  %v911_v53 = vsel %vm908_vm10, %v909_v18, %v910_v59 }
 0x1b8   : > { %v898_v25 = vadd.f32 %v894_v26, %v876_v43  ;;  %v916_v24 = vadd.f32 %v911_v53, %v897_v12  ;;  %v1222_v43 = vstv %s3173_s21  ;;  %s4837_s21 = sld [smem:[#allocation3 + $0x4a]] }
 0x1b9   : > { %1767 = vrot.lane.b32.xlu1 %v4572_v30, %s5838_s6  ;;  %1769 = vrot.lane.b32.xlu0 %v4568_v16, %s5838_s6  ;;  %v1223_v53 = vmul.f32 %v1222_v43, %v4192_v7 }
 0x1ba   : > { %v917_v31 = vadd.f32 %v913_v1, %v898_v25  ;;  %v938_v46 = vadd.f32 %v933_v27, %v916_v24  ;;  %v1226_v25 = vstv %s3174_s12  ;;  %v1224_v1 = vmul.f32 %v1222_v43, %v4207_v51  ;;  %s4839_s12 = sld [smem:[#allocation3 + $0x46]] }
 0x1bb   : > { %v935_v45 = vpop.permute.xlu1 %934  ;;  %v955_v37 = vpop.permute.xlu0 %954 }
 0x1bc   : > { %v960_v39 = vadd.f32 %v955_v37, %v938_v46  ;;  %v939_v62 = vadd.f32 %v935_v45, %v917_v31  ;;  %v1228_v46 = vadd.f32 %v1226_v25, %v1224_v1 }
 0x1bd   : > { %1774 = vrot.lane.b32.xlu1 %v4556_v48, %s5853_s11  ;;  %1776 = vrot.lane.b32.xlu0 %v4572_v30, %s5853_s11 }
 0x1bf   : > { %v957_v63 = vpop.permute.xlu1 %956  ;;  %v977_v23 = vpop.permute.xlu0 %976 }
 0x1c0   : > { %v982_v49 = vadd.f32 %v977_v23, %v960_v39  ;;  %v961_v10 = vadd.f32 %v957_v63, %v939_v62  ;;  %v1227_v63 = vadd.f32 %v1226_v25, %v1223_v53 }
 0x1c1   : > { %1778 = vrot.lane.b32.xlu1 %v4568_v16, %s5853_s11  ;;  %1786 = vrot.lane.b32.xlu0 %v4556_v48, %s5854_s9 }
 0x1c3   : > { %v979_v0 = vpop.permute.xlu1 %978  ;;  %v999_v11 = vpop.permute.xlu0 %998 }
 0x1c4   : > { %v1004_v58 = vadd.f32 %v999_v11, %v982_v49  ;;  %v983_v3 = vadd.f32 %v979_v0, %v961_v10 }
 0x1c5   : > { %1788 = vrot.lane.b32.xlu1 %v4572_v30, %s5854_s9  ;;  %1790 = vrot.lane.b32.xlu0 %v4568_v16, %s5854_s9 }
 0x1c6   : > { %v1023_v29 = vadd.f32 %v1018_v22, %v1004_v58 }
 0x1c7   : > { %v1001_v40 = vpop.permute.xlu1 %1000  ;;  %v1040_v33 = vpop.permute.xlu0 %1039 }
 0x1c8   : > { %v1005_v2 = vadd.f32 %v1001_v40, %v983_v3  ;;  %v1045_v35 = vadd.f32 %v1040_v33, %v1023_v29 }
 0x1c9   : > { %1795 = vrot.lane.b32.xlu1 %v4556_v48, %s5855_s14  ;;  %1797 = vrot.lane.b32.xlu0 %v4572_v30, %s5855_s14 }
 0x1ca   : > { %v1024_v17 = vadd.f32 %v1020_v44, %v1005_v2 }
 0x1cb   : > { %v1042_v34 = vpop.permute.xlu1 %1041  ;;  %v1062_v4 = vpop.permute.xlu0 %1061 }
 0x1cc   : > { %v1067_v19 = vadd.f32 %v1062_v4, %v1045_v35  ;;  %v1046_v6 = vadd.f32 %v1042_v34, %v1024_v17 }
 0x1cd   : > { %1799 = vrot.lane.b32.xlu1 %v4568_v16, %s5855_s14 }
 0x1cf   : > { %v1064_v15 = vpop.permute.xlu1 %1063  ;;  %v1084_v13 = vpop.permute.xlu0 %1083 }
 0x1d0   : > { %v1089_v26 = vadd.f32 %v1084_v13, %v1067_v19  ;;  %v1068_v8 = vadd.f32 %v1064_v15, %v1046_v6 }
 0x1d3   : > { %v1086_v52 = vpop.permute.xlu1 %1085  ;;  %v1106_v59 = vpop.permute.xlu0 %1105 }
 0x1d4   : > { %v1111_v27 = vadd.f32 %v1106_v59, %v1089_v26  ;;  %v1090_v12 = vadd.f32 %v1086_v52, %v1068_v8 }
 0x1d6   : > { %1114 = vst.msk [vmem:[%s4734_s22] sm:$0xff] %vm1113_vm12, %v1111_v27 }
 0x1d7   : > { %v1108_v18 = vpop.permute.xlu1 %1107  ;;  %v1237_v38 = vpop.permute.xlu0 %1236 }
 0x1d8   : > { %v1112_v45 = vadd.f32 %v1108_v18, %v1090_v12  ;;  %v1242_v31 = vadd.f32 %v1237_v38, %v1227_v63 }
 0x1da   : > { %1115 = vst.msk [vmem:[%s4734_s22 + $0x8] sm:$0xff] %vm1113_vm12, %v1112_v45 }
 0x1db   : > { %v1239_v37 = vpop.permute.xlu1 %1238  ;;  %v1252_v24 = vpop.permute.xlu0 %1251 }
 0x1dc   : > { %v1257_v42 = vadd.f32 %v1252_v24, %v1242_v31  ;;  %v1243_v39 = vadd.f32 %v1239_v37, %v1228_v46 }
 0x1df   : > { %v1254_v23 = vpop.permute.xlu1 %1253  ;;  %v1267_v28 = vpop.permute.xlu0 %1266 }
 0x1e0   : > { %v1272_v0 = vadd.f32 %v1267_v28, %v1257_v42  ;;  %v1258_v11 = vadd.f32 %v1254_v23, %v1243_v39 }
 0x1e3   : > { %v1269_v62 = vpop.permute.xlu1 %1268  ;;  %v1282_v14 = vpop.permute.xlu0 %1281 }
 0x1e4   : > { %v1287_v49 = vadd.f32 %v1282_v14, %v1272_v0  ;;  %v1273_v7 = vadd.f32 %v1269_v62, %v1258_v11 }
 0x1e6   : > { %v1305_v56 = vadd.f32 %v4593_v54, %v1287_v49 }
 0x1e7   : > { %v1284_v10 = vpop.permute.xlu1 %1283  ;;  %v1322_v20 = vpop.permute.xlu0 %1321 }
 0x1e8   : > { %v1288_v58 = vadd.f32 %v1284_v10, %v1273_v7  ;;  %v1327_v5 = vadd.f32 %v1322_v20, %v1305_v56 }
 0x1ea   : > { %v1306_v51 = vadd.f32 %v4596_v41, %v1288_v58 }
 0x1eb   : > { %v1324_v40 = vpop.permute.xlu1 %1323  ;;  %v1344_v3 = vpop.permute.xlu0 %1343 }
 0x1ec   : > { %v1349_v22 = vadd.f32 %v1344_v3, %v1327_v5  ;;  %v1328_v2 = vadd.f32 %v1324_v40, %v1306_v51 }
 0x1ef   : > { %v1346_v33 = vpop.permute.xlu1 %1345  ;;  %v1366_v55 = vpop.permute.xlu0 %1365 }
 0x1f0   : > { %v1371_v29 = vadd.f32 %v1366_v55, %v1349_v22  ;;  %v1350_v4 = vadd.f32 %v1346_v33, %v1328_v2 }
 0x1f3   : > { %v1368_v34 = vpop.permute.xlu1 %1367  ;;  %v1388_v44 = vpop.permute.xlu0 %1387 }
 0x1f4   : > { %v1393_v17 = vadd.f32 %v1388_v44, %v1371_v29  ;;  %v1372_v35 = vadd.f32 %v1368_v34, %v1350_v4 }
 0x1f6   : > { %v1411_v54 = vadd.f32 %v4600_v60, %v1393_v17 }
 0x1f7   : > { %v1390_v15 = vpop.permute.xlu1 %1389  ;;  %v1428_v13 = vpop.permute.xlu0 %1427 }
 0x1f8   : > { %v1394_v19 = vadd.f32 %v1390_v15, %v1372_v35  ;;  %v1433_v52 = vadd.f32 %v1428_v13, %v1411_v54 }
 0x1fa   : > { %v1412_v41 = vadd.f32 %v4603_v21, %v1394_v19 }
 0x1fb   : > { %v1430_v6 = vpop.permute.xlu1 %1429  ;;  %v1450_v26 = vpop.permute.xlu0 %1449 }
 0x1fc   : > { %v1455_v27 = vadd.f32 %v1450_v26, %v1433_v52  ;;  %v1434_v12 = vadd.f32 %v1430_v6, %v1412_v41  ;;  %v2324_v52 = vld [vmem:[#allocation2] sm:$0xff] }
 0x1ff   : > { %v1452_v8 = vpop.permute.xlu1 %1451  ;;  %v1472_v59 = vpop.permute.xlu0 %1471 }
 0x200   : > { %v1477_v43 = vadd.f32 %v1472_v59, %v1455_v27  ;;  %v1456_v38 = vadd.f32 %v1452_v8, %v1434_v12  ;;  %v2325_v8 = vld [vmem:[#allocation2 + $0x8] sm:$0xff]  ;;  %v2326_v59 = vld [vmem:[#allocation2 + $0x10] sm:$0xff]  ;;  %v1810_v27 = vmul.f32 0.99999994, %v4556_v48 }
 0x201   : > { %v2354_v50 = vmul.f32 0.99999994, %v2325_v8 }
 0x203   : > { %v1474_v18 = vpop.permute.xlu1 %1473  ;;  %v1494_v45 = vpop.permute.xlu0 %1493 }
 0x204   : > { %v1499_v53 = vadd.f32 %v1494_v45, %v1477_v43  ;;  %v1478_v25 = vadd.f32 %v1474_v18, %v1456_v38  ;;  %v2331_v43 = vrot.slane %v2325_v8, 1  ;;  %v2333_v18 = vrot.slane %v2326_v59, 1 }
 0x205   : > { %v2342_v38 = vrot.slane %v2324_v52, 7  ;;  %v2343_v45 = vrot.slane %v2325_v8, 7  ;;  %v4873_v8 = vstv %s4809_s23  ;;  %s5222_s23 = sld [smem:[#allocation3 + $0x57]] }
 0x206   : > { %v1517_v60 = vadd.f32 %v4613_v36, %v1499_v53  ;;  %v1811_v53 = vmul.f32 0.99999994, %v4572_v30  ;;  %v1831_v30 = vstv %s4758_s24  ;;  %s3205_s24 = sld [smem:[#allocation6 + $0x2]] }
 0x207   : > { %v1496_v37 = vpop.permute.xlu1 %1495  ;;  %v1534_v24 = vpop.permute.xlu0 %1533 }
 0x208   : > { %v1500_v1 = vadd.f32 %v1496_v37, %v1478_v25  ;;  %v1539_v23 = vadd.f32 %v1534_v24, %v1517_v60  ;;  %v2330_v24 = vrot.slane %v2324_v52, 1 }
 0x20a   : > { %v1518_v21 = vadd.f32 %v4616_v57, %v1500_v1 }
 0x20b   : > { %v1536_v63 = vpop.permute.xlu1 %1535  ;;  %v1556_v31 = vpop.permute.xlu0 %1555 }
 0x20c   : > { %v1561_v42 = vadd.f32 %v1556_v31, %v1539_v23  ;;  %v1540_v39 = vadd.f32 %v1536_v63, %v1518_v21  ;;  %v2340_v63 = vrot.slane %v2326_v59, 7 }
 0x20f   : > { %v1558_v46 = vpop.permute.xlu1 %1557  ;;  %v1578_v28 = vpop.permute.xlu0 %1577 }
 0x210   : > { %v1583_v0 = vadd.f32 %v1578_v28, %v1561_v42  ;;  %v1562_v11 = vadd.f32 %v1558_v46, %v1540_v39  ;;  %v2334_v28 = vsel %vm523_vm2, %v2331_v43, %v2333_v18  ;;  %v2344_v42 = vsel %vm536_vm3, %v2342_v38, %v2343_v45 }
 0x213   : > { %v1580_v62 = vpop.permute.xlu1 %1579  ;;  %v1600_v14 = vpop.permute.xlu0 %1599 }
 0x214   : > { %v1605_v49 = vadd.f32 %v1600_v14, %v1583_v0  ;;  %v1584_v7 = vadd.f32 %v1580_v62, %v1562_v11  ;;  %v2332_v62 = vsel %vm523_vm2, %v2330_v24, %v2331_v43  ;;  %v2349_v11 = vsel %vm536_vm3, %v2340_v63, %v2342_v38 }
 0x215   : > { %v4879_v43 = vstv %s4821_s29  ;;  %s5237_s29 = sld [smem:[#allocation3 + $0x5c]] }
 0x216   : > { %v1623_v36 = vadd.f32 %v4621_v47, %v1605_v49  ;;  %v2351_v49 = vsel %vm3709_vm5, %v2334_v28, %v2344_v42 }
 0x217   : > { %v1602_v56 = vpop.permute.xlu1 %1601  ;;  %v1640_v10 = vpop.permute.xlu0 %1639 }
 0x218   : > { %v1606_v20 = vadd.f32 %v1602_v56, %v1584_v7  ;;  %v1645_v40 = vadd.f32 %v1640_v10, %v1623_v36  ;;  %v1846_v36 = vstv %s4763_s30  ;;  %v2339_v56 = vsel %vm523_vm2, %v2333_v18, %v2330_v24  ;;  %s5201_s30 = sld [smem:[#allocation3 + $0x4c]] }
 0x219   : > { %v2345_v10 = vsel %vm536_vm3, %v2343_v45, %v2340_v63  ;;  %v4882_v18 = vstv %s4825_s7  ;;  %v4889_v45 = vstv %s4827_s8  ;;  %v4907_v24 = vstv %s4837_s21  ;;  %s5239_s7 = sld [smem:[#allocation3 + $0x5e]]  ;;  %s5242_s8 = sld [smem:[#allocation3 + $0x60]] }
 0x21a   : > { %v1624_v57 = vadd.f32 %v4624_v9, %v1606_v20  ;;  %v2350_v20 = vsel %vm3698_vm1, %v2332_v62, %v2349_v11  ;;  %s5265_s21 = sld [smem:[#allocation3 + $0x63]] }
 0x21b   : > { %v1642_v58 = vpop.permute.xlu1 %1641  ;;  %v1662_v51 = vpop.permute.xlu0 %1661 }
 0x21c   : > { %v1667_v33 = vadd.f32 %v1662_v51, %v1645_v40  ;;  %v1646_v55 = vadd.f32 %v1642_v58, %v1624_v57  ;;  %v2357_v58 = vmul.f32 -1.26880515e-08, %v2351_v49  ;;  %v2353_v40 = vmul.f32 0.99999994, %v2324_v52 }
 0x21d   : > { %v4870_v52 = vstv %s4807_s20  ;;  %s5217_s20 = sld [smem:[#allocation3 + $0x56]] }
 0x21f   : > { %v1664_v3 = vpop.permute.xlu1 %1663  ;;  %v1684_v5 = vpop.permute.xlu0 %1683 }
 0x220   : > { %v1689_v22 = vadd.f32 %v1684_v5, %v1667_v33  ;;  %v1668_v29 = vadd.f32 %v1664_v3, %v1646_v55  ;;  %v2352_v5 = vsel %vm3705_vm4, %v2339_v56, %v2345_v10  ;;  %v1861_v33 = vstv %s4775_s27  ;;  %s5203_s27 = sld [smem:[#allocation3 + $0x4d]] }
 0x221   : > { %v2356_v55 = vmul.f32 -1.26880515e-08, %v2350_v20 }
 0x223   : > { %v1686_v2 = vpop.permute.xlu1 %1685  ;;  %v1706_v34 = vpop.permute.xlu0 %1705 }
 0x224   : > { %v1711_v4 = vadd.f32 %v1706_v34, %v1689_v22  ;;  %v1690_v47 = vadd.f32 %v1686_v2, %v1668_v29  ;;  %v2355_v2 = vmul.f32 0.99999994, %v2326_v59  ;;  %v2358_v29 = vmul.f32 -1.26880515e-08, %v2352_v5 }
 0x225   : > { %v1891_v59 = vstv %s4812_s26  ;;  %s5224_s26 = sld [smem:[#allocation3 + $0x58]] }
 0x226   : > { %3199 = vst.msk [vmem:[%s4734_s22 + $0x10] sm:$0xff] %vm1113_vm12, %v1711_v4 }
 0x227   : > { %v1708_v44 = vpop.permute.xlu1 %1707  ;;  %v1766_v17 = vpop.permute.xlu0 %1765 }
 0x228   : > { %v1712_v35 = vadd.f32 %v1708_v44, %v1690_v47  ;;  %v1812_v47 = vmul.f32 0.99999994, %v4568_v16  ;;  %v1931_v16 = vstv %s4792_s15  ;;  %s5209_s15 = sld [smem:[#allocation3 + $0x51]] }
 0x22a   : > { %3200 = vst.msk [vmem:[%s4734_s22 + $0x18] sm:$0xff] %vm1113_vm12, %v1712_v35  ;;  %v4849_v35 = vadd.f32 %v2357_v58, %v2354_v50 }
 0x22b   : > { %v1768_v9 = vpop.permute.xlu1 %1767  ;;  %v4754_v54 = vpop.permute.xlu0 %1769 }
 0x22f   : > { %v1775_v15 = vpop.permute.xlu1 %1774  ;;  %v1777_v13 = vpop.permute.xlu0 %1776 }
 0x230   : > { %v1783_v25 = vsel %vm578_vm6, %v1766_v17, %v1775_v15  ;;  %v1784_v1 = vsel %vm578_vm6, %v1768_v9, %v1777_v13  ;;  %v4852_v9 = vadd.f32 %v2356_v55, %v2353_v40  ;;  %v1909_v15 = vstv %s4787_s4  ;;  %s5207_s4 = sld [smem:[#allocation3 + $0x4f]] }
 0x231   : > { %v4858_v13 = vadd.f32 %v2358_v29, %v2355_v2 }
 0x233   : > { %v4756_v19 = vpop.permute.xlu1 %1778  ;;  %v1787_v41 = vpop.permute.xlu0 %1786 }
 0x234   : > { %v1785_v34 = vsel %vm578_vm6, %v4754_v54, %v4756_v19  ;;  %v1876_v54 = vstv %s4785_s3  ;;  %v4861_v19 = vstv %s4794_s16  ;;  %s5205_s3 = sld [smem:[#allocation3 + $0x4e]]  ;;  %s5211_s16 = sld [smem:[#allocation3 + $0x52]] }
 0x237   : > { %v1789_v6 = vpop.permute.xlu1 %1788  ;;  %v4760_v26 = vpop.permute.xlu0 %1790 }
 0x23b   : > { %v1796_v12 = vpop.permute.xlu1 %1795  ;;  %v1798_v60 = vpop.permute.xlu0 %1797 }
 0x23c   : > { %v1804_v37 = vsel %vm600_vm8, %v1787_v41, %v1796_v12  ;;  %v1805_v48 = vsel %vm600_vm8, %v1789_v6, %v1798_v60  ;;  %v4864_v41 = vstv %s4800_s18  ;;  %v4867_v6 = vstv %s4802_s19  ;;  %s5213_s18 = sld [smem:[#allocation3 + $0x53]]  ;;  %s5215_s19 = sld [smem:[#allocation3 + $0x54]] }
 0x23d   : > { %v1807_v21 = vsel %vm3812_vm7, %v1783_v25, %v1804_v37  ;;  %v1808_v31 = vsel %vm3812_vm7, %v1784_v1, %v1805_v48  ;;  %v2103_v12 = vstv %s4819_s28  ;;  %v4895_v25 = vstv %s4834_s10  ;;  %s5233_s28 = sld [smem:[#allocation3 + $0x5b]]  ;;  %s5248_s10 = sld [smem:[#allocation3 + $0x62]] }
 0x23e   : > { %v1813_v23 = vmul.f32 -1.26880515e-08, %v1807_v21  ;;  %v1814_v46 = vmul.f32 -1.26880515e-08, %v1808_v31  ;;  %v4910_v1 = vstv %s4839_s12  ;;  %s5267_s12 = sld [smem:[#allocation3 + $0x50]] }
 0x23f   : > { %v1800_v57 = vpop.permute.xlu1 %1799 }
 0x240   : > { %v4779_v39 = vadd.f32 %v1813_v23, %v1810_v27  ;;  %v4781_v0 = vadd.f32 %v1814_v46, %v1811_v53  ;;  %v1806_v22 = vsel %vm600_vm8, %v4760_v26, %v1800_v57  ;;  %v1997_v27 = vstv %s4814_s17  ;;  %s5231_s17 = sld [smem:[#allocation3 + $0x59]] }
 0x241   : > { %v1809_v44 = vsel %vm3812_vm7, %v1785_v34, %v1806_v22  ;;  %v4892_v53 = vstv %s4832_s5  ;;  %s5244_s5 = sld [smem:[#allocation3 + $0x61]] }
 0x242   : > { %v1832_v14 = vmul.f32 %v1831_v30, %v4779_v39  ;;  %v1833_v7 = vmul.f32 %v1831_v30, %v4781_v0  ;;  %v1847_v51 = vmul.f32 %v1846_v36, %v4779_v39  ;;  %v1848_v61 = vmul.f32 %v1846_v36, %v4781_v0 }
 0x243   : > { %v1862_v4 = vmul.f32 %v1861_v33, %v4779_v39  ;;  %v1863_v17 = vmul.f32 %v1861_v33, %v4781_v0  ;;  %v1815_v26 = vmul.f32 -1.26880515e-08, %v1809_v44  ;;  %v2082_v38 = vmul.f32 %v4867_v6, %v4779_v39 }
 0x244   : > { %1836 = vrot.lane.b32.xlu0 %v1832_v14, %s5838_s6  ;;  %1838 = vrot.lane.b32.xlu1 %v1833_v7, %s5838_s6  ;;  %v4900_v60 = vmul.f32 %v1876_v54, %v4781_v0  ;;  %v4904_v37 = vmul.f32 %v4867_v6, %v4781_v0  ;;  %v4915_v21 = vmul.f32 %v1909_v15, %v4779_v39 }
 0x245   : > { %v4912_v48 = vadd.f32 %v1815_v26, %v1812_v47  ;;  %v4918_v63 = vmul.f32 %v1909_v15, %v4781_v0  ;;  %v2088_v31 = vrot.slane %v2082_v38, 2  ;;  %v4921_v23 = vmul.f32 %v1876_v54, %v4779_v39 }
 0x246   : > { %v2089_v46 = vrot.slane %v4904_v37, 2  ;;  %v2122_v30 = vmul.f32 %v4870_v52, %v4779_v39  ;;  %v4928_v28 = vmul.f32 %v4870_v52, %v4781_v0  ;;  %v4933_v42 = vmul.f32 %v1931_v16, %v4779_v39 }
 0x247   : > { %v4936_v62 = vmul.f32 %v1931_v16, %v4781_v0  ;;  %v4940_v11 = vmul.f32 %v4861_v19, %v4779_v39  ;;  %v2144_v14 = vmul.f32 %v4873_v8, %v4779_v39  ;;  %v2145_v56 = vmul.f32 %v4873_v8, %v4781_v0 }
 0x248   : > { %1851 = vrot.lane.b32.xlu0 %v1847_v51, %s3531_s0  ;;  %1853 = vrot.lane.b32.xlu1 %v1848_v61, %s3531_s0  ;;  %v4949_v49 = vsel %vm801_vm9, %v2088_v31, %v2089_v46  ;;  %v2128_v7 = vrot.slane %v2122_v30, 3  ;;  %v2129_v36 = vrot.slane %v4928_v28, 3  ;;  %v1916_v10 = vrot.slane %v4915_v21, 1 }
 0x249   : > { %v1917_v50 = vrot.slane %v4918_v63, 1  ;;  %v4958_v20 = vmul.f32 %v4861_v19, %v4781_v0  ;;  %v2150_v57 = vrot.slane %v2144_v14, 3  ;;  %v4961_v58 = vmul.f32 %v1909_v15, %v4912_v48 }
 0x24a   : > { %v4966_v51 = vsel %vm908_vm10, %v2128_v7, %v2129_v36  ;;  %v2151_v40 = vrot.slane %v2145_v56, 3  ;;  %v1892_v3 = vmul.f32 %v1891_v59, %v4779_v39  ;;  %v1938_v5 = vrot.slane %v4933_v42, 1 }
 0x24b   : > { %v4973_v61 = vmul.f32 %v1931_v16, %v4912_v48  ;;  %v1893_v33 = vmul.f32 %v1891_v59, %v4781_v0  ;;  %v1894_v55 = vmul.f32 %v1891_v59, %v4912_v48  ;;  %v1939_v22 = vrot.slane %v4936_v62, 1 }
 0x24c   : > { %1866 = vrot.lane.b32.xlu0 %v1862_v4, %s3532_s1  ;;  %1868 = vrot.lane.b32.xlu1 %v1863_v17, %s3532_s1  ;;  %v4981_v2 = vsel %vm908_vm10, %v2150_v57, %v2151_v40  ;;  %v1898_v29 = vrot.slane %v1892_v3, 1  ;;  %v1998_v34 = vmul.f32 %v1997_v27, %v4779_v39  ;;  %v1999_v44 = vmul.f32 %v1997_v27, %v4781_v0 }
 0x24d   : > { %v1899_v4 = vrot.slane %v1893_v33, 1  ;;  %v1901_v47 = vrot.slane %v1894_v55, 1  ;;  %v2000_v17 = vmul.f32 %v1997_v27, %v4912_v48  ;;  %v2104_v15 = vmul.f32 %v2103_v12, %v4779_v39 }
 0x24e   : > { %v2004_v54 = vrot.slane %v1998_v34, 2  ;;  %v2105_v16 = vmul.f32 %v2103_v12, %v4781_v0  ;;  %v2106_v26 = vmul.f32 %v2103_v12, %v4912_v48  ;;  %v2005_v21 = vrot.slane %v1999_v44, 2 }
 0x24f   : > { %v4992_v59 = vsel %vm523_vm2, %v1898_v29, %v1899_v4  ;;  %v4995_v38 = vsel %vm523_vm2, %v1899_v4, %v1901_v47  ;;  %v2007_v31 = vrot.slane %v2000_v17, 2  ;;  %v2110_v27 = vrot.slane %v2104_v15, 3 }
 0x250   : > { %2365 = vrot.lane.b32.xlu0 %v4852_v9, %s5838_s6  ;;  %2367 = vrot.lane.b32.xlu1 %v4849_v35, %s5838_s6  ;;  %v2111_v30 = vrot.slane %v2105_v16, 3  ;;  %v2113_v14 = vrot.slane %v2106_v26, 3  ;;  %v2146_v12 = vmul.f32 %v4873_v8, %v4912_v48  ;;  %v5002_v7 = vsel %vm801_vm9, %v2004_v54, %v2005_v21 }
 0x251   : > { %v5005_v56 = vsel %vm801_vm9, %v2005_v21, %v2007_v31  ;;  %v2166_v57 = vmul.f32 %v4879_v43, %v4779_v39  ;;  %v2167_v3 = vmul.f32 %v4879_v43, %v4781_v0  ;;  %v2168_v8 = vmul.f32 %v4879_v43, %v4912_v48 }
 0x252   : > { %v5012_v33 = vsel %vm908_vm10, %v2110_v27, %v2111_v30  ;;  %v5015_v55 = vsel %vm908_vm10, %v2111_v30, %v2113_v14  ;;  %v2153_v29 = vrot.slane %v2146_v12, 3  ;;  %v2188_v47 = vmul.f32 %v4882_v18, %v4779_v39 }
 0x253   : > { %v2172_v34 = vrot.slane %v2166_v57, 3  ;;  %v2173_v4 = vrot.slane %v2167_v3, 3  ;;  %v2189_v44 = vmul.f32 %v4882_v18, %v4781_v0  ;;  %v2175_v54 = vrot.slane %v2168_v8, 3 }
 0x254   : > { %2374 = vrot.lane.b32.xlu0 %v4852_v9, %s5853_s11  ;;  %2376 = vrot.lane.b32.xlu1 %v4849_v35, %s5853_s11  ;;  %v5028_v17 = vsel %vm908_vm10, %v2151_v40, %v2153_v29  ;;  %v2190_v43 = vmul.f32 %v4882_v18, %v4912_v48  ;;  %v2228_v15 = vmul.f32 %v4889_v45, %v4779_v39  ;;  %v1919_v26 = vrot.slane %v4961_v58, 1 }
 0x255   : > { %v1918_v16 = vsel %vm523_vm2, %v1916_v10, %v1917_v50  ;;  %v5039_v21 = vsel %vm908_vm10, %v2172_v34, %v2173_v4  ;;  %v2194_v31 = vrot.slane %v2188_v47, 3  ;;  %v5042_v40 = vsel %vm908_vm10, %v2173_v4, %v2175_v54 }
 0x256   : > { %v2195_v27 = vrot.slane %v2189_v44, 3  ;;  %v2197_v30 = vrot.slane %v2190_v43, 3  ;;  %v2229_v18 = vmul.f32 %v4889_v45, %v4781_v0  ;;  %v2234_v14 = vrot.slane %v2228_v15, 4 }
 0x257   : > { %v2230_v10 = vmul.f32 %v4889_v45, %v4912_v48  ;;  %v2250_v58 = vmul.f32 %v4892_v53, %v4779_v39  ;;  %v2251_v12 = vmul.f32 %v4892_v53, %v4781_v0  ;;  %v2252_v45 = vmul.f32 %v4892_v53, %v4912_v48 }
 0x258   : > { %2386 = vrot.lane.b32.xlu0 %v4852_v9, %s5854_s9  ;;  %2388 = vrot.lane.b32.xlu1 %v4849_v35, %s5854_s9  ;;  %v5059_v57 = vsel %vm908_vm10, %v2194_v31, %v2195_v27  ;;  %v5062_v3 = vsel %vm908_vm10, %v2195_v27, %v2197_v30  ;;  %v2235_v29 = vrot.slane %v2229_v18, 4  ;;  %v1941_v8 = vrot.slane %v4973_v61, 1 }
 0x259   : > { %v2237_v34 = vrot.slane %v2230_v10, 4  ;;  %v2256_v4 = vrot.slane %v2250_v58, 4  ;;  %v2257_v47 = vrot.slane %v2251_v12, 4  ;;  %v2259_v54 = vrot.slane %v2252_v45, 4 }
 0x25a   : > { %v5068_v44 = vsel %vm1015_vm11, %v2234_v14, %v2235_v29  ;;  %v2272_v43 = vmul.f32 %v4895_v25, %v4779_v39  ;;  %v2273_v15 = vmul.f32 %v4895_v25, %v4781_v0  ;;  %v2274_v31 = vmul.f32 %v4895_v25, %v4912_v48 }
 0x25b   : > { %v5077_v53 = vsel %vm1015_vm11, %v2235_v29, %v2237_v34  ;;  %v5080_v61 = vsel %vm1015_vm11, %v2256_v4, %v2257_v47  ;;  %v2294_v27 = vmul.f32 %v4907_v24, %v4779_v39  ;;  %v5089_v30 = vsel %vm1015_vm11, %v2257_v47, %v2259_v54 }
 0x25c   : > { %2395 = vrot.lane.b32.xlu0 %v4852_v9, %s5855_s14  ;;  %2397 = vrot.lane.b32.xlu1 %v4849_v35, %s5855_s14  ;;  %5858 = vst [vmem:[#allocation27_spill] sm:$0xff] %v5089_v30  ;;  %v2278_v18 = vrot.slane %v2272_v43, 4  ;;  %v2295_v14 = vmul.f32 %v4907_v24, %v4781_v0  ;;  %v1956_v10 = vmul.f32 %v4861_v19, %v4912_v48  ;;  %v2281_v25 = vrot.slane %v2274_v31, 4 }
 0x25d   : > { %v2300_v58 = vrot.slane %v2294_v27, 4  ;;  %v2296_v12 = vmul.f32 %v4907_v24, %v4912_v48  ;;  %v2210_v45 = vmul.f32 %v4910_v1, %v4779_v39  ;;  %v2211_v34 = vmul.f32 %v4910_v1, %v4781_v0 }
 0x25e   : > { %v2301_v29 = vrot.slane %v2295_v14, 4  ;;  %v1920_v19 = vsel %vm523_vm2, %v1917_v50, %v1919_v26  ;;  %v2212_v47 = vmul.f32 %v4910_v1, %v4912_v48  ;;  %v1961_v63 = vrot.slane %v4958_v20, 1 }
 0x25f   : > { %v2303_v24 = vrot.slane %v2296_v12, 4  ;;  %v2217_v31 = vrot.slane %v2211_v34, 4  ;;  %v1940_v1 = vsel %vm523_vm2, %v1938_v5, %v1939_v22  ;;  %v1976_v27 = vmul.f32 %v4864_v41, %v4779_v39 }
 0x260   : > { %2369 = vrot.lane.b32.xlu0 %v4858_v13, %s5838_s6  ;;  %2378 = vrot.lane.b32.xlu1 %v4858_v13, %s5853_s11  ;;  %s5056_s11 = sld [smem:[#allocation3 + $0x3d]]  ;;  %v5118_v43 = vsel %vm1015_vm11, %v2300_v58, %v2301_v29  ;;  %v2219_v26 = vrot.slane %v2212_v47, 4  ;;  %v1942_v20 = vsel %vm523_vm2, %v1939_v22, %v1941_v8  ;;  %v1978_v42 = vmul.f32 %v4864_v41, %v4912_v48 }
 0x261   : > { %5861 = vst [vmem:[#allocation30_spill] sm:$0xff] %v5118_v43  ;;  %v5123_v50 = vsel %vm1015_vm11, %v2301_v29, %v2303_v24  ;;  %v1982_v58 = vrot.slane %v1976_v27, 1 }
 0x262   : > { %5862 = vst [vmem:[#allocation31_spill] sm:$0xff] %v5123_v50  ;;  %v5144_v5 = vsel %vm1015_vm11, %v2217_v31, %v2219_v26 }
 0x263   : > { %5864 = vst [vmem:[#allocation26_spill] sm:$0xff] %v5144_v5 }
 0x264   : > { %2390 = vrot.lane.b32.xlu0 %v4858_v13, %s5854_s9  ;;  %2399 = vrot.lane.b32.xlu1 %v4858_v13, %s5855_s14  ;;  %s5095_s9 = sld [smem:[#allocation3 + $0x3e]]  ;;  %s3218_s14 = sld [smem:[#allocation3 + $0x3f]] }
 0x266   : > { %v2015_v54 = vstv %s5056_s11  ;;  %s5307_s11 = sld [smem:[#allocation3 + $0x55]] }
 0x267   : > { %v2016_v29 = vmul.f32 %v2015_v54, %v4779_v39  ;;  %v2017_v62 = vmul.f32 %v2015_v54, %v4781_v0  ;;  %v2018_v8 = vmul.f32 %v2015_v54, %v4912_v48 }
 0x268   : > { %1881 = vrot.lane.b32.xlu0 %v4921_v23, %s3533_s2  ;;  %1883 = vrot.lane.b32.xlu1 %v4900_v60, %s3533_s2  ;;  %v2279_v23 = vrot.slane %v2273_v15, 4  ;;  %v2216_v15 = vrot.slane %v2210_v45, 4 }
 0x269   : > { %v2022_v34 = vrot.slane %v2016_v29, 2  ;;  %v2084_v29 = vmul.f32 %v4867_v6, %v4912_v48 }
 0x26a   : > { %v5100_v60 = vsel %vm1015_vm11, %v2278_v18, %v2279_v23  ;;  %v5111_v4 = vsel %vm1015_vm11, %v2279_v23, %v2281_v25  ;;  %v1977_v18 = vmul.f32 %v4864_v41, %v4781_v0  ;;  %v1963_v23 = vrot.slane %v1956_v10, 1 }
 0x26b   : > { %5859 = vst [vmem:[#allocation28_spill] sm:$0xff] %v5100_v60  ;;  %5860 = vst [vmem:[#allocation29_spill] sm:$0xff] %v5111_v4  ;;  %v2037_v25 = vstv %s5095_s9  ;;  %v1985_v41 = vrot.slane %v1978_v42, 1  ;;  %s5309_s9 = sld [smem:[#allocation3 + $0x5a]] }
 0x26c   : > { %1921 = vrot.lane.b32.xlu0 %v1918_v16, %s5838_s6  ;;  %1923 = vrot.lane.b32.xlu1 %v1920_v19, %s5838_s6  ;;  %v1960_v16 = vrot.slane %v4940_v11, 1  ;;  %v5135_v11 = vsel %vm1015_vm11, %v2216_v15, %v2217_v31  ;;  %v1983_v12 = vrot.slane %v1977_v18, 1  ;;  %v1964_v22 = vsel %vm523_vm2, %v1961_v63, %v1963_v23 }
 0x26d   : > { %5863 = vst [vmem:[#allocation24_spill] sm:$0xff] %v5135_v11  ;;  %v2038_v10 = vmul.f32 %v2037_v25, %v4779_v39  ;;  %v2023_v19 = vrot.slane %v2017_v62, 2  ;;  %v2039_v24 = vmul.f32 %v2037_v25, %v4781_v0  ;;  %v2025_v15 = vrot.slane %v2018_v8, 2 }
 0x26e   : > { %v1962_v14 = vsel %vm523_vm2, %v1960_v16, %v1961_v63  ;;  %v1984_v45 = vsel %vm523_vm2, %v1982_v58, %v1983_v12  ;;  %v1986_v47 = vsel %vm523_vm2, %v1983_v12, %v1985_v41  ;;  %v2040_v31 = vmul.f32 %v2037_v25, %v4912_v48 }
 0x26f   : > { %v2059_v16 = vstv %s3218_s14  ;;  %v2044_v54 = vrot.slane %v2038_v10, 2  ;;  %v2024_v63 = vsel %vm801_vm9, %v2022_v34, %v2023_v19  ;;  %v2045_v26 = vrot.slane %v2039_v24, 2  ;;  %s5318_s14 = sld [smem:[#allocation3 + $0x5f]] }
 0x270   : > { %1943 = vrot.lane.b32.xlu0 %v1940_v1, %s3531_s0  ;;  %1945 = vrot.lane.b32.xlu1 %v1942_v20, %s3531_s0  ;;  %v2060_v1 = vmul.f32 %v2059_v16, %v4779_v39  ;;  %v2061_v27 = vmul.f32 %v2059_v16, %v4781_v0  ;;  %v2026_v18 = vsel %vm801_vm9, %v2023_v19, %v2025_v15  ;;  %v2047_v20 = vrot.slane %v2040_v31, 2 }
 0x271   : > { %v2062_v23 = vmul.f32 %v2059_v16, %v4912_v48  ;;  %v2046_v42 = vsel %vm801_vm9, %v2044_v54, %v2045_v26  ;;  %v2091_v41 = vrot.slane %v2084_v29, 2  ;;  %v2124_v8 = vmul.f32 %v4870_v52, %v4912_v48 }
 0x272   : > { %v2067_v25 = vrot.slane %v2061_v27, 2  ;;  %v2048_v58 = vsel %vm801_vm9, %v2045_v26, %v2047_v20  ;;  %v1822_v52 = vstv %s3204_s13  ;;  %v1826_v48 = vstv %s3205_s24  ;;  %s5553_s13 = sld [smem:[#allocation3 + $0x5d]] }
 0x273   : > { %v2069_v12 = vrot.slane %v2062_v23, 2  ;;  %v2092_v6 = vsel %vm801_vm9, %v2089_v46, %v2091_v41  ;;  %v2131_v10 = vrot.slane %v2124_v8, 3  ;;  %v1823_v37 = vmul.f32 %v1822_v52, %v4779_v39 }
 0x274   : > { %1965 = vrot.lane.b32.xlu0 %v1962_v14, %s3532_s1  ;;  %1967 = vrot.lane.b32.xlu1 %v1964_v22, %s3532_s1  ;;  %v2066_v14 = vrot.slane %v2060_v1, 2  ;;  %v1824_v46 = vmul.f32 %v1822_v52, %v4781_v0  ;;  %v2410_v23 = vmul.f32 0.99999994, %v4852_v9  ;;  %v2431_v8 = vstv %s5201_s30  ;;  %s2935_s30 = sshll.u32 %s4734_s22, 4  ;;  %s5706_s30 = int_to_ptr.vmem [resolvable:$true] %s2935_s30 }
 0x275   : > { %v2070_v22 = vsel %vm801_vm9, %v2067_v25, %v2069_v12  ;;  %v2446_v52 = vstv %s5203_s27 }
 0x276   : > { %v2068_v62 = vsel %vm801_vm9, %v2066_v14, %v2067_v25 }
 0x278   : > { %1987 = vrot.lane.b32.xlu0 %v1984_v45, %s3533_s2  ;;  %1989 = vrot.lane.b32.xlu1 %v1986_v47, %s3533_s2  ;;  %v2132_v45 = vsel %vm908_vm10, %v2129_v36, %v2131_v10 }
 0x27c   : > { %2027 = vrot.lane.b32.xlu0 %v2024_v63, %s5838_s6  ;;  %2029 = vrot.lane.b32.xlu1 %v2026_v18, %s5838_s6 }
 0x280   : > { %2049 = vrot.lane.b32.xlu0 %v2046_v42, %s3531_s0  ;;  %2051 = vrot.lane.b32.xlu1 %v2048_v58, %s3531_s0  ;;  %v2411_v58 = vmul.f32 0.99999994, %v4849_v35 }
 0x284   : > { %2071 = vrot.lane.b32.xlu0 %v2068_v62, %s3532_s1  ;;  %2073 = vrot.lane.b32.xlu1 %v2070_v22, %s3532_s1 }
 0x288   : > { %2093 = vrot.lane.b32.xlu0 %v4949_v49, %s3533_s2  ;;  %2095 = vrot.lane.b32.xlu1 %v2092_v6, %s3533_s2  ;;  %v1827_v49 = vadd.f32 %v1826_v48, %v1823_v37 }
 0x28c   : > { %2133 = vrot.lane.b32.xlu0 %v4966_v51, %s5838_s6  ;;  %2135 = vrot.lane.b32.xlu1 %v2132_v45, %s5838_s6  ;;  %v1828_v51 = vadd.f32 %v1826_v48, %v1824_v46  ;;  %v2461_v48 = vstv %s5205_s3  ;;  %v2476_v46 = vstv %s5207_s4  ;;  %s5875_s4 = sld [smem:[#allocation36_spill]] }
 0x290   : > { %2155 = vrot.lane.b32.xlu0 %v4981_v2, %s3531_s0 }
 0x2b6   : > { %v1837_v34 = vpop.permute.xlu0 %1836  ;;  %v1839_v28 = vpop.permute.xlu1 %1838 }
 0x2b7   : > { %v1842_v19 = vadd.f32 %v1837_v34, %v1827_v49  ;;  %v1843_v24 = vadd.f32 %v1839_v28, %v1828_v51  ;;  %v2509_v49 = vstv %s5209_s15  ;;  %v5260_v28 = vstv %s5211_s16  ;;  %s2917_s16 = scalar_lea.sflag [#allocation4], %s3678_s25 }
 0x2ba   : > { %v1852_v36 = vpop.permute.xlu0 %1851  ;;  %v1854_v15 = vpop.permute.xlu1 %1853 }
 0x2bb   : > { %v1857_v47 = vadd.f32 %v1852_v36, %v1842_v19  ;;  %v1858_v31 = vadd.f32 %v1854_v15, %v1843_v24  ;;  %v5263_v24 = vstv %s5213_s18  ;;  %v2412_v36 = vmul.f32 0.99999994, %v4858_v13  ;;  %s3417_s18 = scalar_lea.vmem %s5706_s30, 1024 }
 0x2bc   : > { %v5272_v15 = vstv %s5215_s19  ;;  %v5289_v13 = vstv %s5233_s28  ;;  %p3418_p1 = scmp.ne.s32.totalorder %s5706_s30, %s3417_s18  ;;  %s3534_s19 = smov [#allocation10]  }
 0x2be   : > { %v1867_v16 = vpop.permute.xlu0 %1866  ;;  %v1869_v54 = vpop.permute.xlu1 %1868 }
 0x2bf   : > { %v5197_v2 = vadd.f32 %v1867_v16, %v1857_v47  ;;  %v5199_v63 = vadd.f32 %v1869_v54, %v1858_v31  ;;  %v5275_v31 = vstv %s5217_s20  ;;  %v5278_v16 = vstv %s5222_s23  ;;  %s3421_s20 = sshll.u32 %s3534_s19, 4  ;;  %s3422_s20 = int_to_ptr.vmem [resolvable:$false] %s3421_s20 }
 0x2c0   : > { %s3423_s23 = scalar_lea.vmem %s3422_s20, 2048  ;;  %p3424_p10 = scmp.lt.s32.totalorder %s5706_s30, %s3422_s20 }
 0x2c1   : > { %p3425_p0 = scmp.lt.s32.totalorder %s3423_s23, %s3417_s18 }
 0x2c2   : > { %v2366_v39 = vpop.permute.xlu0 %2365  ;;  %v2368_v26 = vpop.permute.xlu1 %2367 }
 0x2c3   : > { %p3426_p2 = por %p3425_p0, %p3424_p10 }
 0x2c6   : > { %v2375_v1 = vpop.permute.xlu0 %2374  ;;  %v2377_v0 = vpop.permute.xlu1 %2376 }
 0x2c7   : > { %v2383_v42 = vsel %vm578_vm6, %v2366_v39, %v2375_v1  ;;  %v2384_v12 = vsel %vm578_vm6, %v2368_v26, %v2377_v0  ;;  %v5283_v39 = vstv %s5224_s26  ;;  %v5286_v26 = vstv %s5231_s17 }
 0x2ca   : > { %v2387_v27 = vpop.permute.xlu0 %2386  ;;  %v2389_v18 = vpop.permute.xlu1 %2388 }
 0x2ce   : > { %v2396_v20 = vpop.permute.xlu0 %2395  ;;  %v2398_v25 = vpop.permute.xlu1 %2397 }
 0x2cf   : > { %v2404_v14 = vsel %vm600_vm8, %v2387_v27, %v2396_v20  ;;  %v2405_v62 = vsel %vm600_vm8, %v2389_v18, %v2398_v25  ;;  %v5295_v27 = vstv %s5237_s29  ;;  %v5298_v18 = vstv %s5239_s7 }
 0x2d0   : > { %v2407_v29 = vsel %vm3812_vm7, %v2383_v42, %v2404_v14  ;;  %v2408_v22 = vsel %vm3812_vm7, %v2384_v12, %v2405_v62  ;;  %v5302_v14 = vstv %s5242_s8  ;;  %v5305_v25 = vstv %s5244_s5 }
 0x2d1   : > { %v2413_v9 = vmul.f32 -1.26880515e-08, %v2407_v29  ;;  %v2414_v35 = vmul.f32 -1.26880515e-08, %v2408_v22  ;;  %v5316_v62 = vstv %s5248_s10 }
 0x2d2   : > { %v2370_v41 = vpop.permute.xlu0 %2369  ;;  %v2379_v10 = vpop.permute.xlu1 %2378 }
 0x2d3   : > { %v5246_v6 = vadd.f32 %v2413_v9, %v2410_v23  ;;  %v5250_v45 = vadd.f32 %v2414_v35, %v2411_v58  ;;  %v2385_v34 = vsel %vm578_vm6, %v2370_v41, %v2379_v10 }
 0x2d5   : > { %v2432_v37 = vmul.f32 %v2431_v8, %v5246_v6  ;;  %v2433_v19 = vmul.f32 %v2431_v8, %v5250_v45  ;;  %v2447_v0 = vmul.f32 %v2446_v52, %v5246_v6  ;;  %v2448_v42 = vmul.f32 %v2446_v52, %v5250_v45 }
 0x2d6   : > { %v2391_v51 = vpop.permute.xlu0 %2390  ;;  %v2400_v47 = vpop.permute.xlu1 %2399  ;;  %v2510_v12 = vmul.f32 %v2509_v49, %v5246_v6  ;;  %v2511_v29 = vmul.f32 %v2509_v49, %v5250_v45  ;;  %v5328_v35 = vmul.f32 %v5260_v28, %v5250_v45  ;;  %v2462_v8 = vmul.f32 %v2461_v48, %v5246_v6 }
 0x2d7   : > { %2436 = vrot.lane.b32.xlu1 %v2432_v37, %s5838_s6  ;;  %v2406_v54 = vsel %vm600_vm8, %v2391_v51, %v2400_v47  ;;  %2438 = vrot.lane.b32.xlu0 %v2433_v19, %s5838_s6  ;;  %v2554_v10 = vmul.f32 %v5263_v24, %v5246_v6  ;;  %v5336_v52 = vmul.f32 %v5263_v24, %v5250_v45  ;;  %v5341_v51 = vstv %s5265_s21 }
 0x2d8   : > { %v2409_v1 = vsel %vm3812_vm7, %v2385_v34, %v2406_v54  ;;  %v2463_v34 = vmul.f32 %v2461_v48, %v5250_v45  ;;  %v5344_v19 = vstv %s5267_s12  ;;  %v2516_v47 = vrot.slane %v2510_v12, 1 }
 0x2d9   : > { %v2415_v20 = vmul.f32 -1.26880515e-08, %v2409_v1  ;;  %v2517_v54 = vrot.slane %v2511_v29, 1  ;;  %v2539_v48 = vrot.slane %v5328_v35, 1  ;;  %v2478_v12 = vmul.f32 %v2476_v46, %v5250_v45 }
 0x2da   : > { %v1882_v23 = vpop.permute.xlu0 %1881  ;;  %v1884_v58 = vpop.permute.xlu1 %1883 }
 0x2db   : > { %v1887_v32 = vadd.f32 %v1882_v23, %v5197_v2  ;;  %2451 = vrot.lane.b32.xlu1 %v2447_v0, %s3531_s0  ;;  %v5320_v9 = vadd.f32 %v2415_v20, %v2412_v36  ;;  %v1888_v22 = vadd.f32 %v1884_v58, %v5199_v63  ;;  %2453 = vrot.lane.b32.xlu0 %v2448_v42, %s3531_s0  ;;  %v2560_v42 = vrot.slane %v2554_v10, 1 }
 0x2dc   : > { %v2532_v2 = vmul.f32 %v5260_v28, %v5246_v6  ;;  %v2576_v20 = vmul.f32 %v5272_v15, %v5246_v6  ;;  %v2477_v23 = vmul.f32 %v2476_v46, %v5246_v6  ;;  %v5358_v58 = vmul.f32 %v5272_v15, %v5250_v45 }
 0x2dd   : > { %v1905_v41 = vadd.f32 %v4992_v59, %v1887_v32  ;;  %v1906_v37 = vadd.f32 %v4995_v38, %v1888_v22  ;;  %v2512_v1 = vmul.f32 %v2509_v49, %v5320_v9  ;;  %v5797_v32 = vrot.slane %v5336_v52, 1 }
 0x2de   : > { %v1922_v63 = vpop.permute.xlu0 %1921  ;;  %v1924_v36 = vpop.permute.xlu1 %1923  ;;  %v2538_v38 = vrot.slane %v2532_v2, 1  ;;  %v2534_v29 = vmul.f32 %v5260_v28, %v5320_v9  ;;  %v5366_v22 = vstv %s5307_s11  ;;  %v5369_v2 = vstv %s5309_s9 }
 0x2df   : > { %v1927_v59 = vadd.f32 %v1922_v63, %v1905_v41  ;;  %2466 = vrot.lane.b32.xlu1 %v2462_v8, %s3532_s1  ;;  %v1928_v0 = vadd.f32 %v1924_v36, %v1906_v37  ;;  %2468 = vrot.lane.b32.xlu0 %v2463_v34, %s3532_s1  ;;  %v2518_v8 = vsel %vm523_vm2, %v2516_v47, %v2517_v54  ;;  %v2519_v10 = vrot.slane %v2512_v1, 1 }
 0x2e0   : > { %v5374_v63 = vstv %s5318_s14  ;;  %v2540_v46 = vsel %vm523_vm2, %v2538_v38, %v2539_v48  ;;  %v2582_v34 = vrot.slane %v2576_v20, 1  ;;  %v2616_v28 = vmul.f32 %v5275_v31, %v5246_v6 }
 0x2e1   : > { %v2556_v36 = vmul.f32 %v5263_v24, %v5320_v9  ;;  %v2583_v47 = vrot.slane %v5358_v58, 1  ;;  %v2617_v1 = vmul.f32 %v5275_v31, %v5250_v45  ;;  %v2578_v38 = vmul.f32 %v5272_v15, %v5320_v9 }
 0x2e2   : > { %v1944_v49 = vpop.permute.xlu0 %1943  ;;  %v1946_v41 = vpop.permute.xlu1 %1945  ;;  %v2618_v20 = vmul.f32 %v5275_v31, %v5320_v9  ;;  %v2520_v24 = vsel %vm523_vm2, %v2517_v54, %v2519_v10  ;;  %v2639_v58 = vmul.f32 %v5278_v16, %v5250_v45  ;;  %v2622_v15 = vrot.slane %v2616_v28, 2 }
 0x2e3   : > { %v1949_v35 = vadd.f32 %v1944_v49, %v1927_v59  ;;  %2481 = vrot.lane.b32.xlu1 %v2477_v23, %s3533_s2  ;;  %v1950_v37 = vadd.f32 %v1946_v41, %v1928_v0  ;;  %2483 = vrot.lane.b32.xlu0 %v2478_v12, %s3533_s2  ;;  %v2562_v59 = vsel %vm523_vm2, %v2560_v42, %v5797_v32  ;;  %v2541_v23 = vrot.slane %v2534_v29, 1 }
 0x2e4   : > { %v2638_v49 = vmul.f32 %v5278_v16, %v5246_v6  ;;  %v2640_v29 = vmul.f32 %v5278_v16, %v5320_v9  ;;  %v2660_v31 = vmul.f32 %v5283_v39, %v5246_v6  ;;  %v2662_v54 = vmul.f32 %v5283_v39, %v5320_v9 }
 0x2e5   : > { %v5411_v16 = vmul.f32 %v5286_v26, %v5250_v45  ;;  %v2585_v28 = vrot.slane %v2578_v38, 1  ;;  %v2645_v11 = vrot.slane %v2639_v58, 2  ;;  %v2584_v43 = vsel %vm523_vm2, %v2582_v34, %v2583_v47 }
 0x2e6   : > { %v1966_v0 = vpop.permute.xlu0 %1965  ;;  %v1968_v12 = vpop.permute.xlu1 %1967  ;;  %v2666_v4 = vrot.slane %v2660_v31, 2  ;;  %v2829_v31 = vmul.f32 %v5302_v14, %v5250_v45 }
 0x2e7   : > { %v1971_v42 = vadd.f32 %v1966_v0, %v1949_v35  ;;  %2521 = vrot.lane.b32.xlu1 %v2518_v8, %s5838_s6  ;;  %v1972_v41 = vadd.f32 %v1968_v12, %v1950_v37  ;;  %2523 = vrot.lane.b32.xlu0 %v2520_v24, %s5838_s6  ;;  %v2661_v35 = vmul.f32 %v5283_v39, %v5250_v45  ;;  %v2563_v0 = vrot.slane %v2556_v36, 1 }
 0x2e8   : > { %v2682_v8 = vmul.f32 %v5286_v26, %v5246_v6  ;;  %v2542_v37 = vsel %vm523_vm2, %v2539_v48, %v2541_v23  ;;  %v2623_v12 = vrot.slane %v2617_v1, 2  ;;  %v2625_v24 = vrot.slane %v2618_v20, 2 }
 0x2e9   : > { %v2644_v36 = vrot.slane %v2638_v49, 2  ;;  %v2647_v39 = vrot.slane %v2640_v29, 2  ;;  %v2667_v60 = vrot.slane %v2661_v35, 2  ;;  %v2669_v48 = vrot.slane %v2662_v54, 2 }
 0x2ea   : > { %v1988_v10 = vpop.permute.xlu0 %1987  ;;  %v1990_v5 = vpop.permute.xlu1 %1989  ;;  %v2688_v23 = vrot.slane %v2682_v8, 2  ;;  %v2689_v1 = vrot.slane %v5411_v16, 2  ;;  %v5466_v54 = vmul.f32 %v5289_v13, %v5320_v9  ;;  %v5470_v8 = vmul.f32 %v5295_v27, %v5246_v6 }
 0x2eb   : > { %v1993_v32 = vadd.f32 %v1988_v10, %v1971_v42  ;;  %2543 = vrot.lane.b32.xlu1 %v2540_v46, %s3531_s0  ;;  %v1994_v50 = vadd.f32 %v1990_v5, %v1972_v41  ;;  %2545 = vrot.lane.b32.xlu0 %v2542_v37, %s3531_s0  ;;  %v5865_v46 = vrot.slane %v5336_v52, 1  ;;  %v2586_v5 = vsel %vm523_vm2, %v2583_v47, %v2585_v28 }
 0x2ec   : > { %v2624_v42 = vsel %vm801_vm9, %v2622_v15, %v2623_v12  ;;  %v2648_v29 = vsel %vm801_vm9, %v2645_v11, %v2647_v39  ;;  %v5440_v52 = vsel %vm801_vm9, %v2667_v60, %v2669_v48  ;;  %v5457_v47 = vmul.f32 %v5289_v13, %v5250_v45 }
 0x2ed   : > { %v2011_v30 = vadd.f32 %v5002_v7, %v1993_v32  ;;  %v2012_v20 = vadd.f32 %v5005_v56, %v1994_v50  ;;  %v2564_v49 = vsel %vm523_vm2, %v5865_v46, %v2563_v0  ;;  %v2626_v7 = vsel %vm801_vm9, %v2623_v12, %v2625_v24 }
 0x2ee   : > { %v2028_v38 = vpop.permute.xlu0 %2027  ;;  %v2030_v58 = vpop.permute.xlu1 %2029  ;;  %v2646_v32 = vsel %vm801_vm9, %v2644_v36, %v2645_v11  ;;  %v5431_v56 = vsel %vm801_vm9, %v2666_v4, %v2667_v60  ;;  %v5435_v50 = vmul.f32 %v5286_v26, %v5320_v9  ;;  %v5445_v11 = vsel %vm801_vm9, %v2688_v23, %v2689_v1 }
 0x2ef   : > { %v2033_v34 = vadd.f32 %v2028_v38, %v2011_v30  ;;  %2565 = vrot.lane.b32.xlu1 %v2562_v59, %s3532_s1  ;;  %v2034_v41 = vadd.f32 %v2030_v58, %v2012_v20  ;;  %2567 = vrot.lane.b32.xlu0 %v2564_v49, %s3532_s1  ;;  %v2788_v30 = vmul.f32 %v5298_v18, %v5246_v6  ;;  %v2835_v24 = vrot.slane %v2829_v31, 4 }
 0x2f0   : > { %v5449_v59 = vmul.f32 %v5289_v13, %v5246_v6  ;;  %v5453_v4 = vmul.f32 %v5298_v18, %v5250_v45  ;;  %v2828_v15 = vmul.f32 %v5302_v14, %v5246_v6  ;;  %v2691_v28 = vrot.slane %v5435_v50, 2 }
 0x2f1   : > { %v2794_v60 = vrot.slane %v2788_v30, 3  ;;  %v2830_v13 = vmul.f32 %v5302_v14, %v5320_v9  ;;  %v2850_v39 = vmul.f32 %v5305_v25, %v5246_v6  ;;  %v2851_v38 = vmul.f32 %v5305_v25, %v5250_v45 }
 0x2f2   : > { %v2050_v26 = vpop.permute.xlu0 %2049  ;;  %v2052_v0 = vpop.permute.xlu1 %2051  ;;  %v2795_v10 = vrot.slane %v5453_v4, 3  ;;  %v2834_v12 = vrot.slane %v2828_v15, 4  ;;  %v2728_v36 = vrot.slane %v5449_v59, 3  ;;  %v2852_v20 = vmul.f32 %v5305_v25, %v5320_v9 }
 0x2f3   : > { %v2055_v35 = vadd.f32 %v2050_v26, %v2033_v34  ;;  %2587 = vrot.lane.b32.xlu1 %v2584_v43, %s3533_s2  ;;  %v2056_v37 = vadd.f32 %v2052_v0, %v2034_v41  ;;  %2589 = vrot.lane.b32.xlu0 %v2586_v5, %s3533_s2  ;;  %v2872_v46 = vmul.f32 %v5316_v62, %v5246_v6  ;;  %v2837_v14 = vrot.slane %v2830_v13, 4 }
 0x2f4   : > { %v5479_v43 = vsel %vm908_vm10, %v2794_v60, %v2795_v10  ;;  %v5486_v23 = vsel %vm1015_vm11, %v2834_v12, %v2835_v24  ;;  %v2856_v34 = vrot.slane %v2850_v39, 4  ;;  %v2873_v58 = vmul.f32 %v5316_v62, %v5250_v45 }
 0x2f5   : > { %v2857_v50 = vrot.slane %v2851_v38, 4  ;;  %v2859_v30 = vrot.slane %v2852_v20, 4  ;;  %v2878_v26 = vrot.slane %v2872_v46, 4  ;;  %v5499_v25 = vsel %vm1015_vm11, %v2835_v24, %v2837_v14 }
 0x2f6   : > { %v2072_v48 = vpop.permute.xlu0 %2071  ;;  %v2074_v5 = vpop.permute.xlu1 %2073  ;;  %v2879_v60 = vrot.slane %v2873_v58, 4  ;;  %v2874_v15 = vmul.f32 %v5316_v62, %v5320_v9  ;;  %v5522_v38 = vmul.f32 %v5295_v27, %v5250_v45  ;;  %v2600_v16 = vmul.f32 %v5366_v22, %v5320_v9 }
 0x2f7   : > { %v2077_v49 = vadd.f32 %v2072_v48, %v2055_v35  ;;  %2627 = vrot.lane.b32.xlu1 %v2624_v42, %s5838_s6  ;;  %v2078_v41 = vadd.f32 %v2074_v5, %v2056_v37  ;;  %2629 = vrot.lane.b32.xlu0 %v2626_v7, %s5838_s6  ;;  %v2894_v42 = vmul.f32 %v5341_v51, %v5246_v6  ;;  %v2765_v59 = vstv %s5553_s13 }
 0x2f8   : > { %v5506_v35 = vsel %vm1015_vm11, %v2856_v34, %v2857_v50  ;;  %v5509_v0 = vsel %vm1015_vm11, %v2857_v50, %v2859_v30  ;;  %v2895_v7 = vmul.f32 %v5341_v51, %v5250_v45  ;;  %v2896_v37 = vmul.f32 %v5341_v51, %v5320_v9 }
 0x2f9   : > { %v5517_v62 = vsel %vm1015_vm11, %v2878_v26, %v2879_v60  ;;  %v2881_v13 = vrot.slane %v2874_v15, 4  ;;  %v2900_v39 = vrot.slane %v2894_v42, 4  ;;  %v2493_v5 = vmul.f32 %v5344_v19, %v5250_v45 }
 0x2fa   : > { %v2094_v31 = vpop.permute.xlu0 %2093  ;;  %v2096_v24 = vpop.permute.xlu1 %2095  ;;  %v2901_v20 = vrot.slane %v2895_v7, 4  ;;  %v2903_v46 = vrot.slane %v2896_v37, 4  ;;  %v2492_v30 = vmul.f32 %v5344_v19, %v5246_v6  ;;  %v2607_v15 = vrot.slane %v2600_v16, 2 }
 0x2fb   : > { %v2099_v12 = vadd.f32 %v2094_v31, %v2077_v49  ;;  %2649 = vrot.lane.b32.xlu1 %v2646_v32, %s3531_s0  ;;  %v2100_v48 = vadd.f32 %v2096_v24, %v2078_v41  ;;  %2651 = vrot.lane.b32.xlu0 %v2648_v29, %s3531_s0  ;;  %v2729_v49 = vrot.slane %v5457_v47, 3  ;;  %v5527_v32 = vsel %vm1015_vm11, %v2879_v60, %v2881_v13 }
 0x2fc   : > { %v2731_v29 = vrot.slane %v5466_v54, 3  ;;  %v5536_v58 = vsel %vm1015_vm11, %v2900_v39, %v2901_v20  ;;  %v5539_v41 = vsel %vm1015_vm11, %v2901_v20, %v2903_v46  ;;  %v2692_v47 = vsel %vm801_vm9, %v2689_v1, %v2691_v28 }
 0x2fd   : > { %v2117_v51 = vadd.f32 %v5012_v33, %v2099_v12  ;;  %v5532_v34 = vadd.f32 %v5015_v55, %v2100_v48  ;;  %v2750_v55 = vrot.slane %v5470_v8, 3  ;;  %v2494_v54 = vmul.f32 %v5344_v19, %v5320_v9 }
 0x2fe   : > { %v2134_v14 = vpop.permute.xlu0 %2133  ;;  %v2499_v50 = vrot.slane %v2493_v5, 1  ;;  %v2598_v8 = vmul.f32 %v5366_v22, %v5246_v6  ;;  %v2705_v28 = vmul.f32 %v5369_v2, %v5250_v45  ;;  %v2498_v26 = vrot.slane %v2492_v30, 1 }
 0x2ff   : > { %v5541_v33 = vadd.f32 %v2134_v14, %v2117_v51  ;;  %2671 = vrot.lane.b32.xlu1 %v5431_v56, %s3532_s1  ;;  %2673 = vrot.lane.b32.xlu0 %v5440_v52, %s3532_s1  ;;  %v2599_v56 = vmul.f32 %v5366_v22, %v5250_v45  ;;  %v2501_v1 = vrot.slane %v2494_v54, 1  ;;  %v2706_v52 = vmul.f32 %v5369_v2, %v5320_v9 }
 0x300   : > { %v2704_v19 = vmul.f32 %v5369_v2, %v5246_v6  ;;  %v2751_v42 = vrot.slane %v5522_v38, 3  ;;  %v2604_v22 = vrot.slane %v2598_v8, 2  ;;  %v2711_v7 = vrot.slane %v2705_v28, 3 }
 0x301   : > { %v2605_v60 = vrot.slane %v2599_v56, 2  ;;  %v5573_v31 = vsel %vm523_vm2, %v2499_v50, %v2501_v1  ;;  %v5577_v37 = vsel %vm523_vm2, %v2498_v26, %v2499_v50  ;;  %v2713_v24 = vrot.slane %v2706_v52, 3 }
 0x302   : > { %v2710_v2 = vrot.slane %v2704_v19, 3  ;;  %v2810_v13 = vmul.f32 %v5374_v63, %v5246_v6  ;;  %v2811_v39 = vmul.f32 %v5374_v63, %v5250_v45  ;;  %v2812_v48 = vmul.f32 %v5374_v63, %v5320_v9 }
 0x303   : > { %2693 = vrot.lane.b32.xlu1 %v5445_v11, %s3533_s2  ;;  %2695 = vrot.lane.b32.xlu0 %v2692_v47, %s3533_s2  ;;  %v5580_v12 = vsel %vm801_vm9, %v2605_v60, %v2607_v15  ;;  %v5583_v11 = vsel %vm801_vm9, %v2604_v22, %v2605_v60  ;;  %v2730_v38 = vsel %vm908_vm10, %v2728_v36, %v2729_v49 }
 0x304   : > { %v2746_v20 = vmul.f32 %v5295_v27, %v5320_v9  ;;  %v5597_v46 = vsel %vm908_vm10, %v2711_v7, %v2713_v24  ;;  %v5600_v51 = vsel %vm908_vm10, %v2710_v2, %v2711_v7  ;;  %v2732_v5 = vsel %vm908_vm10, %v2729_v49, %v2731_v29 }
 0x305   : > { %v2816_v14 = vrot.slane %v2810_v13, 4  ;;  %v2817_v47 = vrot.slane %v2811_v39, 4  ;;  %v2819_v63 = vrot.slane %v2812_v48, 4  ;;  %v2752_v50 = vsel %vm908_vm10, %v2750_v55, %v2751_v42 }
 0x306   : > { %v2753_v54 = vrot.slane %v2746_v20, 3  ;;  %v2766_v49 = vmul.f32 %v2765_v59, %v5246_v6  ;;  %v2767_v29 = vmul.f32 %v2765_v59, %v5250_v45  ;;  %v2768_v56 = vmul.f32 %v2765_v59, %v5320_v9 }
 0x307   : > { %2733 = vrot.lane.b32.xlu1 %v2730_v38, %s5838_s6  ;;  %2735 = vrot.lane.b32.xlu0 %v2732_v5, %s5838_s6  ;;  %v5607_v36 = vsel %vm1015_vm11, %v2816_v14, %v2817_v47  ;;  %v5610_v27 = vsel %vm1015_vm11, %v2817_v47, %v2819_v63  ;;  %v2790_v28 = vmul.f32 %v5298_v18, %v5320_v9  ;;  %v5675_v18 = vpop.permute.xlu0 %2155 }
 0x308   : > { %v2754_v30 = vsel %vm908_vm10, %v2751_v42, %v2753_v54  ;;  %v2772_v16 = vrot.slane %v2766_v49, 3  ;;  %v2773_v1 = vrot.slane %v2767_v29, 3 }
 0x309   : > { %v2797_v52 = vrot.slane %v2790_v28, 3 }
 0x30a   : > { %v2774_v55 = vsel %vm908_vm10, %v2772_v16, %v2773_v1 }
 0x30b   : > { %2157 = vrot.lane.b32.xlu1 %v5028_v17, %s3531_s0  ;;  %2755 = vrot.lane.b32.xlu0 %v2752_v50, %s3531_s0  ;;  %v2775_v17 = vrot.slane %v2768_v56, 3 }
 0x30d   : > { %v2776_v8 = vsel %vm908_vm10, %v2773_v1, %v2775_v17 }
 0x30f   : > { %2757 = vrot.lane.b32.xlu1 %v2754_v30, %s3531_s0  ;;  %2177 = vrot.lane.b32.xlu0 %v5039_v21, %s3532_s1  ;;  %v2798_v21 = vsel %vm908_vm10, %v2795_v10, %v2797_v52 }
 0x313   : > { %2179 = vrot.lane.b32.xlu1 %v5042_v40, %s3532_s1  ;;  %2777 = vrot.lane.b32.xlu0 %v2774_v55, %s3532_s1  ;;  %v5866_v40 = vld [vmem:[#allocation27_spill] sm:$0xff] }
 0x317   : > { %2779 = vrot.lane.b32.xlu1 %v2776_v8, %s3532_s1  ;;  %2199 = vrot.lane.b32.xlu0 %v5059_v57, %s3533_s2  ;;  %v5867_v57 = vld [vmem:[#allocation28_spill] sm:$0xff] }
 0x31b   : > { %2201 = vrot.lane.b32.xlu1 %v5062_v3, %s3533_s2  ;;  %2799 = vrot.lane.b32.xlu0 %v5479_v43, %s3533_s2  ;;  %v5868_v3 = vld [vmem:[#allocation29_spill] sm:$0xff] }
 0x31f   : > { %2801 = vrot.lane.b32.xlu1 %v2798_v21, %s3533_s2  ;;  %2239 = vrot.lane.b32.xlu0 %v5068_v44, %s5838_s6  ;;  %v5869_v44 = vld [vmem:[#allocation30_spill] sm:$0xff] }
 0x323   : > { %2241 = vrot.lane.b32.xlu1 %v5077_v53, %s5838_s6  ;;  %2839 = vrot.lane.b32.xlu0 %v5486_v23, %s5838_s6  ;;  %v5870_v53 = vld [vmem:[#allocation31_spill] sm:$0xff] }
 0x327   : > { %2841 = vrot.lane.b32.xlu1 %v5499_v25, %s5838_s6  ;;  %2261 = vrot.lane.b32.xlu0 %v5080_v61, %s3531_s0  ;;  %s3235_s6 = sld [smem:[#allocation3 + $0x4b]]  ;;  %v5673_v61 = vpop.permute.xlu1 %2135 }
 0x32b   : > { %2263 = vrot.lane.b32.xlu1 %v5866_v40, %s3531_s0  ;;  %2861 = vrot.lane.b32.xlu0 %v5506_v35, %s3531_s0 }
 0x32d   : > { %v2422_v9 = vstv %s3235_s6 }
 0x32e   : > { %v2423_v43 = vmul.f32 %v2422_v9, %v5246_v6  ;;  %v2424_v25 = vmul.f32 %v2422_v9, %v5250_v45 }
 0x32f   : > { %2863 = vrot.lane.b32.xlu1 %v5509_v0, %s3531_s0  ;;  %2283 = vrot.lane.b32.xlu0 %v5867_v57, %s3532_s1  ;;  %s3236_s0 = sld [smem:[#allocation6 + $0x3]] }
 0x333   : > { %2285 = vrot.lane.b32.xlu1 %v5868_v3, %s3532_s1  ;;  %2883 = vrot.lane.b32.xlu0 %v5517_v62, %s3532_s1 }
 0x335   : > { %v2426_v23 = vstv %s3236_s0 }
 0x336   : > { %v2427_v0 = vadd.f32 %v2426_v23, %v2423_v43 }
 0x337   : > { %2885 = vrot.lane.b32.xlu1 %v5527_v32, %s3532_s1  ;;  %2305 = vrot.lane.b32.xlu0 %v5869_v44, %s3533_s2  ;;  %v2428_v32 = vadd.f32 %v2426_v23, %v2424_v25  ;;  %s5873_s1 = sld [smem:[#allocation17_spill]] }
 0x33b   : > { %2307 = vrot.lane.b32.xlu1 %v5870_v53, %s3533_s2  ;;  %2905 = vrot.lane.b32.xlu0 %v5536_v58, %s3533_s2 }
 0x33d   : > { %s3268_s24 = sshll.u32 %s5873_s1, 10 }
 0x33e   : > { %s5704_s15 = scalar_lea.hbm %s5875_s4, %s3268_s24 }
 0x33f   : > { %2907 = vrot.lane.b32.xlu1 %v5539_v41, %s3533_s2  ;;  %s5874_s2 = sld [smem:[#allocation21_spill]] }
 0x345   : > { %p5876_p3 = scmp.ne.s32.totalorder %s5874_s2, 0 }
 0x347   : > { %p3419_p8 = pnand %p3418_p1, %p5876_p3 }
 0x349   : > { %v2437_v4 = vpop.permute.xlu1 %2436  ;;  %v2439_v10 = vpop.permute.xlu0 %2438  ;;  %p3420_p9 = pneg %p3419_p8 }
 0x34a   : > { %v2442_v58 = vadd.f32 %v2437_v4, %v2427_v0  ;;  %v2443_v41 = vadd.f32 %v2439_v10, %v2428_v32 }
 0x34b   : > { %p3427_p6 = pnand %p3426_p2, %p3420_p9 }
 0x34d   : > { %v2452_v35 = vpop.permute.xlu1 %2451  ;;  %v2454_v62 = vpop.permute.xlu0 %2453 }
 0x34e   : > { %v2457_v60 = vadd.f32 %v2452_v35, %v2442_v58  ;;  %v2458_v19 = vadd.f32 %v2454_v62, %v2443_v41 }
 0x351   : > { %v2467_v26 = vpop.permute.xlu1 %2466  ;;  %v2469_v15 = vpop.permute.xlu0 %2468 }
 0x352   : > { %v2472_v42 = vadd.f32 %v2467_v26, %v2457_v60  ;;  %v2473_v22 = vadd.f32 %v2469_v15, %v2458_v19  ;;  %v2161_v26 = vadd.f32 %v5675_v18, %v5541_v33  ;;  %v2140_v60 = vadd.f32 %v5673_v61, %v5532_v34 }
 0x355   : > { %v2482_v7 = vpop.permute.xlu1 %2481  ;;  %v2484_v24 = vpop.permute.xlu0 %2483 }
 0x356   : > { %v2487_v2 = vadd.f32 %v2482_v7, %v2472_v42  ;;  %v2488_v13 = vadd.f32 %v2484_v24, %v2473_v22 }
 0x358   : > { %v2505_v6 = vadd.f32 %v5577_v37, %v2487_v2  ;;  %v2506_v45 = vadd.f32 %v5573_v31, %v2488_v13 }
 0x359   : > { %v2522_v39 = vpop.permute.xlu1 %2521  ;;  %v2524_v48 = vpop.permute.xlu0 %2523 }
 0x35a   : > { %v2527_v5 = vadd.f32 %v2522_v39, %v2505_v6  ;;  %v2528_v14 = vadd.f32 %v2524_v48, %v2506_v45  ;;  %v5871_v45 = vld [vmem:[#allocation24_spill] sm:$0xff] }
 0x35d   : > { %v2544_v38 = vpop.permute.xlu1 %2543  ;;  %v2546_v20 = vpop.permute.xlu0 %2545 }
 0x35e   : > { %v2549_v63 = vadd.f32 %v2544_v38, %v2527_v5  ;;  %v2550_v54 = vadd.f32 %v2546_v20, %v2528_v14  ;;  %v5872_v5 = vld [vmem:[#allocation26_spill] sm:$0xff] }
 0x361   : > { %v2566_v47 = vpop.permute.xlu1 %2565  ;;  %v2568_v59 = vpop.permute.xlu0 %2567 }
 0x362   : > { %v2571_v50 = vadd.f32 %v2566_v47, %v2549_v63  ;;  %v2572_v49 = vadd.f32 %v2568_v59, %v2550_v54 }
 0x365   : > { %v2588_v29 = vpop.permute.xlu1 %2587  ;;  %v2590_v30 = vpop.permute.xlu0 %2589 }
 0x366   : > { %v2593_v56 = vadd.f32 %v2588_v29, %v2571_v50  ;;  %v2594_v16 = vadd.f32 %v2590_v30, %v2572_v49 }
 0x368   : > { %v2611_v37 = vadd.f32 %v5583_v11, %v2593_v56  ;;  %v2612_v31 = vadd.f32 %v5580_v12, %v2594_v16 }
 0x369   : > { %v2628_v1 = vpop.permute.xlu1 %2627  ;;  %v2630_v17 = vpop.permute.xlu0 %2629 }
 0x36a   : > { %v2633_v28 = vadd.f32 %v2628_v1, %v2611_v37  ;;  %v2634_v52 = vadd.f32 %v2630_v17, %v2612_v31 }
 0x36d   : > { %v2650_v55 = vpop.permute.xlu1 %2649  ;;  %v2652_v8 = vpop.permute.xlu0 %2651 }
 0x36e   : > { %v2655_v40 = vadd.f32 %v2650_v55, %v2633_v28  ;;  %v2656_v3 = vadd.f32 %v2652_v8, %v2634_v52 }
 0x371   : > { %v2672_v21 = vpop.permute.xlu1 %2671  ;;  %v2674_v57 = vpop.permute.xlu0 %2673 }
 0x372   : > { %v2677_v44 = vadd.f32 %v2672_v21, %v2655_v40  ;;  %v2678_v53 = vadd.f32 %v2674_v57, %v2656_v3 }
 0x375   : > { %v2694_v9 = vpop.permute.xlu1 %2693  ;;  %v2696_v4 = vpop.permute.xlu0 %2695 }
 0x376   : > { %v2699_v10 = vadd.f32 %v2694_v9, %v2677_v44  ;;  %v2700_v43 = vadd.f32 %v2696_v4, %v2678_v53 }
 0x378   : > { %v2717_v11 = vadd.f32 %v5600_v51, %v2699_v10  ;;  %v2718_v12 = vadd.f32 %v5597_v46, %v2700_v43 }
 0x379   : > { %v2734_v23 = vpop.permute.xlu1 %2733  ;;  %v2736_v25 = vpop.permute.xlu0 %2735 }
 0x37a   : > { %v2739_v15 = vadd.f32 %v2734_v23, %v2717_v11  ;;  %v2740_v24 = vadd.f32 %v2736_v25, %v2718_v12 }
 0x37d   : > { %v2158_v35 = vpop.permute.xlu1 %2157  ;;  %v2756_v0 = vpop.permute.xlu0 %2755 }
 0x37e   : > { %v2162_v51 = vadd.f32 %v2158_v35, %v2140_v60  ;;  %v2761_v46 = vadd.f32 %v2756_v0, %v2739_v15 }
 0x381   : > { %v2758_v62 = vpop.permute.xlu1 %2757  ;;  %v2178_v32 = vpop.permute.xlu0 %2177 }
 0x382   : > { %v2183_v19 = vadd.f32 %v2178_v32, %v2161_v26  ;;  %v2762_v48 = vadd.f32 %v2758_v62, %v2740_v24 }
 0x385   : > { %v2180_v58 = vpop.permute.xlu1 %2179  ;;  %v2778_v41 = vpop.permute.xlu0 %2777 }
 0x386   : > { %v2184_v2 = vadd.f32 %v2180_v58, %v2162_v51  ;;  %v2783_v13 = vadd.f32 %v2778_v41, %v2761_v46 }
 0x389   : > { %v2780_v42 = vpop.permute.xlu1 %2779  ;;  %v2200_v22 = vpop.permute.xlu0 %2199 }
 0x38a   : > { %v2205_v7 = vadd.f32 %v2200_v22, %v2183_v19  ;;  %v2784_v18 = vadd.f32 %v2780_v42, %v2762_v48 }
 0x38c   : > { %v2223_v39 = vadd.f32 %v5871_v45, %v2205_v7 }
 0x38d   : > { %v2202_v6 = vpop.permute.xlu1 %2201  ;;  %v2800_v38 = vpop.permute.xlu0 %2799 }
 0x38e   : > { %v2206_v20 = vadd.f32 %v2202_v6, %v2184_v2  ;;  %v2805_v33 = vadd.f32 %v2800_v38, %v2783_v13 }
 0x390   : > { %v2224_v34 = vadd.f32 %v5872_v5, %v2206_v20  ;;  %v2823_v14 = vadd.f32 %v5607_v36, %v2805_v33 }
 0x391   : > { %v2802_v61 = vpop.permute.xlu1 %2801  ;;  %v2240_v47 = vpop.permute.xlu0 %2239 }
 0x392   : > { %v2806_v63 = vadd.f32 %v2802_v61, %v2784_v18  ;;  %v2245_v31 = vadd.f32 %v2240_v47, %v2223_v39 }
 0x394   : > { %v2824_v59 = vadd.f32 %v5610_v27, %v2806_v63 }
 0x395   : > { %v2242_v54 = vpop.permute.xlu1 %2241  ;;  %v2840_v50 = vpop.permute.xlu0 %2839 }
 0x396   : > { %v2246_v8 = vadd.f32 %v2242_v54, %v2224_v34  ;;  %v2845_v36 = vadd.f32 %v2840_v50, %v2823_v14 }
 0x399   : > { %v2842_v49 = vpop.permute.xlu1 %2841  ;;  %v2262_v29 = vpop.permute.xlu0 %2261 }
 0x39a   : > { %v2267_v55 = vadd.f32 %v2262_v29, %v2245_v31  ;;  %v2846_v3 = vadd.f32 %v2842_v49, %v2824_v59 }
 0x39d   : > { %v2264_v30 = vpop.permute.xlu1 %2263  ;;  %v2862_v56 = vpop.permute.xlu0 %2861 }
 0x39e   : > { %v2268_v27 = vadd.f32 %v2264_v30, %v2246_v8  ;;  %v2867_v40 = vadd.f32 %v2862_v56, %v2845_v36 }
 0x3a1   : > { %v2864_v16 = vpop.permute.xlu1 %2863  ;;  %v2284_v37 = vpop.permute.xlu0 %2283 }
 0x3a2   : > { %v2289_v28 = vadd.f32 %v2284_v37, %v2267_v55  ;;  %v2868_v4 = vadd.f32 %v2864_v16, %v2846_v3 }
 0x3a5   : > { %v2286_v1 = vpop.permute.xlu1 %2285  ;;  %v2884_v17 = vpop.permute.xlu0 %2883 }
 0x3a6   : > { %v2290_v44 = vadd.f32 %v2286_v1, %v2268_v27  ;;  %v2889_v53 = vadd.f32 %v2884_v17, %v2867_v40 }
 0x3a9   : > { %v2886_v52 = vpop.permute.xlu1 %2885  ;;  %v2306_v21 = vpop.permute.xlu0 %2305 }
 0x3aa   : > { %v2311_v57 = vadd.f32 %v2306_v21, %v2289_v28  ;;  %v2890_v12 = vadd.f32 %v2886_v52, %v2868_v4 }
 0x3ac   : > { %3230 = vst.msk [vmem:[%s4734_s22 + $0x20] sm:$0xff] %vm1113_vm12, %v2311_v57 }
 0x3ad   : > { %v2308_v9 = vpop.permute.xlu1 %2307  ;;  %v2906_v10 = vpop.permute.xlu0 %2905 }
 0x3ae   : > { %v2312_v43 = vadd.f32 %v2308_v9, %v2290_v44  ;;  %v2911_v11 = vadd.f32 %v2906_v10, %v2889_v53 }
 0x3b0   : > { %3231 = vst.msk [vmem:[%s4734_s22 + $0x28] sm:$0xff] %vm1113_vm12, %v2312_v43  ;;  %3261 = vst.msk [vmem:[%s4734_s22 + $0x30] sm:$0xff] %vm1113_vm12, %v2911_v11 }
 0x3b1   : > { %v2908_v23 = vpop.permute.xlu1 %2907 }
 0x3b2   : > { %v2912_v25 = vadd.f32 %v2908_v23, %v2890_v12 }
 0x3b4   : > { %3262 = vst.msk [vmem:[%s4734_s22 + $0x38] sm:$0xff] %vm1113_vm12, %v2912_v25 }
 0x3b5   : > { %3430 = shalt.err (!%p3427_p6)
}
 0x3b6   : > { %s3431_s22 = scalar_lea.hbm %s5704_s15, 1024  ;;  %s3435_s28 = scalar_lea.hbm %s5875_s4, 2048 }
 0x3b7   : > { %p3432_p7 = scmp.ne.s32.totalorder %s5704_s15, %s3431_s22  ;;  %p3436_p12 = scmp.lt.u32.totalorder %s5704_s15, %s5875_s4 }
 0x3b8   : > { %p3437_p13 = scmp.lt.u32.totalorder %s3435_s28, %s3431_s22  ;;  %p3439_p8 = scmp.lt.u32.totalorder %s3431_s22, %s5704_s15 }
 0x3b9   : > { %p3433_p4 = pnand %p3432_p7, %p5876_p3 }
 0x3ba   : > { %p3438_p1 = por %p3437_p13, %p3436_p12 }
 0x3bb   : > { %p3434_p5 = pneg %p3433_p4 }
 0x3bc   : > { %p3440_p9 = por %p3439_p8, %p3438_p1 }
 0x3be   : > { %p3441_p10 = pnand %p3440_p9, %p3434_p5 }
 0x3c0   : > { %3444 = shalt.err (!%p3441_p10)
}
 0x3c1   : > { %s3535_s8 = smov 128   ;;  %s3536_s5 = smov 8  }
 0x3c2   : > { %3278 = dma.vmem_to_hbm [thread:$0]  (%p5876_p3), %s5706_s30, 1024, %s5704_s15, %s2917_s16, %s3535_s8, %s3535_s8, %s3536_s5  }
 0x3c3 PF: > { %s5877_s10 = sld [smem:[#allocation14_spill]]  ;;  %s5878_s21 = sld [smem:[#allocation23_spill]] }
 0x3c4   : > { %s5879_s12 = sld [smem:[#allocation19_spill]] }
 0x3c9   : > { %s2950_s11 = sand.u32 1, %s5877_s10   ;;  %p5880_p0 = scmp.ne.s32.totalorder %s5878_s21, 0 }
 0x3ca   : > { %s2951_s9 = scalar_lea.sflag [#allocation4], %s2950_s11 }
 0x3cb   : > { %p3288_p2 = pnand %p3123_p11, %p5880_p0 }
 0x3cd   : > { %3494 = dma.done.wait (!%p3288_p2), %s2951_s9, 1024  }
 0x3ce   : > { %3496 = vsyncadd (!%p3288_p2), %s2951_s9, 4294966272  ;;  %s19_s20 = sadd.s32 1, %s5879_s12   ;;  %s5881_s15 = sld [smem:[#allocation15_spill]] }
 0x3cf   : > { %p16_p6 = scmp.ge.s32.totalorder %s19_s20, 4   ;;  %s5882_s16 = sld [smem:[#allocation16_spill]] }
 0x3d0   : > { %s5883_s17 = sld [smem:[#allocation22_spill]]  ;;  %s5884_s18 = sld [smem:[#allocation18_spill]] }
 0x3d1   : > { %s5885_s19 = sld [smem:[#allocation20_spill]]  ;;  %18 = sbr.rel (!%p16_p6) target bundleno = 12 (0xc), region = 222 }
 0x3d8   :  { %2956 = vsyncpa [#allocation4], 1 }
 0x3d9   :  { %2958 = vsyncpa [#allocation4 + $0x1], 1 }
 0x3da   :  { %2959 = vsyncpa [#allocation5], 1 }
 0x3db   :  { %2961 = vsyncpa [#allocation5 + $0x1], 1 }
 0x3dc   :  { %2962 = vsyncpa [#allocation7], 1 }

</bundles_post_ra>
